<compile_context>
chip_gen: v7x
topology: tpu7x:2x2x1
jax: 0.10.0
libtpu: 0.0.40
codegen_flags: <defaults>
</compile_context>

<pallas_src>
import functools

import jax
import jax.numpy as jnp
from jax import lax
from jax.experimental import pallas as pl
from jax.experimental.pallas import tpu as pltpu


H_IN, W_IN = 32, 32          # input spatial size implied by fc1 (6 * 15 * 15 == 1350)
W_PAD = 40                   # input width zero-padded so 32-wide tap slices stay in bounds
C_OUT = 6                    # conv output channels
P = 15                       # pooled spatial size
K_FC = C_OUT * P * 16        # 1440 flat features (16-row stride per (c, ph), last row padded)


def _round_up(a, b):
    return (a + b - 1) // b * b


def net_kernel(x_ref, cw_ref, cb_ref, fcw_ref, fcb_ref, o_ref, tmp_ref, scr_ref):
    """Fused forward pass for one batch tile (batch on the lane axis).

      x_ref:   (32, 40, B_t) VMEM  input images, layout (h, w_padded, n)
      cw_ref:  (54,)         SMEM  conv taps, index = c*9 + dh*3 + dw
      cb_ref:  (6,)          SMEM  conv bias
      fcw_ref: (10, 1440)    VMEM  packed fc weight; col (c*15+ph)*16 + pw (pw==15 -> 0)
      fcb_ref: (10, 1)       VMEM  fc bias
      o_ref:   (10, B_t)     VMEM  logits^T for the batch tile
      tmp_ref: (192, B_t)    VMEM  h-pooled rows (32 per channel) for the w-pool gather
      scr_ref: (1440, B_t)   VMEM  flat pooled feature map fed to the FC matmul
    """
    bt = x_ref.shape[-1]

    def row_body(r, carry):
        # ---- conv rows 2r and 2r+1, all 6 channels, accumulated in registers ----
        relu_rows = []
        for e in range(2):
            # Bias folded into the accumulator init.  Columns >= 30 are don't-care:
            # they only read the zero-padded input columns and get zero FC weight.
            accs = [jnp.full((32, bt), cb_ref[c], jnp.float32) for c in range(C_OUT)]
            for dh in range(3):
                slab = x_ref[2 * r + e + dh]                  # (40, B_t) aligned row load
                for dw in range(3):
                    sh = slab[dw:dw + 32, :]                  # static sublane-shifted view
                    for c in range(C_OUT):
                        accs[c] = accs[c] + cw_ref[c * 9 + dh * 3 + dw] * sh
            relu_rows.append([jnp.maximum(a, 0.0) for a in accs])   # ReLU
        # (the module's second ReLU after max-pool is a no-op on >= 0 values)

        # ---- 2x2 max-pool, stride 2 ---------------------------------------------
        # Pool over h in registers, stash the 32-wide row, then pool over w via
        # stride-2 sublane reads and pack the pooled row straight into the flat
        # FC scratch (row 15 of each 16-block is junk but finite and gets 0 weight).
        for c in range(C_OUT):
            tmp_ref[c * 32:(c + 1) * 32, :] = jnp.maximum(relu_rows[0][c],
                                                          relu_rows[1][c])
        for c in range(C_OUT):
            ev = tmp_ref[pl.ds(c * 32, 16, 2), :]             # hp[0], hp[2], ..., hp[30]
            od = tmp_ref[pl.ds(c * 32 + 1, 16, 2), :]         # hp[1], hp[3], ..., hp[31]
            pooled = jnp.maximum(ev, od)                      # (16, B_t)
            base = pl.multiple_of((c * P + r) * 16, 16)
            scr_ref[pl.ds(base, 16), :] = pooled
        return carry

    lax.fori_loop(0, P, row_body, 0)

    # ---- fc1: one MXU matmul over the whole flattened pooled feature map --------
    o_ref[...] = (
        jnp.dot(fcw_ref[...], scr_ref[...], preferred_element_type=jnp.float32)
        + fcb_ref[...]
    )


def pack_params(conv_w, conv_b, fc_w, fc_b):
    """One-time parameter repacking (call at init, not per forward)."""
    cw = conv_w.reshape(C_OUT, 9).reshape(-1).astype(jnp.float32)        # (54,)
    cb = conv_b.astype(jnp.float32)                                      # (6,)
    # fc_w[j, c*225 + ph*15 + pw] -> fcw[j, (c*15 + ph)*16 + pw]; pw == 15 column is 0.
    fcw = jnp.pad(fc_w.reshape(10, C_OUT, P, P).astype(jnp.float32),
                  ((0, 0), (0, 0), (0, 0), (0, 1))).reshape(10, K_FC)    # (10, 1440)
    fcb = fc_b.reshape(10, 1).astype(jnp.float32)                        # (10, 1)
    return cw, cb, fcw, fcb


@functools.partial(jax.jit, static_argnames=("block_batch",))
def net_forward(x, packed, block_batch=128):
    """x: (N, 1, 32, 32) f32 -> logits (N, 10) f32."""
    cw, cb, fcw, fcb = packed
    n = x.shape[0]

    # Batch tile must be the lane width (128) or a multiple of it (BlockSpec lane
    # constraint); sub-128 requests are rounded up.
    bt = max(128, _round_up(min(block_batch, n), 128))
    n_pad = _round_up(n, bt)

    # Batch on the lane axis; width zero-padded 32 -> 40 so the three tap shifts
    # can be taken as in-bounds 32-wide sublane slices.
    xt = jnp.transpose(x[:, 0], (1, 2, 0)).astype(jnp.float32)           # (32, 32, N)
    xt = jnp.pad(xt, ((0, 0), (0, W_PAD - W_IN), (0, n_pad - n)))        # (32, 40, n_pad)

    out_t = pl.pallas_call(
        net_kernel,
        out_shape=jax.ShapeDtypeStruct((10, n_pad), jnp.float32),
        grid=(n_pad // bt,),
        in_specs=[
            pl.BlockSpec((H_IN, W_PAD, bt), lambda i: (0, 0, i)),        # images
            pl.BlockSpec(memory_space=pltpu.MemorySpace.SMEM),           # conv taps
            pl.BlockSpec(memory_space=pltpu.MemorySpace.SMEM),           # conv bias
            pl.BlockSpec((10, K_FC), lambda i: (0, 0)),                  # packed fc weight
            pl.BlockSpec((10, 1), lambda i: (0, 0)),                     # fc bias
        ],
        out_specs=pl.BlockSpec((10, bt), lambda i: (0, i)),
        scratch_shapes=[
            pltpu.VMEM((C_OUT * 32, bt), jnp.float32),                   # h-pooled rows
            pltpu.VMEM((K_FC, bt), jnp.float32),                         # flat pooled features
        ],
        compiler_params=pltpu.CompilerParams(
            dimension_semantics=("parallel",)),   # batch tiles shard across TCs
        # TODO(synk): with N <= 128 there is only one grid step, so one of v7x's two
        # TensorCores idles; a core_map split of the pooled-row loop would fix that.
    )(xt, cw, cb, fcw, fcb)

    return out_t[:, :n].T


def net_reference(x, conv_w, conv_b, fc_w, fc_b):
    """Plain-JAX reference matching the PyTorch forward exactly."""
    n = x.shape[0]
    conv = lax.conv_general_dilated(
        x, conv_w, window_strides=(1, 1), padding="VALID",
        dimension_numbers=("NCHW", "OIHW", "NCHW"),
        precision=lax.Precision.HIGHEST)
    conv = conv + conv_b[None, :, None, None]
    r = jnp.maximum(conv, 0.0)
    pooled = r.reshape(n, C_OUT, P, 2, P, 2).max(axis=(3, 5))
    pooled = jnp.maximum(pooled, 0.0)
    flat = pooled.reshape(n, -1)
    return jnp.dot(flat, fc_w.T, precision=lax.Precision.HIGHEST) + fc_b[None, :]


if __name__ == "__main__":
    key = jax.random.PRNGKey(0)
    kx, kw1, kb1, kw2, kb2 = jax.random.split(key, 5)

    # Deterministic synthetic parameters (shapes from Net.__init__; 32x32 input is
    # forced by the module since 6 * 15 * 15 == 1350 features feed fc1).
    x = jax.random.normal(kx, (2, 1, 32, 32), jnp.float32)               # batch = 2
    conv_w = jax.random.normal(kw1, (6, 1, 3, 3), jnp.float32) * 0.1
    conv_b = jax.random.normal(kb1, (6,), jnp.float32) * 0.1
    fc_w = jax.random.normal(kw2, (10, 1350), jnp.float32) * 0.02
    fc_b = jax.random.normal(kb2, (10,), jnp.float32) * 0.1

    packed = pack_params(conv_w, conv_b, fc_w, fc_b)
    out = net_forward(x, packed)
    out = jax.block_until_ready(out)
    assert out.shape == (2, 10)

    ref = net_reference(x, conv_w, conv_b, fc_w, fc_b)
    if not jnp.allclose(out, ref, atol=1e-4, rtol=1e-4):
        raise AssertionError("Pallas output does not match JAX reference")

    print("KERNEL_OK")
</pallas_src>

<mosaic_0001>
module attributes {stable_mosaic.version = 11 : i64} {
  func.func @net_kernel(%arg0: i32, %arg1: memref<32x40x128xf32, #tpu.memory_space<vmem>>, %arg2: memref<54xf32, #tpu.memory_space<smem>>, %arg3: memref<6xf32, #tpu.memory_space<smem>>, %arg4: memref<10x1440xf32, #tpu.memory_space<vmem>>, %arg5: memref<10x1xf32, #tpu.memory_space<vmem>>, %arg6: memref<10x128xf32, #tpu.memory_space<vmem>>, %arg7: memref<192x128xf32, #tpu.memory_space<vmem>>, %arg8: memref<1440x128xf32, #tpu.memory_space<vmem>>) attributes {dimension_semantics = [#tpu.dimension_semantics<parallel>], iteration_bounds = array<i64: 1>, scalar_prefetch = 0 : i64, scratch_operands = 2 : i64, tpu.core_type = #tpu.core_type<tc>, window_params = [{transform_indices = @transform_0, window_bounds = array<i64: 32, 40, 128>}, {transform_indices = @transform_1, window_bounds = array<i64: 54>}, {transform_indices = @transform_2, window_bounds = array<i64: 6>}, {pipeline_mode = #tpu.pipeline_mode<synchronous>, transform_indices = @transform_3, window_bounds = array<i64: 10, 1440>}, {pipeline_mode = #tpu.pipeline_mode<synchronous>, transform_indices = @transform_4, window_bounds = array<i64: 10, 1>}, {transform_indices = @transform_5, window_bounds = array<i64: 10, 128>}]} {
    %c0_i32 = arith.constant 0 : i32
    %c15_i32 = arith.constant 15 : i32
    %0 = arith.addi %c0_i32, %c15_i32 : i32
    %c1_i32 = arith.constant 1 : i32
    scf.for %arg9 = %c0_i32 to %0 step %c1_i32  : i32 {
      %c0_8 = arith.constant 0 : index
      %8 = memref.load %arg3[%c0_8] : memref<6xf32, #tpu.memory_space<smem>>
      %9 = vector.broadcast %8 : f32 to vector<32x128xf32>
      %c1 = arith.constant 1 : index
      %10 = memref.load %arg3[%c1] : memref<6xf32, #tpu.memory_space<smem>>
      %11 = vector.broadcast %10 : f32 to vector<32x128xf32>
      %c2 = arith.constant 2 : index
      %12 = memref.load %arg3[%c2] : memref<6xf32, #tpu.memory_space<smem>>
      %13 = vector.broadcast %12 : f32 to vector<32x128xf32>
      %c3 = arith.constant 3 : index
      %14 = memref.load %arg3[%c3] : memref<6xf32, #tpu.memory_space<smem>>
      %15 = vector.broadcast %14 : f32 to vector<32x128xf32>
      %c4 = arith.constant 4 : index
      %16 = memref.load %arg3[%c4] : memref<6xf32, #tpu.memory_space<smem>>
      %17 = vector.broadcast %16 : f32 to vector<32x128xf32>
      %c5 = arith.constant 5 : index
      %18 = memref.load %arg3[%c5] : memref<6xf32, #tpu.memory_space<smem>>
      %19 = vector.broadcast %18 : f32 to vector<32x128xf32>
      %c2_i32 = arith.constant 2 : i32
      %20 = arith.muli %c2_i32, %arg9 : i32
      %c0_i32_9 = arith.constant 0 : i32
      %21 = arith.addi %20, %c0_i32_9 : i32
      %c0_i32_10 = arith.constant 0 : i32
      %22 = arith.addi %21, %c0_i32_10 : i32
      %23 = arith.index_cast %22 : i32 to index
      %c0_11 = arith.constant 0 : index
      %c0_12 = arith.constant 0 : index
      %24 = vector.load %arg1[%23, %c0_11, %c0_12] : memref<32x40x128xf32, #tpu.memory_space<vmem>>, vector<1x40x128xf32>
      %25 = vector.shape_cast %24 : vector<1x40x128xf32> to vector<40x128xf32>
      %26 = vector.extract_strided_slice %25 {offsets = [0, 0], sizes = [32, 128], strides = [1, 1]} : vector<40x128xf32> to vector<32x128xf32>
      %c0_13 = arith.constant 0 : index
      %27 = memref.load %arg2[%c0_13] : memref<54xf32, #tpu.memory_space<smem>>
      %28 = vector.broadcast %27 : f32 to vector<32x128xf32>
      %29 = arith.mulf %28, %26 : vector<32x128xf32>
      %30 = arith.addf %9, %29 : vector<32x128xf32>
      %c9 = arith.constant 9 : index
      %31 = memref.load %arg2[%c9] : memref<54xf32, #tpu.memory_space<smem>>
      %32 = vector.broadcast %31 : f32 to vector<32x128xf32>
      %33 = arith.mulf %32, %26 : vector<32x128xf32>
      %34 = arith.addf %11, %33 : vector<32x128xf32>
      %c18 = arith.constant 18 : index
      %35 = memref.load %arg2[%c18] : memref<54xf32, #tpu.memory_space<smem>>
      %36 = vector.broadcast %35 : f32 to vector<32x128xf32>
      %37 = arith.mulf %36, %26 : vector<32x128xf32>
      %38 = arith.addf %13, %37 : vector<32x128xf32>
      %c27 = arith.constant 27 : index
      %39 = memref.load %arg2[%c27] : memref<54xf32, #tpu.memory_space<smem>>
      %40 = vector.broadcast %39 : f32 to vector<32x128xf32>
      %41 = arith.mulf %40, %26 : vector<32x128xf32>
      %42 = arith.addf %15, %41 : vector<32x128xf32>
      %c36 = arith.constant 36 : index
      %43 = memref.load %arg2[%c36] : memref<54xf32, #tpu.memory_space<smem>>
      %44 = vector.broadcast %43 : f32 to vector<32x128xf32>
      %45 = arith.mulf %44, %26 : vector<32x128xf32>
      %46 = arith.addf %17, %45 : vector<32x128xf32>
      %c45 = arith.constant 45 : index
      %47 = memref.load %arg2[%c45] : memref<54xf32, #tpu.memory_space<smem>>
      %48 = vector.broadcast %47 : f32 to vector<32x128xf32>
      %49 = arith.mulf %48, %26 : vector<32x128xf32>
      %50 = arith.addf %19, %49 : vector<32x128xf32>
      %51 = vector.extract_strided_slice %25 {offsets = [1, 0], sizes = [32, 128], strides = [1, 1]} : vector<40x128xf32> to vector<32x128xf32>
      %c1_14 = arith.constant 1 : index
      %52 = memref.load %arg2[%c1_14] : memref<54xf32, #tpu.memory_space<smem>>
      %53 = vector.broadcast %52 : f32 to vector<32x128xf32>
      %54 = arith.mulf %53, %51 : vector<32x128xf32>
      %55 = arith.addf %30, %54 : vector<32x128xf32>
      %c10 = arith.constant 10 : index
      %56 = memref.load %arg2[%c10] : memref<54xf32, #tpu.memory_space<smem>>
      %57 = vector.broadcast %56 : f32 to vector<32x128xf32>
      %58 = arith.mulf %57, %51 : vector<32x128xf32>
      %59 = arith.addf %34, %58 : vector<32x128xf32>
      %c19 = arith.constant 19 : index
      %60 = memref.load %arg2[%c19] : memref<54xf32, #tpu.memory_space<smem>>
      %61 = vector.broadcast %60 : f32 to vector<32x128xf32>
      %62 = arith.mulf %61, %51 : vector<32x128xf32>
      %63 = arith.addf %38, %62 : vector<32x128xf32>
      %c28 = arith.constant 28 : index
      %64 = memref.load %arg2[%c28] : memref<54xf32, #tpu.memory_space<smem>>
      %65 = vector.broadcast %64 : f32 to vector<32x128xf32>
      %66 = arith.mulf %65, %51 : vector<32x128xf32>
      %67 = arith.addf %42, %66 : vector<32x128xf32>
      %c37 = arith.constant 37 : index
      %68 = memref.load %arg2[%c37] : memref<54xf32, #tpu.memory_space<smem>>
      %69 = vector.broadcast %68 : f32 to vector<32x128xf32>
      %70 = arith.mulf %69, %51 : vector<32x128xf32>
      %71 = arith.addf %46, %70 : vector<32x128xf32>
      %c46 = arith.constant 46 : index
      %72 = memref.load %arg2[%c46] : memref<54xf32, #tpu.memory_space<smem>>
      %73 = vector.broadcast %72 : f32 to vector<32x128xf32>
      %74 = arith.mulf %73, %51 : vector<32x128xf32>
      %75 = arith.addf %50, %74 : vector<32x128xf32>
      %76 = vector.extract_strided_slice %25 {offsets = [2, 0], sizes = [32, 128], strides = [1, 1]} : vector<40x128xf32> to vector<32x128xf32>
      %c2_15 = arith.constant 2 : index
      %77 = memref.load %arg2[%c2_15] : memref<54xf32, #tpu.memory_space<smem>>
      %78 = vector.broadcast %77 : f32 to vector<32x128xf32>
      %79 = arith.mulf %78, %76 : vector<32x128xf32>
      %80 = arith.addf %55, %79 : vector<32x128xf32>
      %c11 = arith.constant 11 : index
      %81 = memref.load %arg2[%c11] : memref<54xf32, #tpu.memory_space<smem>>
      %82 = vector.broadcast %81 : f32 to vector<32x128xf32>
      %83 = arith.mulf %82, %76 : vector<32x128xf32>
      %84 = arith.addf %59, %83 : vector<32x128xf32>
      %c20 = arith.constant 20 : index
      %85 = memref.load %arg2[%c20] : memref<54xf32, #tpu.memory_space<smem>>
      %86 = vector.broadcast %85 : f32 to vector<32x128xf32>
      %87 = arith.mulf %86, %76 : vector<32x128xf32>
      %88 = arith.addf %63, %87 : vector<32x128xf32>
      %c29 = arith.constant 29 : index
      %89 = memref.load %arg2[%c29] : memref<54xf32, #tpu.memory_space<smem>>
      %90 = vector.broadcast %89 : f32 to vector<32x128xf32>
      %91 = arith.mulf %90, %76 : vector<32x128xf32>
      %92 = arith.addf %67, %91 : vector<32x128xf32>
      %c38 = arith.constant 38 : index
      %93 = memref.load %arg2[%c38] : memref<54xf32, #tpu.memory_space<smem>>
      %94 = vector.broadcast %93 : f32 to vector<32x128xf32>
      %95 = arith.mulf %94, %76 : vector<32x128xf32>
      %96 = arith.addf %71, %95 : vector<32x128xf32>
      %c47 = arith.constant 47 : index
      %97 = memref.load %arg2[%c47] : memref<54xf32, #tpu.memory_space<smem>>
      %98 = vector.broadcast %97 : f32 to vector<32x128xf32>
      %99 = arith.mulf %98, %76 : vector<32x128xf32>
      %100 = arith.addf %75, %99 : vector<32x128xf32>
      %c2_i32_16 = arith.constant 2 : i32
      %101 = arith.muli %c2_i32_16, %arg9 : i32
      %c0_i32_17 = arith.constant 0 : i32
      %102 = arith.addi %101, %c0_i32_17 : i32
      %c1_i32_18 = arith.constant 1 : i32
      %103 = arith.addi %102, %c1_i32_18 : i32
      %104 = arith.index_cast %103 : i32 to index
      %c0_19 = arith.constant 0 : index
      %c0_20 = arith.constant 0 : index
      %105 = vector.load %arg1[%104, %c0_19, %c0_20] : memref<32x40x128xf32, #tpu.memory_space<vmem>>, vector<1x40x128xf32>
      %106 = vector.shape_cast %105 : vector<1x40x128xf32> to vector<40x128xf32>
      %107 = vector.extract_strided_slice %106 {offsets = [0, 0], sizes = [32, 128], strides = [1, 1]} : vector<40x128xf32> to vector<32x128xf32>
      %c3_21 = arith.constant 3 : index
      %108 = memref.load %arg2[%c3_21] : memref<54xf32, #tpu.memory_space<smem>>
      %109 = vector.broadcast %108 : f32 to vector<32x128xf32>
      %110 = arith.mulf %109, %107 : vector<32x128xf32>
      %111 = arith.addf %80, %110 : vector<32x128xf32>
      %c12 = arith.constant 12 : index
      %112 = memref.load %arg2[%c12] : memref<54xf32, #tpu.memory_space<smem>>
      %113 = vector.broadcast %112 : f32 to vector<32x128xf32>
      %114 = arith.mulf %113, %107 : vector<32x128xf32>
      %115 = arith.addf %84, %114 : vector<32x128xf32>
      %c21 = arith.constant 21 : index
      %116 = memref.load %arg2[%c21] : memref<54xf32, #tpu.memory_space<smem>>
      %117 = vector.broadcast %116 : f32 to vector<32x128xf32>
      %118 = arith.mulf %117, %107 : vector<32x128xf32>
      %119 = arith.addf %88, %118 : vector<32x128xf32>
      %c30 = arith.constant 30 : index
      %120 = memref.load %arg2[%c30] : memref<54xf32, #tpu.memory_space<smem>>
      %121 = vector.broadcast %120 : f32 to vector<32x128xf32>
      %122 = arith.mulf %121, %107 : vector<32x128xf32>
      %123 = arith.addf %92, %122 : vector<32x128xf32>
      %c39 = arith.constant 39 : index
      %124 = memref.load %arg2[%c39] : memref<54xf32, #tpu.memory_space<smem>>
      %125 = vector.broadcast %124 : f32 to vector<32x128xf32>
      %126 = arith.mulf %125, %107 : vector<32x128xf32>
      %127 = arith.addf %96, %126 : vector<32x128xf32>
      %c48 = arith.constant 48 : index
      %128 = memref.load %arg2[%c48] : memref<54xf32, #tpu.memory_space<smem>>
      %129 = vector.broadcast %128 : f32 to vector<32x128xf32>
      %130 = arith.mulf %129, %107 : vector<32x128xf32>
      %131 = arith.addf %100, %130 : vector<32x128xf32>
      %132 = vector.extract_strided_slice %106 {offsets = [1, 0], sizes = [32, 128], strides = [1, 1]} : vector<40x128xf32> to vector<32x128xf32>
      %c4_22 = arith.constant 4 : index
      %133 = memref.load %arg2[%c4_22] : memref<54xf32, #tpu.memory_space<smem>>
      %134 = vector.broadcast %133 : f32 to vector<32x128xf32>
      %135 = arith.mulf %134, %132 : vector<32x128xf32>
      %136 = arith.addf %111, %135 : vector<32x128xf32>
      %c13 = arith.constant 13 : index
      %137 = memref.load %arg2[%c13] : memref<54xf32, #tpu.memory_space<smem>>
      %138 = vector.broadcast %137 : f32 to vector<32x128xf32>
      %139 = arith.mulf %138, %132 : vector<32x128xf32>
      %140 = arith.addf %115, %139 : vector<32x128xf32>
      %c22 = arith.constant 22 : index
      %141 = memref.load %arg2[%c22] : memref<54xf32, #tpu.memory_space<smem>>
      %142 = vector.broadcast %141 : f32 to vector<32x128xf32>
      %143 = arith.mulf %142, %132 : vector<32x128xf32>
      %144 = arith.addf %119, %143 : vector<32x128xf32>
      %c31 = arith.constant 31 : index
      %145 = memref.load %arg2[%c31] : memref<54xf32, #tpu.memory_space<smem>>
      %146 = vector.broadcast %145 : f32 to vector<32x128xf32>
      %147 = arith.mulf %146, %132 : vector<32x128xf32>
      %148 = arith.addf %123, %147 : vector<32x128xf32>
      %c40 = arith.constant 40 : index
      %149 = memref.load %arg2[%c40] : memref<54xf32, #tpu.memory_space<smem>>
      %150 = vector.broadcast %149 : f32 to vector<32x128xf32>
      %151 = arith.mulf %150, %132 : vector<32x128xf32>
      %152 = arith.addf %127, %151 : vector<32x128xf32>
      %c49 = arith.constant 49 : index
      %153 = memref.load %arg2[%c49] : memref<54xf32, #tpu.memory_space<smem>>
      %154 = vector.broadcast %153 : f32 to vector<32x128xf32>
      %155 = arith.mulf %154, %132 : vector<32x128xf32>
      %156 = arith.addf %131, %155 : vector<32x128xf32>
      %157 = vector.extract_strided_slice %106 {offsets = [2, 0], sizes = [32, 128], strides = [1, 1]} : vector<40x128xf32> to vector<32x128xf32>
      %c5_23 = arith.constant 5 : index
      %158 = memref.load %arg2[%c5_23] : memref<54xf32, #tpu.memory_space<smem>>
      %159 = vector.broadcast %158 : f32 to vector<32x128xf32>
      %160 = arith.mulf %159, %157 : vector<32x128xf32>
      %161 = arith.addf %136, %160 : vector<32x128xf32>
      %c14 = arith.constant 14 : index
      %162 = memref.load %arg2[%c14] : memref<54xf32, #tpu.memory_space<smem>>
      %163 = vector.broadcast %162 : f32 to vector<32x128xf32>
      %164 = arith.mulf %163, %157 : vector<32x128xf32>
      %165 = arith.addf %140, %164 : vector<32x128xf32>
      %c23 = arith.constant 23 : index
      %166 = memref.load %arg2[%c23] : memref<54xf32, #tpu.memory_space<smem>>
      %167 = vector.broadcast %166 : f32 to vector<32x128xf32>
      %168 = arith.mulf %167, %157 : vector<32x128xf32>
      %169 = arith.addf %144, %168 : vector<32x128xf32>
      %c32 = arith.constant 32 : index
      %170 = memref.load %arg2[%c32] : memref<54xf32, #tpu.memory_space<smem>>
      %171 = vector.broadcast %170 : f32 to vector<32x128xf32>
      %172 = arith.mulf %171, %157 : vector<32x128xf32>
      %173 = arith.addf %148, %172 : vector<32x128xf32>
      %c41 = arith.constant 41 : index
      %174 = memref.load %arg2[%c41] : memref<54xf32, #tpu.memory_space<smem>>
      %175 = vector.broadcast %174 : f32 to vector<32x128xf32>
      %176 = arith.mulf %175, %157 : vector<32x128xf32>
      %177 = arith.addf %152, %176 : vector<32x128xf32>
      %c50 = arith.constant 50 : index
      %178 = memref.load %arg2[%c50] : memref<54xf32, #tpu.memory_space<smem>>
      %179 = vector.broadcast %178 : f32 to vector<32x128xf32>
      %180 = arith.mulf %179, %157 : vector<32x128xf32>
      %181 = arith.addf %156, %180 : vector<32x128xf32>
      %c2_i32_24 = arith.constant 2 : i32
      %182 = arith.muli %c2_i32_24, %arg9 : i32
      %c0_i32_25 = arith.constant 0 : i32
      %183 = arith.addi %182, %c0_i32_25 : i32
      %c2_i32_26 = arith.constant 2 : i32
      %184 = arith.addi %183, %c2_i32_26 : i32
      %185 = arith.index_cast %184 : i32 to index
      %c0_27 = arith.constant 0 : index
      %c0_28 = arith.constant 0 : index
      %186 = vector.load %arg1[%185, %c0_27, %c0_28] : memref<32x40x128xf32, #tpu.memory_space<vmem>>, vector<1x40x128xf32>
      %187 = vector.shape_cast %186 : vector<1x40x128xf32> to vector<40x128xf32>
      %188 = vector.extract_strided_slice %187 {offsets = [0, 0], sizes = [32, 128], strides = [1, 1]} : vector<40x128xf32> to vector<32x128xf32>
      %c6 = arith.constant 6 : index
      %189 = memref.load %arg2[%c6] : memref<54xf32, #tpu.memory_space<smem>>
      %190 = vector.broadcast %189 : f32 to vector<32x128xf32>
      %191 = arith.mulf %190, %188 : vector<32x128xf32>
      %192 = arith.addf %161, %191 : vector<32x128xf32>
      %c15 = arith.constant 15 : index
      %193 = memref.load %arg2[%c15] : memref<54xf32, #tpu.memory_space<smem>>
      %194 = vector.broadcast %193 : f32 to vector<32x128xf32>
      %195 = arith.mulf %194, %188 : vector<32x128xf32>
      %196 = arith.addf %165, %195 : vector<32x128xf32>
      %c24 = arith.constant 24 : index
      %197 = memref.load %arg2[%c24] : memref<54xf32, #tpu.memory_space<smem>>
      %198 = vector.broadcast %197 : f32 to vector<32x128xf32>
      %199 = arith.mulf %198, %188 : vector<32x128xf32>
      %200 = arith.addf %169, %199 : vector<32x128xf32>
      %c33 = arith.constant 33 : index
      %201 = memref.load %arg2[%c33] : memref<54xf32, #tpu.memory_space<smem>>
      %202 = vector.broadcast %201 : f32 to vector<32x128xf32>
      %203 = arith.mulf %202, %188 : vector<32x128xf32>
      %204 = arith.addf %173, %203 : vector<32x128xf32>
      %c42 = arith.constant 42 : index
      %205 = memref.load %arg2[%c42] : memref<54xf32, #tpu.memory_space<smem>>
      %206 = vector.broadcast %205 : f32 to vector<32x128xf32>
      %207 = arith.mulf %206, %188 : vector<32x128xf32>
      %208 = arith.addf %177, %207 : vector<32x128xf32>
      %c51 = arith.constant 51 : index
      %209 = memref.load %arg2[%c51] : memref<54xf32, #tpu.memory_space<smem>>
      %210 = vector.broadcast %209 : f32 to vector<32x128xf32>
      %211 = arith.mulf %210, %188 : vector<32x128xf32>
      %212 = arith.addf %181, %211 : vector<32x128xf32>
      %213 = vector.extract_strided_slice %187 {offsets = [1, 0], sizes = [32, 128], strides = [1, 1]} : vector<40x128xf32> to vector<32x128xf32>
      %c7 = arith.constant 7 : index
      %214 = memref.load %arg2[%c7] : memref<54xf32, #tpu.memory_space<smem>>
      %215 = vector.broadcast %214 : f32 to vector<32x128xf32>
      %216 = arith.mulf %215, %213 : vector<32x128xf32>
      %217 = arith.addf %192, %216 : vector<32x128xf32>
      %c16 = arith.constant 16 : index
      %218 = memref.load %arg2[%c16] : memref<54xf32, #tpu.memory_space<smem>>
      %219 = vector.broadcast %218 : f32 to vector<32x128xf32>
      %220 = arith.mulf %219, %213 : vector<32x128xf32>
      %221 = arith.addf %196, %220 : vector<32x128xf32>
      %c25 = arith.constant 25 : index
      %222 = memref.load %arg2[%c25] : memref<54xf32, #tpu.memory_space<smem>>
      %223 = vector.broadcast %222 : f32 to vector<32x128xf32>
      %224 = arith.mulf %223, %213 : vector<32x128xf32>
      %225 = arith.addf %200, %224 : vector<32x128xf32>
      %c34 = arith.constant 34 : index
      %226 = memref.load %arg2[%c34] : memref<54xf32, #tpu.memory_space<smem>>
      %227 = vector.broadcast %226 : f32 to vector<32x128xf32>
      %228 = arith.mulf %227, %213 : vector<32x128xf32>
      %229 = arith.addf %204, %228 : vector<32x128xf32>
      %c43 = arith.constant 43 : index
      %230 = memref.load %arg2[%c43] : memref<54xf32, #tpu.memory_space<smem>>
      %231 = vector.broadcast %230 : f32 to vector<32x128xf32>
      %232 = arith.mulf %231, %213 : vector<32x128xf32>
      %233 = arith.addf %208, %232 : vector<32x128xf32>
      %c52 = arith.constant 52 : index
      %234 = memref.load %arg2[%c52] : memref<54xf32, #tpu.memory_space<smem>>
      %235 = vector.broadcast %234 : f32 to vector<32x128xf32>
      %236 = arith.mulf %235, %213 : vector<32x128xf32>
      %237 = arith.addf %212, %236 : vector<32x128xf32>
      %238 = vector.extract_strided_slice %187 {offsets = [2, 0], sizes = [32, 128], strides = [1, 1]} : vector<40x128xf32> to vector<32x128xf32>
      %c8 = arith.constant 8 : index
      %239 = memref.load %arg2[%c8] : memref<54xf32, #tpu.memory_space<smem>>
      %240 = vector.broadcast %239 : f32 to vector<32x128xf32>
      %241 = arith.mulf %240, %238 : vector<32x128xf32>
      %242 = arith.addf %217, %241 : vector<32x128xf32>
      %c17 = arith.constant 17 : index
      %243 = memref.load %arg2[%c17] : memref<54xf32, #tpu.memory_space<smem>>
      %244 = vector.broadcast %243 : f32 to vector<32x128xf32>
      %245 = arith.mulf %244, %238 : vector<32x128xf32>
      %246 = arith.addf %221, %245 : vector<32x128xf32>
      %c26 = arith.constant 26 : index
      %247 = memref.load %arg2[%c26] : memref<54xf32, #tpu.memory_space<smem>>
      %248 = vector.broadcast %247 : f32 to vector<32x128xf32>
      %249 = arith.mulf %248, %238 : vector<32x128xf32>
      %250 = arith.addf %225, %249 : vector<32x128xf32>
      %c35 = arith.constant 35 : index
      %251 = memref.load %arg2[%c35] : memref<54xf32, #tpu.memory_space<smem>>
      %252 = vector.broadcast %251 : f32 to vector<32x128xf32>
      %253 = arith.mulf %252, %238 : vector<32x128xf32>
      %254 = arith.addf %229, %253 : vector<32x128xf32>
      %c44 = arith.constant 44 : index
      %255 = memref.load %arg2[%c44] : memref<54xf32, #tpu.memory_space<smem>>
      %256 = vector.broadcast %255 : f32 to vector<32x128xf32>
      %257 = arith.mulf %256, %238 : vector<32x128xf32>
      %258 = arith.addf %233, %257 : vector<32x128xf32>
      %c53 = arith.constant 53 : index
      %259 = memref.load %arg2[%c53] : memref<54xf32, #tpu.memory_space<smem>>
      %260 = vector.broadcast %259 : f32 to vector<32x128xf32>
      %261 = arith.mulf %260, %238 : vector<32x128xf32>
      %262 = arith.addf %237, %261 : vector<32x128xf32>
      %cst_29 = arith.constant 0.000000e+00 : f32
      %263 = vector.broadcast %cst_29 : f32 to vector<32x128xf32>
      %264 = arith.maximumf %242, %263 : vector<32x128xf32>
      %cst_30 = arith.constant 0.000000e+00 : f32
      %265 = vector.broadcast %cst_30 : f32 to vector<32x128xf32>
      %266 = arith.maximumf %246, %265 : vector<32x128xf32>
      %cst_31 = arith.constant 0.000000e+00 : f32
      %267 = vector.broadcast %cst_31 : f32 to vector<32x128xf32>
      %268 = arith.maximumf %250, %267 : vector<32x128xf32>
      %cst_32 = arith.constant 0.000000e+00 : f32
      %269 = vector.broadcast %cst_32 : f32 to vector<32x128xf32>
      %270 = arith.maximumf %254, %269 : vector<32x128xf32>
      %cst_33 = arith.constant 0.000000e+00 : f32
      %271 = vector.broadcast %cst_33 : f32 to vector<32x128xf32>
      %272 = arith.maximumf %258, %271 : vector<32x128xf32>
      %cst_34 = arith.constant 0.000000e+00 : f32
      %273 = vector.broadcast %cst_34 : f32 to vector<32x128xf32>
      %274 = arith.maximumf %262, %273 : vector<32x128xf32>
      %c0_35 = arith.constant 0 : index
      %275 = memref.load %arg3[%c0_35] : memref<6xf32, #tpu.memory_space<smem>>
      %276 = vector.broadcast %275 : f32 to vector<32x128xf32>
      %c1_36 = arith.constant 1 : index
      %277 = memref.load %arg3[%c1_36] : memref<6xf32, #tpu.memory_space<smem>>
      %278 = vector.broadcast %277 : f32 to vector<32x128xf32>
      %c2_37 = arith.constant 2 : index
      %279 = memref.load %arg3[%c2_37] : memref<6xf32, #tpu.memory_space<smem>>
      %280 = vector.broadcast %279 : f32 to vector<32x128xf32>
      %c3_38 = arith.constant 3 : index
      %281 = memref.load %arg3[%c3_38] : memref<6xf32, #tpu.memory_space<smem>>
      %282 = vector.broadcast %281 : f32 to vector<32x128xf32>
      %c4_39 = arith.constant 4 : index
      %283 = memref.load %arg3[%c4_39] : memref<6xf32, #tpu.memory_space<smem>>
      %284 = vector.broadcast %283 : f32 to vector<32x128xf32>
      %c5_40 = arith.constant 5 : index
      %285 = memref.load %arg3[%c5_40] : memref<6xf32, #tpu.memory_space<smem>>
      %286 = vector.broadcast %285 : f32 to vector<32x128xf32>
      %c2_i32_41 = arith.constant 2 : i32
      %287 = arith.muli %c2_i32_41, %arg9 : i32
      %c1_i32_42 = arith.constant 1 : i32
      %288 = arith.addi %287, %c1_i32_42 : i32
      %c0_i32_43 = arith.constant 0 : i32
      %289 = arith.addi %288, %c0_i32_43 : i32
      %290 = arith.index_cast %289 : i32 to index
      %c0_44 = arith.constant 0 : index
      %c0_45 = arith.constant 0 : index
      %291 = vector.load %arg1[%290, %c0_44, %c0_45] : memref<32x40x128xf32, #tpu.memory_space<vmem>>, vector<1x40x128xf32>
      %292 = vector.shape_cast %291 : vector<1x40x128xf32> to vector<40x128xf32>
      %293 = vector.extract_strided_slice %292 {offsets = [0, 0], sizes = [32, 128], strides = [1, 1]} : vector<40x128xf32> to vector<32x128xf32>
      %c0_46 = arith.constant 0 : index
      %294 = memref.load %arg2[%c0_46] : memref<54xf32, #tpu.memory_space<smem>>
      %295 = vector.broadcast %294 : f32 to vector<32x128xf32>
      %296 = arith.mulf %295, %293 : vector<32x128xf32>
      %297 = arith.addf %276, %296 : vector<32x128xf32>
      %c9_47 = arith.constant 9 : index
      %298 = memref.load %arg2[%c9_47] : memref<54xf32, #tpu.memory_space<smem>>
      %299 = vector.broadcast %298 : f32 to vector<32x128xf32>
      %300 = arith.mulf %299, %293 : vector<32x128xf32>
      %301 = arith.addf %278, %300 : vector<32x128xf32>
      %c18_48 = arith.constant 18 : index
      %302 = memref.load %arg2[%c18_48] : memref<54xf32, #tpu.memory_space<smem>>
      %303 = vector.broadcast %302 : f32 to vector<32x128xf32>
      %304 = arith.mulf %303, %293 : vector<32x128xf32>
      %305 = arith.addf %280, %304 : vector<32x128xf32>
      %c27_49 = arith.constant 27 : index
      %306 = memref.load %arg2[%c27_49] : memref<54xf32, #tpu.memory_space<smem>>
      %307 = vector.broadcast %306 : f32 to vector<32x128xf32>
      %308 = arith.mulf %307, %293 : vector<32x128xf32>
      %309 = arith.addf %282, %308 : vector<32x128xf32>
      %c36_50 = arith.constant 36 : index
      %310 = memref.load %arg2[%c36_50] : memref<54xf32, #tpu.memory_space<smem>>
      %311 = vector.broadcast %310 : f32 to vector<32x128xf32>
      %312 = arith.mulf %311, %293 : vector<32x128xf32>
      %313 = arith.addf %284, %312 : vector<32x128xf32>
      %c45_51 = arith.constant 45 : index
      %314 = memref.load %arg2[%c45_51] : memref<54xf32, #tpu.memory_space<smem>>
      %315 = vector.broadcast %314 : f32 to vector<32x128xf32>
      %316 = arith.mulf %315, %293 : vector<32x128xf32>
      %317 = arith.addf %286, %316 : vector<32x128xf32>
      %318 = vector.extract_strided_slice %292 {offsets = [1, 0], sizes = [32, 128], strides = [1, 1]} : vector<40x128xf32> to vector<32x128xf32>
      %c1_52 = arith.constant 1 : index
      %319 = memref.load %arg2[%c1_52] : memref<54xf32, #tpu.memory_space<smem>>
      %320 = vector.broadcast %319 : f32 to vector<32x128xf32>
      %321 = arith.mulf %320, %318 : vector<32x128xf32>
      %322 = arith.addf %297, %321 : vector<32x128xf32>
      %c10_53 = arith.constant 10 : index
      %323 = memref.load %arg2[%c10_53] : memref<54xf32, #tpu.memory_space<smem>>
      %324 = vector.broadcast %323 : f32 to vector<32x128xf32>
      %325 = arith.mulf %324, %318 : vector<32x128xf32>
      %326 = arith.addf %301, %325 : vector<32x128xf32>
      %c19_54 = arith.constant 19 : index
      %327 = memref.load %arg2[%c19_54] : memref<54xf32, #tpu.memory_space<smem>>
      %328 = vector.broadcast %327 : f32 to vector<32x128xf32>
      %329 = arith.mulf %328, %318 : vector<32x128xf32>
      %330 = arith.addf %305, %329 : vector<32x128xf32>
      %c28_55 = arith.constant 28 : index
      %331 = memref.load %arg2[%c28_55] : memref<54xf32, #tpu.memory_space<smem>>
      %332 = vector.broadcast %331 : f32 to vector<32x128xf32>
      %333 = arith.mulf %332, %318 : vector<32x128xf32>
      %334 = arith.addf %309, %333 : vector<32x128xf32>
      %c37_56 = arith.constant 37 : index
      %335 = memref.load %arg2[%c37_56] : memref<54xf32, #tpu.memory_space<smem>>
      %336 = vector.broadcast %335 : f32 to vector<32x128xf32>
      %337 = arith.mulf %336, %318 : vector<32x128xf32>
      %338 = arith.addf %313, %337 : vector<32x128xf32>
      %c46_57 = arith.constant 46 : index
      %339 = memref.load %arg2[%c46_57] : memref<54xf32, #tpu.memory_space<smem>>
      %340 = vector.broadcast %339 : f32 to vector<32x128xf32>
      %341 = arith.mulf %340, %318 : vector<32x128xf32>
      %342 = arith.addf %317, %341 : vector<32x128xf32>
      %343 = vector.extract_strided_slice %292 {offsets = [2, 0], sizes = [32, 128], strides = [1, 1]} : vector<40x128xf32> to vector<32x128xf32>
      %c2_58 = arith.constant 2 : index
      %344 = memref.load %arg2[%c2_58] : memref<54xf32, #tpu.memory_space<smem>>
      %345 = vector.broadcast %344 : f32 to vector<32x128xf32>
      %346 = arith.mulf %345, %343 : vector<32x128xf32>
      %347 = arith.addf %322, %346 : vector<32x128xf32>
      %c11_59 = arith.constant 11 : index
      %348 = memref.load %arg2[%c11_59] : memref<54xf32, #tpu.memory_space<smem>>
      %349 = vector.broadcast %348 : f32 to vector<32x128xf32>
      %350 = arith.mulf %349, %343 : vector<32x128xf32>
      %351 = arith.addf %326, %350 : vector<32x128xf32>
      %c20_60 = arith.constant 20 : index
      %352 = memref.load %arg2[%c20_60] : memref<54xf32, #tpu.memory_space<smem>>
      %353 = vector.broadcast %352 : f32 to vector<32x128xf32>
      %354 = arith.mulf %353, %343 : vector<32x128xf32>
      %355 = arith.addf %330, %354 : vector<32x128xf32>
      %c29_61 = arith.constant 29 : index
      %356 = memref.load %arg2[%c29_61] : memref<54xf32, #tpu.memory_space<smem>>
      %357 = vector.broadcast %356 : f32 to vector<32x128xf32>
      %358 = arith.mulf %357, %343 : vector<32x128xf32>
      %359 = arith.addf %334, %358 : vector<32x128xf32>
      %c38_62 = arith.constant 38 : index
      %360 = memref.load %arg2[%c38_62] : memref<54xf32, #tpu.memory_space<smem>>
      %361 = vector.broadcast %360 : f32 to vector<32x128xf32>
      %362 = arith.mulf %361, %343 : vector<32x128xf32>
      %363 = arith.addf %338, %362 : vector<32x128xf32>
      %c47_63 = arith.constant 47 : index
      %364 = memref.load %arg2[%c47_63] : memref<54xf32, #tpu.memory_space<smem>>
      %365 = vector.broadcast %364 : f32 to vector<32x128xf32>
      %366 = arith.mulf %365, %343 : vector<32x128xf32>
      %367 = arith.addf %342, %366 : vector<32x128xf32>
      %c2_i32_64 = arith.constant 2 : i32
      %368 = arith.muli %c2_i32_64, %arg9 : i32
      %c1_i32_65 = arith.constant 1 : i32
      %369 = arith.addi %368, %c1_i32_65 : i32
      %c1_i32_66 = arith.constant 1 : i32
      %370 = arith.addi %369, %c1_i32_66 : i32
      %371 = arith.index_cast %370 : i32 to index
      %c0_67 = arith.constant 0 : index
      %c0_68 = arith.constant 0 : index
      %372 = vector.load %arg1[%371, %c0_67, %c0_68] : memref<32x40x128xf32, #tpu.memory_space<vmem>>, vector<1x40x128xf32>
      %373 = vector.shape_cast %372 : vector<1x40x128xf32> to vector<40x128xf32>
      %374 = vector.extract_strided_slice %373 {offsets = [0, 0], sizes = [32, 128], strides = [1, 1]} : vector<40x128xf32> to vector<32x128xf32>
      %c3_69 = arith.constant 3 : index
      %375 = memref.load %arg2[%c3_69] : memref<54xf32, #tpu.memory_space<smem>>
      %376 = vector.broadcast %375 : f32 to vector<32x128xf32>
      %377 = arith.mulf %376, %374 : vector<32x128xf32>
      %378 = arith.addf %347, %377 : vector<32x128xf32>
      %c12_70 = arith.constant 12 : index
      %379 = memref.load %arg2[%c12_70] : memref<54xf32, #tpu.memory_space<smem>>
      %380 = vector.broadcast %379 : f32 to vector<32x128xf32>
      %381 = arith.mulf %380, %374 : vector<32x128xf32>
      %382 = arith.addf %351, %381 : vector<32x128xf32>
      %c21_71 = arith.constant 21 : index
      %383 = memref.load %arg2[%c21_71] : memref<54xf32, #tpu.memory_space<smem>>
      %384 = vector.broadcast %383 : f32 to vector<32x128xf32>
      %385 = arith.mulf %384, %374 : vector<32x128xf32>
      %386 = arith.addf %355, %385 : vector<32x128xf32>
      %c30_72 = arith.constant 30 : index
      %387 = memref.load %arg2[%c30_72] : memref<54xf32, #tpu.memory_space<smem>>
      %388 = vector.broadcast %387 : f32 to vector<32x128xf32>
      %389 = arith.mulf %388, %374 : vector<32x128xf32>
      %390 = arith.addf %359, %389 : vector<32x128xf32>
      %c39_73 = arith.constant 39 : index
      %391 = memref.load %arg2[%c39_73] : memref<54xf32, #tpu.memory_space<smem>>
      %392 = vector.broadcast %391 : f32 to vector<32x128xf32>
      %393 = arith.mulf %392, %374 : vector<32x128xf32>
      %394 = arith.addf %363, %393 : vector<32x128xf32>
      %c48_74 = arith.constant 48 : index
      %395 = memref.load %arg2[%c48_74] : memref<54xf32, #tpu.memory_space<smem>>
      %396 = vector.broadcast %395 : f32 to vector<32x128xf32>
      %397 = arith.mulf %396, %374 : vector<32x128xf32>
      %398 = arith.addf %367, %397 : vector<32x128xf32>
      %399 = vector.extract_strided_slice %373 {offsets = [1, 0], sizes = [32, 128], strides = [1, 1]} : vector<40x128xf32> to vector<32x128xf32>
      %c4_75 = arith.constant 4 : index
      %400 = memref.load %arg2[%c4_75] : memref<54xf32, #tpu.memory_space<smem>>
      %401 = vector.broadcast %400 : f32 to vector<32x128xf32>
      %402 = arith.mulf %401, %399 : vector<32x128xf32>
      %403 = arith.addf %378, %402 : vector<32x128xf32>
      %c13_76 = arith.constant 13 : index
      %404 = memref.load %arg2[%c13_76] : memref<54xf32, #tpu.memory_space<smem>>
      %405 = vector.broadcast %404 : f32 to vector<32x128xf32>
      %406 = arith.mulf %405, %399 : vector<32x128xf32>
      %407 = arith.addf %382, %406 : vector<32x128xf32>
      %c22_77 = arith.constant 22 : index
      %408 = memref.load %arg2[%c22_77] : memref<54xf32, #tpu.memory_space<smem>>
      %409 = vector.broadcast %408 : f32 to vector<32x128xf32>
      %410 = arith.mulf %409, %399 : vector<32x128xf32>
      %411 = arith.addf %386, %410 : vector<32x128xf32>
      %c31_78 = arith.constant 31 : index
      %412 = memref.load %arg2[%c31_78] : memref<54xf32, #tpu.memory_space<smem>>
      %413 = vector.broadcast %412 : f32 to vector<32x128xf32>
      %414 = arith.mulf %413, %399 : vector<32x128xf32>
      %415 = arith.addf %390, %414 : vector<32x128xf32>
      %c40_79 = arith.constant 40 : index
      %416 = memref.load %arg2[%c40_79] : memref<54xf32, #tpu.memory_space<smem>>
      %417 = vector.broadcast %416 : f32 to vector<32x128xf32>
      %418 = arith.mulf %417, %399 : vector<32x128xf32>
      %419 = arith.addf %394, %418 : vector<32x128xf32>
      %c49_80 = arith.constant 49 : index
      %420 = memref.load %arg2[%c49_80] : memref<54xf32, #tpu.memory_space<smem>>
      %421 = vector.broadcast %420 : f32 to vector<32x128xf32>
      %422 = arith.mulf %421, %399 : vector<32x128xf32>
      %423 = arith.addf %398, %422 : vector<32x128xf32>
      %424 = vector.extract_strided_slice %373 {offsets = [2, 0], sizes = [32, 128], strides = [1, 1]} : vector<40x128xf32> to vector<32x128xf32>
      %c5_81 = arith.constant 5 : index
      %425 = memref.load %arg2[%c5_81] : memref<54xf32, #tpu.memory_space<smem>>
      %426 = vector.broadcast %425 : f32 to vector<32x128xf32>
      %427 = arith.mulf %426, %424 : vector<32x128xf32>
      %428 = arith.addf %403, %427 : vector<32x128xf32>
      %c14_82 = arith.constant 14 : index
      %429 = memref.load %arg2[%c14_82] : memref<54xf32, #tpu.memory_space<smem>>
      %430 = vector.broadcast %429 : f32 to vector<32x128xf32>
      %431 = arith.mulf %430, %424 : vector<32x128xf32>
      %432 = arith.addf %407, %431 : vector<32x128xf32>
      %c23_83 = arith.constant 23 : index
      %433 = memref.load %arg2[%c23_83] : memref<54xf32, #tpu.memory_space<smem>>
      %434 = vector.broadcast %433 : f32 to vector<32x128xf32>
      %435 = arith.mulf %434, %424 : vector<32x128xf32>
      %436 = arith.addf %411, %435 : vector<32x128xf32>
      %c32_84 = arith.constant 32 : index
      %437 = memref.load %arg2[%c32_84] : memref<54xf32, #tpu.memory_space<smem>>
      %438 = vector.broadcast %437 : f32 to vector<32x128xf32>
      %439 = arith.mulf %438, %424 : vector<32x128xf32>
      %440 = arith.addf %415, %439 : vector<32x128xf32>
      %c41_85 = arith.constant 41 : index
      %441 = memref.load %arg2[%c41_85] : memref<54xf32, #tpu.memory_space<smem>>
      %442 = vector.broadcast %441 : f32 to vector<32x128xf32>
      %443 = arith.mulf %442, %424 : vector<32x128xf32>
      %444 = arith.addf %419, %443 : vector<32x128xf32>
      %c50_86 = arith.constant 50 : index
      %445 = memref.load %arg2[%c50_86] : memref<54xf32, #tpu.memory_space<smem>>
      %446 = vector.broadcast %445 : f32 to vector<32x128xf32>
      %447 = arith.mulf %446, %424 : vector<32x128xf32>
      %448 = arith.addf %423, %447 : vector<32x128xf32>
      %c2_i32_87 = arith.constant 2 : i32
      %449 = arith.muli %c2_i32_87, %arg9 : i32
      %c1_i32_88 = arith.constant 1 : i32
      %450 = arith.addi %449, %c1_i32_88 : i32
      %c2_i32_89 = arith.constant 2 : i32
      %451 = arith.addi %450, %c2_i32_89 : i32
      %452 = arith.index_cast %451 : i32 to index
      %c0_90 = arith.constant 0 : index
      %c0_91 = arith.constant 0 : index
      %453 = vector.load %arg1[%452, %c0_90, %c0_91] : memref<32x40x128xf32, #tpu.memory_space<vmem>>, vector<1x40x128xf32>
      %454 = vector.shape_cast %453 : vector<1x40x128xf32> to vector<40x128xf32>
      %455 = vector.extract_strided_slice %454 {offsets = [0, 0], sizes = [32, 128], strides = [1, 1]} : vector<40x128xf32> to vector<32x128xf32>
      %c6_92 = arith.constant 6 : index
      %456 = memref.load %arg2[%c6_92] : memref<54xf32, #tpu.memory_space<smem>>
      %457 = vector.broadcast %456 : f32 to vector<32x128xf32>
      %458 = arith.mulf %457, %455 : vector<32x128xf32>
      %459 = arith.addf %428, %458 : vector<32x128xf32>
      %c15_93 = arith.constant 15 : index
      %460 = memref.load %arg2[%c15_93] : memref<54xf32, #tpu.memory_space<smem>>
      %461 = vector.broadcast %460 : f32 to vector<32x128xf32>
      %462 = arith.mulf %461, %455 : vector<32x128xf32>
      %463 = arith.addf %432, %462 : vector<32x128xf32>
      %c24_94 = arith.constant 24 : index
      %464 = memref.load %arg2[%c24_94] : memref<54xf32, #tpu.memory_space<smem>>
      %465 = vector.broadcast %464 : f32 to vector<32x128xf32>
      %466 = arith.mulf %465, %455 : vector<32x128xf32>
      %467 = arith.addf %436, %466 : vector<32x128xf32>
      %c33_95 = arith.constant 33 : index
      %468 = memref.load %arg2[%c33_95] : memref<54xf32, #tpu.memory_space<smem>>
      %469 = vector.broadcast %468 : f32 to vector<32x128xf32>
      %470 = arith.mulf %469, %455 : vector<32x128xf32>
      %471 = arith.addf %440, %470 : vector<32x128xf32>
      %c42_96 = arith.constant 42 : index
      %472 = memref.load %arg2[%c42_96] : memref<54xf32, #tpu.memory_space<smem>>
      %473 = vector.broadcast %472 : f32 to vector<32x128xf32>
      %474 = arith.mulf %473, %455 : vector<32x128xf32>
      %475 = arith.addf %444, %474 : vector<32x128xf32>
      %c51_97 = arith.constant 51 : index
      %476 = memref.load %arg2[%c51_97] : memref<54xf32, #tpu.memory_space<smem>>
      %477 = vector.broadcast %476 : f32 to vector<32x128xf32>
      %478 = arith.mulf %477, %455 : vector<32x128xf32>
      %479 = arith.addf %448, %478 : vector<32x128xf32>
      %480 = vector.extract_strided_slice %454 {offsets = [1, 0], sizes = [32, 128], strides = [1, 1]} : vector<40x128xf32> to vector<32x128xf32>
      %c7_98 = arith.constant 7 : index
      %481 = memref.load %arg2[%c7_98] : memref<54xf32, #tpu.memory_space<smem>>
      %482 = vector.broadcast %481 : f32 to vector<32x128xf32>
      %483 = arith.mulf %482, %480 : vector<32x128xf32>
      %484 = arith.addf %459, %483 : vector<32x128xf32>
      %c16_99 = arith.constant 16 : index
      %485 = memref.load %arg2[%c16_99] : memref<54xf32, #tpu.memory_space<smem>>
      %486 = vector.broadcast %485 : f32 to vector<32x128xf32>
      %487 = arith.mulf %486, %480 : vector<32x128xf32>
      %488 = arith.addf %463, %487 : vector<32x128xf32>
      %c25_100 = arith.constant 25 : index
      %489 = memref.load %arg2[%c25_100] : memref<54xf32, #tpu.memory_space<smem>>
      %490 = vector.broadcast %489 : f32 to vector<32x128xf32>
      %491 = arith.mulf %490, %480 : vector<32x128xf32>
      %492 = arith.addf %467, %491 : vector<32x128xf32>
      %c34_101 = arith.constant 34 : index
      %493 = memref.load %arg2[%c34_101] : memref<54xf32, #tpu.memory_space<smem>>
      %494 = vector.broadcast %493 : f32 to vector<32x128xf32>
      %495 = arith.mulf %494, %480 : vector<32x128xf32>
      %496 = arith.addf %471, %495 : vector<32x128xf32>
      %c43_102 = arith.constant 43 : index
      %497 = memref.load %arg2[%c43_102] : memref<54xf32, #tpu.memory_space<smem>>
      %498 = vector.broadcast %497 : f32 to vector<32x128xf32>
      %499 = arith.mulf %498, %480 : vector<32x128xf32>
      %500 = arith.addf %475, %499 : vector<32x128xf32>
      %c52_103 = arith.constant 52 : index
      %501 = memref.load %arg2[%c52_103] : memref<54xf32, #tpu.memory_space<smem>>
      %502 = vector.broadcast %501 : f32 to vector<32x128xf32>
      %503 = arith.mulf %502, %480 : vector<32x128xf32>
      %504 = arith.addf %479, %503 : vector<32x128xf32>
      %505 = vector.extract_strided_slice %454 {offsets = [2, 0], sizes = [32, 128], strides = [1, 1]} : vector<40x128xf32> to vector<32x128xf32>
      %c8_104 = arith.constant 8 : index
      %506 = memref.load %arg2[%c8_104] : memref<54xf32, #tpu.memory_space<smem>>
      %507 = vector.broadcast %506 : f32 to vector<32x128xf32>
      %508 = arith.mulf %507, %505 : vector<32x128xf32>
      %509 = arith.addf %484, %508 : vector<32x128xf32>
      %c17_105 = arith.constant 17 : index
      %510 = memref.load %arg2[%c17_105] : memref<54xf32, #tpu.memory_space<smem>>
      %511 = vector.broadcast %510 : f32 to vector<32x128xf32>
      %512 = arith.mulf %511, %505 : vector<32x128xf32>
      %513 = arith.addf %488, %512 : vector<32x128xf32>
      %c26_106 = arith.constant 26 : index
      %514 = memref.load %arg2[%c26_106] : memref<54xf32, #tpu.memory_space<smem>>
      %515 = vector.broadcast %514 : f32 to vector<32x128xf32>
      %516 = arith.mulf %515, %505 : vector<32x128xf32>
      %517 = arith.addf %492, %516 : vector<32x128xf32>
      %c35_107 = arith.constant 35 : index
      %518 = memref.load %arg2[%c35_107] : memref<54xf32, #tpu.memory_space<smem>>
      %519 = vector.broadcast %518 : f32 to vector<32x128xf32>
      %520 = arith.mulf %519, %505 : vector<32x128xf32>
      %521 = arith.addf %496, %520 : vector<32x128xf32>
      %c44_108 = arith.constant 44 : index
      %522 = memref.load %arg2[%c44_108] : memref<54xf32, #tpu.memory_space<smem>>
      %523 = vector.broadcast %522 : f32 to vector<32x128xf32>
      %524 = arith.mulf %523, %505 : vector<32x128xf32>
      %525 = arith.addf %500, %524 : vector<32x128xf32>
      %c53_109 = arith.constant 53 : index
      %526 = memref.load %arg2[%c53_109] : memref<54xf32, #tpu.memory_space<smem>>
      %527 = vector.broadcast %526 : f32 to vector<32x128xf32>
      %528 = arith.mulf %527, %505 : vector<32x128xf32>
      %529 = arith.addf %504, %528 : vector<32x128xf32>
      %cst_110 = arith.constant 0.000000e+00 : f32
      %530 = vector.broadcast %cst_110 : f32 to vector<32x128xf32>
      %531 = arith.maximumf %509, %530 : vector<32x128xf32>
      %cst_111 = arith.constant 0.000000e+00 : f32
      %532 = vector.broadcast %cst_111 : f32 to vector<32x128xf32>
      %533 = arith.maximumf %513, %532 : vector<32x128xf32>
      %cst_112 = arith.constant 0.000000e+00 : f32
      %534 = vector.broadcast %cst_112 : f32 to vector<32x128xf32>
      %535 = arith.maximumf %517, %534 : vector<32x128xf32>
      %cst_113 = arith.constant 0.000000e+00 : f32
      %536 = vector.broadcast %cst_113 : f32 to vector<32x128xf32>
      %537 = arith.maximumf %521, %536 : vector<32x128xf32>
      %cst_114 = arith.constant 0.000000e+00 : f32
      %538 = vector.broadcast %cst_114 : f32 to vector<32x128xf32>
      %539 = arith.maximumf %525, %538 : vector<32x128xf32>
      %cst_115 = arith.constant 0.000000e+00 : f32
      %540 = vector.broadcast %cst_115 : f32 to vector<32x128xf32>
      %541 = arith.maximumf %529, %540 : vector<32x128xf32>
      %542 = arith.maximumf %264, %531 : vector<32x128xf32>
      %c0_116 = arith.constant 0 : index
      %c0_117 = arith.constant 0 : index
      %543 = vector.load %arg7[%c0_116, %c0_117] : memref<192x128xf32, #tpu.memory_space<vmem>>, vector<32x128xf32>
      tpu.vector_store %arg7[%c0_116, %c0_117], %542 {strides = array<i32>} : memref<192x128xf32, #tpu.memory_space<vmem>>, vector<32x128xf32>,
      %544 = arith.maximumf %266, %533 : vector<32x128xf32>
      %c32_118 = arith.constant 32 : index
      %c0_119 = arith.constant 0 : index
      %545 = vector.load %arg7[%c32_118, %c0_119] : memref<192x128xf32, #tpu.memory_space<vmem>>, vector<32x128xf32>
      tpu.vector_store %arg7[%c32_118, %c0_119], %544 {strides = array<i32>} : memref<192x128xf32, #tpu.memory_space<vmem>>, vector<32x128xf32>,
      %546 = arith.maximumf %268, %535 : vector<32x128xf32>
      %c64 = arith.constant 64 : index
      %c0_120 = arith.constant 0 : index
      %547 = vector.load %arg7[%c64, %c0_120] : memref<192x128xf32, #tpu.memory_space<vmem>>, vector<32x128xf32>
      tpu.vector_store %arg7[%c64, %c0_120], %546 {strides = array<i32>} : memref<192x128xf32, #tpu.memory_space<vmem>>, vector<32x128xf32>,
      %548 = arith.maximumf %270, %537 : vector<32x128xf32>
      %c96 = arith.constant 96 : index
      %c0_121 = arith.constant 0 : index
      %549 = vector.load %arg7[%c96, %c0_121] : memref<192x128xf32, #tpu.memory_space<vmem>>, vector<32x128xf32>
      tpu.vector_store %arg7[%c96, %c0_121], %548 {strides = array<i32>} : memref<192x128xf32, #tpu.memory_space<vmem>>, vector<32x128xf32>,
      %550 = arith.maximumf %272, %539 : vector<32x128xf32>
      %c128 = arith.constant 128 : index
      %c0_122 = arith.constant 0 : index
      %551 = vector.load %arg7[%c128, %c0_122] : memref<192x128xf32, #tpu.memory_space<vmem>>, vector<32x128xf32>
      tpu.vector_store %arg7[%c128, %c0_122], %550 {strides = array<i32>} : memref<192x128xf32, #tpu.memory_space<vmem>>, vector<32x128xf32>,
      %552 = arith.maximumf %274, %541 : vector<32x128xf32>
      %c160 = arith.constant 160 : index
      %c0_123 = arith.constant 0 : index
      %553 = vector.load %arg7[%c160, %c0_123] : memref<192x128xf32, #tpu.memory_space<vmem>>, vector<32x128xf32>
      tpu.vector_store %arg7[%c160, %c0_123], %552 {strides = array<i32>} : memref<192x128xf32, #tpu.memory_space<vmem>>, vector<32x128xf32>,
      %c0_124 = arith.constant 0 : index
      %c0_125 = arith.constant 0 : index
      %554 = tpu.strided_load %arg7[%c0_124, %c0_125] {strides = array<i32: 2, 1>} : memref<192x128xf32, #tpu.memory_space<vmem>>, vector<16x128xf32>
      %c1_126 = arith.constant 1 : index
      %c0_127 = arith.constant 0 : index
      %555 = tpu.strided_load %arg7[%c1_126, %c0_127] {strides = array<i32: 2, 1>} : memref<192x128xf32, #tpu.memory_space<vmem>>, vector<16x128xf32>
      %556 = arith.maximumf %554, %555 : vector<16x128xf32>
      %c0_i32_128 = arith.constant 0 : i32
      %557 = arith.addi %c0_i32_128, %arg9 : i32
      %c16_i32 = arith.constant 16 : i32
      %558 = arith.muli %557, %c16_i32 : i32
      %559 = tpu.assume_multiple %558, 16 : i32
      %560 = arith.index_cast %559 : i32 to index
      %c0_129 = arith.constant 0 : index
      %561 = vector.load %arg8[%560, %c0_129] : memref<1440x128xf32, #tpu.memory_space<vmem>>, vector<16x128xf32>
      tpu.vector_store %arg8[%560, %c0_129], %556 {strides = array<i32>} : memref<1440x128xf32, #tpu.memory_space<vmem>>, vector<16x128xf32>,
      %c32_130 = arith.constant 32 : index
      %c0_131 = arith.constant 0 : index
      %562 = tpu.strided_load %arg7[%c32_130, %c0_131] {strides = array<i32: 2, 1>} : memref<192x128xf32, #tpu.memory_space<vmem>>, vector<16x128xf32>
      %c33_132 = arith.constant 33 : index
      %c0_133 = arith.constant 0 : index
      %563 = tpu.strided_load %arg7[%c33_132, %c0_133] {strides = array<i32: 2, 1>} : memref<192x128xf32, #tpu.memory_space<vmem>>, vector<16x128xf32>
      %564 = arith.maximumf %562, %563 : vector<16x128xf32>
      %c15_i32_134 = arith.constant 15 : i32
      %565 = arith.addi %c15_i32_134, %arg9 : i32
      %c16_i32_135 = arith.constant 16 : i32
      %566 = arith.muli %565, %c16_i32_135 : i32
      %567 = tpu.assume_multiple %566, 16 : i32
      %568 = arith.index_cast %567 : i32 to index
      %c0_136 = arith.constant 0 : index
      %569 = vector.load %arg8[%568, %c0_136] : memref<1440x128xf32, #tpu.memory_space<vmem>>, vector<16x128xf32>
      tpu.vector_store %arg8[%568, %c0_136], %564 {strides = array<i32>} : memref<1440x128xf32, #tpu.memory_space<vmem>>, vector<16x128xf32>,
      %c64_137 = arith.constant 64 : index
      %c0_138 = arith.constant 0 : index
      %570 = tpu.strided_load %arg7[%c64_137, %c0_138] {strides = array<i32: 2, 1>} : memref<192x128xf32, #tpu.memory_space<vmem>>, vector<16x128xf32>
      %c65 = arith.constant 65 : index
      %c0_139 = arith.constant 0 : index
      %571 = tpu.strided_load %arg7[%c65, %c0_139] {strides = array<i32: 2, 1>} : memref<192x128xf32, #tpu.memory_space<vmem>>, vector<16x128xf32>
      %572 = arith.maximumf %570, %571 : vector<16x128xf32>
      %c30_i32 = arith.constant 30 : i32
      %573 = arith.addi %c30_i32, %arg9 : i32
      %c16_i32_140 = arith.constant 16 : i32
      %574 = arith.muli %573, %c16_i32_140 : i32
      %575 = tpu.assume_multiple %574, 16 : i32
      %576 = arith.index_cast %575 : i32 to index
      %c0_141 = arith.constant 0 : index
      %577 = vector.load %arg8[%576, %c0_141] : memref<1440x128xf32, #tpu.memory_space<vmem>>, vector<16x128xf32>
      tpu.vector_store %arg8[%576, %c0_141], %572 {strides = array<i32>} : memref<1440x128xf32, #tpu.memory_space<vmem>>, vector<16x128xf32>,
      %c96_142 = arith.constant 96 : index
      %c0_143 = arith.constant 0 : index
      %578 = tpu.strided_load %arg7[%c96_142, %c0_143] {strides = array<i32: 2, 1>} : memref<192x128xf32, #tpu.memory_space<vmem>>, vector<16x128xf32>
      %c97 = arith.constant 97 : index
      %c0_144 = arith.constant 0 : index
      %579 = tpu.strided_load %arg7[%c97, %c0_144] {strides = array<i32: 2, 1>} : memref<192x128xf32, #tpu.memory_space<vmem>>, vector<16x128xf32>
      %580 = arith.maximumf %578, %579 : vector<16x128xf32>
      %c45_i32 = arith.constant 45 : i32
      %581 = arith.addi %c45_i32, %arg9 : i32
      %c16_i32_145 = arith.constant 16 : i32
      %582 = arith.muli %581, %c16_i32_145 : i32
      %583 = tpu.assume_multiple %582, 16 : i32
      %584 = arith.index_cast %583 : i32 to index
      %c0_146 = arith.constant 0 : index
      %585 = vector.load %arg8[%584, %c0_146] : memref<1440x128xf32, #tpu.memory_space<vmem>>, vector<16x128xf32>
      tpu.vector_store %arg8[%584, %c0_146], %580 {strides = array<i32>} : memref<1440x128xf32, #tpu.memory_space<vmem>>, vector<16x128xf32>,
      %c128_147 = arith.constant 128 : index
      %c0_148 = arith.constant 0 : index
      %586 = tpu.strided_load %arg7[%c128_147, %c0_148] {strides = array<i32: 2, 1>} : memref<192x128xf32, #tpu.memory_space<vmem>>, vector<16x128xf32>
      %c129 = arith.constant 129 : index
      %c0_149 = arith.constant 0 : index
      %587 = tpu.strided_load %arg7[%c129, %c0_149] {strides = array<i32: 2, 1>} : memref<192x128xf32, #tpu.memory_space<vmem>>, vector<16x128xf32>
      %588 = arith.maximumf %586, %587 : vector<16x128xf32>
      %c60_i32 = arith.constant 60 : i32
      %589 = arith.addi %c60_i32, %arg9 : i32
      %c16_i32_150 = arith.constant 16 : i32
      %590 = arith.muli %589, %c16_i32_150 : i32
      %591 = tpu.assume_multiple %590, 16 : i32
      %592 = arith.index_cast %591 : i32 to index
      %c0_151 = arith.constant 0 : index
      %593 = vector.load %arg8[%592, %c0_151] : memref<1440x128xf32, #tpu.memory_space<vmem>>, vector<16x128xf32>
      tpu.vector_store %arg8[%592, %c0_151], %588 {strides = array<i32>} : memref<1440x128xf32, #tpu.memory_space<vmem>>, vector<16x128xf32>,
      %c160_152 = arith.constant 160 : index
      %c0_153 = arith.constant 0 : index
      %594 = tpu.strided_load %arg7[%c160_152, %c0_153] {strides = array<i32: 2, 1>} : memref<192x128xf32, #tpu.memory_space<vmem>>, vector<16x128xf32>
      %c161 = arith.constant 161 : index
      %c0_154 = arith.constant 0 : index
      %595 = tpu.strided_load %arg7[%c161, %c0_154] {strides = array<i32: 2, 1>} : memref<192x128xf32, #tpu.memory_space<vmem>>, vector<16x128xf32>
      %596 = arith.maximumf %594, %595 : vector<16x128xf32>
      %c75_i32 = arith.constant 75 : i32
      %597 = arith.addi %c75_i32, %arg9 : i32
      %c16_i32_155 = arith.constant 16 : i32
      %598 = arith.muli %597, %c16_i32_155 : i32
      %599 = tpu.assume_multiple %598, 16 : i32
      %600 = arith.index_cast %599 : i32 to index
      %c0_156 = arith.constant 0 : index
      %601 = vector.load %arg8[%600, %c0_156] : memref<1440x128xf32, #tpu.memory_space<vmem>>, vector<16x128xf32>
      tpu.vector_store %arg8[%600, %c0_156], %596 {strides = array<i32>} : memref<1440x128xf32, #tpu.memory_space<vmem>>, vector<16x128xf32>,
    }
    %c15_i32_0 = arith.constant 15 : i32
    %c0 = arith.constant 0 : index
    %c0_1 = arith.constant 0 : index
    %1 = vector.load %arg4[%c0, %c0_1] : memref<10x1440xf32, #tpu.memory_space<vmem>>, vector<10x1440xf32>
    %c0_2 = arith.constant 0 : index
    %c0_3 = arith.constant 0 : index
    %2 = vector.load %arg8[%c0_2, %c0_3] : memref<1440x128xf32, #tpu.memory_space<vmem>>, vector<1440x128xf32>
    %cst = arith.constant dense<0.000000e+00> : vector<10x128xf32>
    %3 = tpu.matmul %1, %2, %cst {dimension_numbers = #tpu.dot_dimension_numbers<[1], [0], [0], [1], [0, 0, 1, 1], [], []>} : vector<10x1440xf32>, vector<1440x128xf32>, vector<10x128xf32> -> vector<10x128xf32>
    %c0_4 = arith.constant 0 : index
    %c0_5 = arith.constant 0 : index
    %4 = vector.load %arg5[%c0_4, %c0_5] : memref<10x1xf32, #tpu.memory_space<vmem>>, vector<10x1xf32>
    %5 = vector.broadcast %4 : vector<10x1xf32> to vector<10x128xf32>
    %6 = arith.addf %3, %5 : vector<10x128xf32>
    %c0_6 = arith.constant 0 : index
    %c0_7 = arith.constant 0 : index
    %7 = vector.load %arg6[%c0_6, %c0_7] : memref<10x128xf32, #tpu.memory_space<vmem>>, vector<10x128xf32>
    tpu.vector_store %arg6[%c0_6, %c0_7], %6 {strides = array<i32>} : memref<10x128xf32, #tpu.memory_space<vmem>>, vector<10x128xf32>,
    return
  }
  func.func @transform_0(%arg0: i32) -> (i32, i32, i32) {
    %c0_i32 = arith.constant 0 : i32
    %c0_i32_0 = arith.constant 0 : i32
    %c0_i32_1 = arith.constant 0 : i32
    return %c0_i32, %c0_i32_0, %arg0 : i32, i32, i32
  }
  func.func @transform_1(%arg0: i32) -> i32 {
    %c0_i32 = arith.constant 0 : i32
    %c0_i32_0 = arith.constant 0 : i32
    return %c0_i32 : i32
  }
  func.func @transform_2(%arg0: i32) -> i32 {
    %c0_i32 = arith.constant 0 : i32
    %c0_i32_0 = arith.constant 0 : i32
    return %c0_i32 : i32
  }
  func.func @transform_3(%arg0: i32) -> (i32, i32) {
    %c0_i32 = arith.constant 0 : i32
    %c0_i32_0 = arith.constant 0 : i32
    %c0_i32_1 = arith.constant 0 : i32
    return %c0_i32, %c0_i32_0 : i32, i32
  }
  func.func @transform_4(%arg0: i32) -> (i32, i32) {
    %c0_i32 = arith.constant 0 : i32
    %c0_i32_0 = arith.constant 0 : i32
    %c0_i32_1 = arith.constant 0 : i32
    return %c0_i32, %c0_i32_0 : i32, i32
  }
  func.func @transform_5(%arg0: i32) -> (i32, i32) {
    %c0_i32 = arith.constant 0 : i32
    %c0_i32_0 = arith.constant 0 : i32
    return %c0_i32, %arg0 : i32, i32
  }
}

</mosaic_0001>

<bundles_post_ra>
// kernel: net_forward.1
= control target key start
LH: loop header
LB: loop body
LE: loop exit
PB: predicated region body
PF: predicated region fallthrough
CT: control target
= control target key end

     0   :  { %10 = vsyncpa [#allocation5], 0  ;;  %s7405_s0 = inlined_call_operand.vmem [shape: f32[32,40,128], index: 0, kind: input, shape index: {}]   ;;  %s7406_s1 = inlined_call_operand.vmem [shape: f32[54], index: 1, kind: input, shape index: {}]   ;;  %s7407_s2 = inlined_call_operand.vmem [shape: f32[6], index: 2, kind: input, shape index: {}]   ;;  %s7408_s3 = inlined_call_operand.vmem [shape: f32[10,1440], index: 3, kind: input, shape index: {}]   ;;  %s7409_s4 = inlined_call_operand.vmem [shape: f32[10,1], index: 4, kind: input, shape index: {}]   ;;  %s7410_s5 = inlined_call_operand.vmem [shape: f32[10,128], index: 5, kind: output, shape index: {}]  }
   0x1   :  { %s20_s20 = sshll.u32 %s7406_s1, 4  ;;  %s21_s20 = int_to_ptr.vmem [resolvable:$true] %s20_s20 }
   0x2   :  { %11 = vsyncpa [#allocation7], 0  ;;  %s30_s23 = sshll.u32 %s7407_s2, 4  ;;  %s3870_s24 = scalar_lea.vmem %s21_s20, 16  ;;  %s31_s23 = int_to_ptr.vmem [resolvable:$true] %s30_s23 }
   0x3   :  { %p3871_p0 = scmp.ne.s32.totalorder %s21_s20, %s3870_s24  ;;  %p3875_p1 = scmp.lt.s32.totalorder %s21_s20, %s21_s20 }
   0x4   :  { %p3876_p2 = scmp.lt.s32.totalorder %s3870_s24, %s3870_s24 }
   0x6   :  { %p3877_p3 = por %p3876_p2, %p3875_p1 }
   0x8   :  { %p3878_p4 = pnand %p3877_p3, %p3871_p0 }
   0xa   :  { %3881 = shalt.err (!%p3878_p4)
}
   0xb   :  { %s3906_s25 = smov [#allocation4]   ;;  %s3882_s26 = scalar_lea.vmem %s31_s23, 16 }
   0xc   :  { %23 = dma.vmem_to_smem %s21_s20, 16, %s3906_s25, [#allocation5]  }
   0xd   :  { %p3883_p5 = scmp.ne.s32.totalorder %s31_s23, %s3882_s26  ;;  %p3887_p6 = scmp.lt.s32.totalorder %s31_s23, %s31_s23 }
   0xe   :  { %p3888_p7 = scmp.lt.s32.totalorder %s3882_s26, %s3882_s26 }
  0x10   :  { %p3889_p8 = por %p3888_p7, %p3887_p6 }
  0x12   :  { %p3890_p9 = pnand %p3889_p8, %p3883_p5 }
  0x14   :  { %3893 = shalt.err (!%p3890_p9)
}
  0x15   :  { %s3907_s1 = smov [#allocation6]  }
  0x16   :  { %33 = dma.vmem_to_smem %s31_s23, 16, %s3907_s1, [#allocation7]  }
  0x17   :  { %3898 = dma.done.wait [#allocation5], 16  }
  0x18   :  { %3899 = vsyncadd [#allocation5], 4294967280 }
  0x19   :  { %3900 = dma.done.wait [#allocation7], 16  }
  0x1a   :  { %3901 = vsyncadd [#allocation7], 4294967280 }
  0x1b   :  { %44 = sfence }
  0x1c   :  { %s3946_s2 = smov 0  }
  0x1d LB: > { %s51_s27 = sld [smem:[#allocation6]]  ;;  %s3344_s29 = smul.u32 80, %s3904_s2  ;;  %vm143_vm0 = vcmask 1046528   ;;  %vm318_vm1 = vcmask 1045504   ;;  %s3904_s2 = sphi %s3946_s2, %s50_s2  }
  0x1e   : > { %s71_s28 = sld [smem:[#allocation4]]  ;;  %s3350_s30 = sld [smem:[#allocation4 + $0x1]] }
  0x1f   : > { %s3356_s6 = sld [smem:[#allocation4 + $0x2]]  ;;  %s3369_s7 = sld [smem:[#allocation4 + $0x3]] }
  0x20   : > { %s3955_s10 = scalar_lea.vmem %s7405_s0, %s3344_s29  ;;  %s3375_s11 = sld [smem:[#allocation4 + $0x4]] }
  0x21   : > { %v3958_v0 = vld [vmem:[%s3955_s10] sm:$0xff]  ;;  %v3961_v1 = vld [vmem:[%s3955_s10 + $0x8] sm:$0xff]  ;;  %s3381_s12 = sld [smem:[#allocation4 + $0x5]]  ;;  %s3966_s13 = sld [smem:[#allocation4 + $0x6]]  ;;  %v4007_v19 = vld [vmem:[%s3955_s10 + $0x30] sm:$0xff] }
  0x22   : > { %v3964_v2 = vld [vmem:[%s3955_s10 + $0x28] sm:$0xff]  ;;  %s3972_s14 = sld [smem:[#allocation4 + $0x7]]  ;;  %s3994_s15 = sld [smem:[#allocation4 + $0x8]]  ;;  %v4037_v34 = vld [vmem:[%s3955_s10 + $0x50] sm:$0xff]  ;;  %v4041_v37 = vld [vmem:[%s3955_s10 + $0x58] sm:$0xff] }
  0x23   : > { %v3968_v3 = vstv %s51_s27  ;;  %s4479_s16 = sld [smem:[#allocation6 + $0x1]]  ;;  %s4494_s18 = sld [smem:[#allocation4 + $0xa]] }
  0x24   : > { %v3970_v4 = vstv %s71_s28  ;;  %v3976_v6 = vstv %s3350_s30  ;;  %s4485_s17 = sld [smem:[#allocation4 + $0x9]]  ;;  %s4496_s19 = sld [smem:[#allocation4 + $0xb]] }
  0x25   : > { %v73_v5 = vmul.f32 %v3970_v4, %v3958_v0  ;;  %v1337_v7 = vmul.f32 %v3964_v2, %v3970_v4  ;;  %v3982_v8 = vmul.f32 %v3970_v4, %v3961_v1  ;;  %v133_v9 = vmul.f32 %v3976_v6, %v3958_v0  ;;  %s4514_s20 = sld [smem:[#allocation4 + $0xc]]  ;;  %s4523_s21 = sld [smem:[#allocation4 + $0xd]] }
  0x26   : > { %v3988_v10 = vmul.f32 %v3976_v6, %v3961_v1  ;;  %v3990_v11 = vstv %s3356_s6  ;;  %v3992_v12 = vstv %s3369_s7  ;;  %v4009_v20 = vstv %s3375_s11  ;;  %s4534_s22 = sld [smem:[#allocation4 + $0xe]]  ;;  %s4536_s23 = sld [smem:[#allocation4 + $0xf]] }
  0x27   : > { %v77_v13 = vadd.f32 %v73_v5, %v3968_v3  ;;  %v308_v14 = vmul.f32 %v3990_v11, %v3958_v0  ;;  %v4001_v15 = vmul.f32 %v3990_v11, %v3961_v1  ;;  %v491_v16 = vmul.f32 %v3964_v2, %v3992_v12  ;;  %s4555_s24 = sld [smem:[#allocation4 + $0x10]]  ;;  %s4573_s25 = sld [smem:[#allocation4 + $0x11]] }
  0x28   : > { %v144_v17 = vrot.slane %v133_v9, 1  ;;  %v145_v18 = vrot.slane %v3988_v10, 1  ;;  %v4011_v21 = vstv %s3381_s12  ;;  %v551_v24 = vmul.f32 %v3964_v2, %v4009_v20  ;;  %s5006_s26 = sld [smem:[#allocation6 + $0x2]]  ;;  %s5021_s27 = sld [smem:[#allocation4 + $0x13]] }
  0x29   : > { %v319_v22 = vrot.slane %v308_v14, 2  ;;  %v320_v23 = vrot.slane %v4001_v15, 2  ;;  %v4018_v25 = vmul.f32 %v4007_v19, %v4009_v20  ;;  %v725_v27 = vmul.f32 %v3964_v2, %v4011_v21  ;;  %v4098_v14 = vld [vmem:[%s3955_s10 + $0x78] sm:$0xff]  ;;  %s5016_s1 = sld [smem:[#allocation4 + $0x12]]  ;;  %s5030_s28 = sld [smem:[#allocation4 + $0x14]] }
  0x2a   : > { %v146_v26 = vsel %vm143_vm0, %v144_v17, %v145_v18  ;;  %v4027_v28 = vmul.f32 %v4007_v19, %v4011_v21  ;;  %v4030_v29 = vstv %s3966_s13  ;;  %v561_v32 = vrot.slane %v551_v24, 1  ;;  %s5041_s29 = sld [smem:[#allocation4 + $0x15]]  ;;  %s5051_s30 = sld [smem:[#allocation4 + $0x16]] }
  0x2b   : > { %v157_v30 = vadd.f32 %v146_v26, %v77_v13  ;;  %v321_v31 = vsel %vm318_vm1, %v319_v22, %v320_v23  ;;  %v562_v33 = vrot.slane %v4018_v25, 1  ;;  %v735_v35 = vrot.slane %v725_v27, 2  ;;  %v4113_v26 = vld [vmem:[%s3955_s10 + $0x80] sm:$0xff]  ;;  %s5053_s6 = sld [smem:[#allocation4 + $0x17]]  ;;  %s5067_s7 = sld [smem:[#allocation4 + $0x18]] }
  0x2c   : > { %v736_v36 = vrot.slane %v4027_v28, 2  ;;  %v907_v38 = vmul.f32 %v4037_v34, %v4030_v29  ;;  %v4046_v39 = vstv %s3972_s14  ;;  %v4061_v45 = vstv %s3994_s15  ;;  %s5092_s8 = sld [smem:[#allocation4 + $0x19]]  ;;  %s5105_s9 = sld [smem:[#allocation4 + $0x1a]] }
  0x2d   : > { %v332_v40 = vadd.f32 %v321_v31, %v157_v30  ;;  %v563_v41 = vsel %vm143_vm0, %v561_v32, %v562_v33  ;;  %v967_v42 = vmul.f32 %v4037_v34, %v4046_v39  ;;  %v4055_v43 = vmul.f32 %v4041_v37, %v4046_v39  ;;  %s5595_s11 = sld [smem:[#allocation6 + $0x3]]  ;;  %s5610_s13 = sld [smem:[#allocation4 + $0x1c]] }
  0x2e   : > { %v737_v44 = vsel %vm318_vm1, %v735_v35, %v736_v36  ;;  %v1341_v46 = vadd.f32 %v1337_v7, %v3968_v3  ;;  %v1385_v47 = vmul.f32 %v3964_v2, %v3976_v6  ;;  %v1141_v51 = vmul.f32 %v4037_v34, %v4061_v45  ;;  %s5601_s12 = sld [smem:[#allocation4 + $0x1b]]  ;;  %s5612_s14 = sld [smem:[#allocation4 + $0x1d]] }
  0x2f   : > { %v495_v48 = vadd.f32 %v491_v16, %v332_v40  ;;  %v977_v49 = vrot.slane %v967_v42, 1  ;;  %v978_v50 = vrot.slane %v4055_v43, 1  ;;  %v4071_v52 = vmul.f32 %v4041_v37, %v4061_v45  ;;  %s5627_s15 = sld [smem:[#allocation4 + $0x1e]] }
  0x30   : > { %v4075_v53 = vmul.f32 %v4007_v19, %v3976_v6  ;;  %v1395_v54 = vrot.slane %v1385_v47, 1  ;;  %v1547_v55 = vmul.f32 %v3964_v2, %v3990_v11  ;;  %v1151_v58 = vrot.slane %v1141_v51, 2 }
  0x31   : > { %v574_v56 = vadd.f32 %v563_v41, %v495_v48  ;;  %v979_v57 = vsel %vm143_vm0, %v977_v49, %v978_v50  ;;  %v4084_v59 = vmul.f32 %v4007_v19, %v3990_v11  ;;  %v1152_v60 = vrot.slane %v4071_v52, 2  ;;  %v4129_v48 = vld [vmem:[%s3955_s10 + $0x10] sm:$0xff] }
  0x32   : > { %v1396_v61 = vrot.slane %v4075_v53, 1  ;;  %v1557_v62 = vrot.slane %v1547_v55, 2  ;;  %v1709_v63 = vmul.f32 %v4037_v34, %v3992_v12  ;;  %v1757_v9 = vmul.f32 %v4037_v34, %v4009_v20 }
  0x33   : > { %v748_v5 = vadd.f32 %v737_v44, %v574_v56  ;;  %v1558_v7 = vrot.slane %v4084_v59, 2  ;;  %v4095_v13 = vmul.f32 %v4041_v37, %v4009_v20  ;;  %v1153_v16 = vsel %vm318_vm1, %v1151_v58, %v1152_v60 }
  0x34   : > { %v1397_v17 = vsel %vm143_vm0, %v1395_v54, %v1396_v61  ;;  %v1919_v22 = vmul.f32 %v4037_v34, %v4011_v21  ;;  %v4110_v24 = vmul.f32 %v4041_v37, %v4011_v21  ;;  %v1767_v32 = vrot.slane %v1757_v9, 1 }
  0x35   : > { %v911_v27 = vadd.f32 %v907_v38, %v748_v5  ;;  %v1408_v30 = vadd.f32 %v1397_v17, %v1341_v46  ;;  %v1559_v31 = vsel %vm318_vm1, %v1557_v62, %v1558_v7  ;;  %v1768_v35 = vrot.slane %v4095_v13, 1 }
  0x36   : > { %v1929_v40 = vrot.slane %v1919_v22, 2  ;;  %v1930_v41 = vrot.slane %v4110_v24, 2  ;;  %v2089_v42 = vmul.f32 %v4098_v14, %v4030_v29  ;;  %v2137_v38 = vmul.f32 %v4098_v14, %v4046_v39  ;;  %v4298_v24 = vld [vmem:[%s3955_s10 + $0x40] sm:$0xff] }
  0x37   : > { %v990_v44 = vadd.f32 %v979_v57, %v911_v27  ;;  %v1570_v47 = vadd.f32 %v1559_v31, %v1408_v30  ;;  %v4126_v46 = vmul.f32 %v4113_v26, %v4046_v39  ;;  %v1769_v49 = vsel %vm143_vm0, %v1767_v32, %v1768_v35  ;;  %v4152_v27 = vld [vmem:[%s3955_s10 + $0x38] sm:$0xff] }
  0x38   : > { %v1931_v51 = vsel %vm318_vm1, %v1929_v40, %v1930_v41  ;;  %v2299_v54 = vmul.f32 %v4098_v14, %v4061_v45  ;;  %v4141_v55 = vmul.f32 %v4113_v26, %v4061_v45  ;;  %v2147_v58 = vrot.slane %v2137_v38, 1 }
  0x39   : > { %v1164_v56 = vadd.f32 %v1153_v16, %v990_v44  ;;  %v1713_v57 = vadd.f32 %v1709_v63, %v1570_v47  ;;  %v7413_v62 = vrot.slane %v4126_v46, 1  ;;  %v78_v17 = vadd.f32 %v3982_v8, %v3968_v3  ;;  %v4172_v47 = vld [vmem:[%s3955_s10 + $0x60] sm:$0xff] }
  0x3a   : > { %v2309_v5 = vrot.slane %v2299_v54, 2  ;;  %v7411_v9 = vrot.slane %v4141_v55, 2  ;;  %v4149_v22 = vmul.f32 %v3976_v6, %v4129_v48  ;;  %v4159_v16 = vmul.f32 %v3990_v11, %v4129_v48 }
  0x3b   : > { %v1313_v30 = vmax.f32 %v1164_v56, 0.0  ;;  %v1780_v31 = vadd.f32 %v1769_v49, %v1713_v57  ;;  %v2149_v63 = vsel %vm143_vm0, %v2147_v58, %v7413_v62  ;;  %v492_v40 = vmul.f32 %v4007_v19, %v3992_v12 }
  0x3c   : > { %v2311_v8 = vsel %vm318_vm1, %v2309_v5, %v7411_v9  ;;  %v7412_v32 = vrot.slane %v4149_v22, 1  ;;  %v4169_v44 = vmul.f32 %v4152_v27, %v4009_v20  ;;  %v322_v49 = vrot.slane %v4159_v16, 2 }
  0x3d   : > { %v1942_v38 = vadd.f32 %v1931_v51, %v1780_v31  ;;  %v4177_v54 = vmul.f32 %v4152_v27, %v4011_v21  ;;  %v908_v56 = vmul.f32 %v4041_v37, %v4030_v29  ;;  %v4189_v51 = vmul.f32 %v4172_v47, %v4046_v39 }
  0x3e   : > { %v148_v57 = vsel %vm143_vm0, %v145_v18, %v7412_v32  ;;  %v564_v58 = vrot.slane %v4169_v44, 1  ;;  %v4193_v5 = vmul.f32 %v4172_v47, %v4061_v45  ;;  %v323_v10 = vsel %vm318_vm1, %v320_v23, %v322_v49 }
  0x3f   : > { %v2093_v31 = vadd.f32 %v2089_v42, %v1942_v38  ;;  %v158_v9 = vadd.f32 %v148_v57, %v78_v17  ;;  %v738_v18 = vrot.slane %v4177_v54, 2  ;;  %v7415_v62 = vrot.slane %v4189_v51, 1 }
  0x40   : > { %v565_v32 = vsel %vm143_vm0, %v562_v33, %v564_v58  ;;  %v7414_v42 = vrot.slane %v4193_v5, 2  ;;  %v1338_v17 = vmul.f32 %v4007_v19, %v3970_v4  ;;  %v4217_v23 = vmul.f32 %v4152_v27, %v3976_v6 }
  0x41   : > { %v2160_v38 = vadd.f32 %v2149_v63, %v2093_v31  ;;  %v333_v57 = vadd.f32 %v323_v10, %v158_v9  ;;  %v739_v15 = vsel %vm318_vm1, %v736_v36, %v738_v18  ;;  %v981_v25 = vsel %vm143_vm0, %v978_v50, %v7415_v62  ;;  %v4235_v9 = vld [vmem:[%s3955_s10 + $0x88] sm:$0xff] }
  0x42   : > { %v1155_v33 = vsel %vm318_vm1, %v1152_v60, %v7414_v42  ;;  %v1342_v28 = vadd.f32 %v1338_v17, %v3968_v3  ;;  %v4232_v36 = vmul.f32 %v4152_v27, %v3990_v11  ;;  %7523 = vst [vmem:[#allocation10_spill] sm:$0xff] %v4235_v9  ;;  %v7416_v43 = vrot.slane %v4217_v23, 1 }
  0x43   : > { %v2322_v63 = vadd.f32 %v2311_v8, %v2160_v38  ;;  %v496_v31 = vadd.f32 %v492_v40, %v333_v57  ;;  %v1710_v50 = vmul.f32 %v4041_v37, %v3992_v12  ;;  %v4243_v60 = vmul.f32 %v4172_v47, %v4009_v20 }
  0x44   : > { %v7421_v52 = vrot.slane %v4232_v36, 2  ;;  %v4247_v10 = vmul.f32 %v4172_v47, %v4011_v21  ;;  %v2090_v8 = vmul.f32 %v4113_v26, %v4030_v29  ;;  %v1399_v38 = vsel %vm143_vm0, %v1396_v61, %v7416_v43 }
  0x45   : > { %v2461_v17 = vmax.f32 %v2322_v63, 0.0  ;;  %v575_v40 = vadd.f32 %v565_v32, %v496_v31  ;;  %v4258_v57 = vmul.f32 %v4235_v9, %v4046_v39  ;;  %v1409_v42 = vadd.f32 %v1399_v38, %v1342_v28  ;;  %v4268_v31 = vld [vmem:[%s3955_s10 + $0x18] sm:$0xff] }
  0x46   : > { %v1561_v62 = vsel %vm318_vm1, %v1558_v7, %v7421_v52  ;;  %v7420_v63 = vrot.slane %v4243_v60, 1  ;;  %v7419_v32 = vrot.slane %v4247_v10, 2  ;;  %7524 = vst [vmem:[#allocation11_spill] sm:$0xff] %v4268_v31  ;;  %v4273_v28 = vmul.f32 %v4235_v9, %v4061_v45 }
  0x47   : > { %v2485_v53 = vmax.f32 %v1313_v30, %v2461_v17  ;;  %v749_v61 = vadd.f32 %v739_v15, %v575_v40  ;;  %v7417_v43 = vrot.slane %v4258_v57, 1  ;;  %v1571_v38 = vadd.f32 %v1561_v62, %v1409_v42 }
  0x48   : > { %v1771_v59 = vsel %vm143_vm0, %v1768_v35, %v7420_v63  ;;  %v1933_v7 = vsel %vm318_vm1, %v1930_v41, %v7419_v32  ;;  %v75_v30 = vmul.f32 %v3970_v4, %v4129_v48  ;;  %v7525_v62 = vrot.slane %v4126_v46, 1 }
  0x49   : > { %2489 = vst [vmem:[#allocation2] sm:$0xff] %v2485_v53  ;;  %v912_v15 = vadd.f32 %v908_v56, %v749_v61  ;;  %v7418_v35 = vrot.slane %v4273_v28, 2  ;;  %v4295_v42 = vmul.f32 %v3976_v6, %v4268_v31  ;;  %v1714_v41 = vadd.f32 %v1710_v50, %v1571_v38  ;;  %v4318_v38 = vld [vmem:[%s3955_s10 + $0x68] sm:$0xff] }
  0x4a   : > { %v2151_v13 = vsel %vm143_vm0, %v7525_v62, %v7417_v43  ;;  %v79_v17 = vadd.f32 %v75_v30, %v3968_v3  ;;  %v4303_v56 = vmul.f32 %v3990_v11, %v4268_v31  ;;  %v493_v46 = vmul.f32 %v4152_v27, %v3992_v12 }
  0x4b   : > { %v991_v40 = vadd.f32 %v981_v25, %v912_v15  ;;  %v7526_v53 = vrot.slane %v4141_v55, 2  ;;  %v7427_v62 = vrot.slane %v4295_v42, 1  ;;  %v4315_v50 = vmul.f32 %v4298_v24, %v4009_v20 }
  0x4c   : > { %v1781_v30 = vadd.f32 %v1771_v59, %v1714_v41  ;;  %v7426_v43 = vrot.slane %v4303_v56, 2  ;;  %v4323_v25 = vmul.f32 %v4298_v24, %v4011_v21  ;;  %v909_v55 = vmul.f32 %v4172_v47, %v4030_v29 }
  0x4d   : > { %v2313_v61 = vsel %vm318_vm1, %v7526_v53, %v7418_v35  ;;  %v1165_v15 = vadd.f32 %v1155_v33, %v991_v40  ;;  %v7527_v53 = vrot.slane %v4149_v22, 1  ;;  %v7425_v32 = vrot.slane %v4315_v50, 1 }
  0x4e   : > { %v4335_v59 = vmul.f32 %v4318_v38, %v4046_v39  ;;  %v1943_v41 = vadd.f32 %v1933_v7, %v1781_v30  ;;  %v325_v33 = vsel %vm318_vm1, %v322_v49, %v7426_v43  ;;  %v7423_v40 = vrot.slane %v4323_v25, 2 }
  0x4f   : > { %v150_v35 = vsel %vm143_vm0, %v7527_v53, %v7427_v62  ;;  %v1314_v52 = vmax.f32 %v1165_v15, 0.0  ;;  %v567_v22 = vsel %vm143_vm0, %v564_v58, %v7425_v32  ;;  %v4351_v7 = vmul.f32 %v4318_v38, %v4061_v45 }
  0x50   : > { %v159_v63 = vadd.f32 %v150_v35, %v79_v17  ;;  %v7422_v53 = vrot.slane %v4335_v59, 1  ;;  %v2094_v35 = vadd.f32 %v2090_v8, %v1943_v41  ;;  %v741_v49 = vsel %vm318_vm1, %v738_v18, %v7423_v40 }
  0x51   : > { %v1339_v44 = vmul.f32 %v4152_v27, %v3970_v4  ;;  %v7528_v58 = vrot.slane %v4189_v51, 1  ;;  %v7424_v30 = vrot.slane %v4351_v7, 2  ;;  %v4368_v8 = vmul.f32 %v4298_v24, %v3976_v6  ;;  %v4378_v51 = vld [vmem:[%s3955_s10 + $0x90] sm:$0xff] }
  0x52   : > { %v334_v16 = vadd.f32 %v325_v33, %v159_v63  ;;  %v4372_v54 = vmul.f32 %v4298_v24, %v3990_v11  ;;  %v2161_v18 = vadd.f32 %v2151_v13, %v2094_v35  ;;  %v1711_v41 = vmul.f32 %v4172_v47, %v3992_v12 }
  0x53   : > { %v983_v17 = vsel %vm143_vm0, %v7528_v58, %v7422_v53  ;;  %v1343_v15 = vadd.f32 %v1339_v44, %v3968_v3  ;;  %v7529_v33 = vrot.slane %v4193_v5, 2  ;;  %v7430_v53 = vrot.slane %v4368_v8, 1 }
  0x54   : > { %v497_v63 = vadd.f32 %v493_v46, %v334_v16  ;;  %v7428_v40 = vrot.slane %v4372_v54, 2  ;;  %v4389_v13 = vmul.f32 %v4318_v38, %v4009_v20  ;;  %v2323_v46 = vadd.f32 %v2313_v61, %v2161_v18 }
  0x55   : > { %v1157_v58 = vsel %vm318_vm1, %v7529_v33, %v7424_v30  ;;  %v4393_v16 = vmul.f32 %v4318_v38, %v4011_v21  ;;  %v2091_v5 = vmul.f32 %v4235_v9, %v4030_v29  ;;  %v7530_v44 = vrot.slane %v4217_v23, 1  ;;  %v4414_v23 = vld [vmem:[%s3955_s10 + $0x20] sm:$0xff] }
  0x56   : > { %v576_v35 = vadd.f32 %v567_v22, %v497_v63  ;;  %v7531_v30 = vrot.slane %v4232_v36, 2  ;;  %v7429_v22 = vrot.slane %v4389_v13, 1  ;;  %v4410_v18 = vmul.f32 %v4378_v51, %v4046_v39  ;;  %7532 = vst [vmem:[#allocation12_spill] sm:$0xff] %v4414_v23 }
  0x57   : > { %v1401_v33 = vsel %vm143_vm0, %v7530_v44, %v7430_v53  ;;  %v2462_v63 = vmax.f32 %v2323_v46, 0.0  ;;  %v7435_v62 = vrot.slane %v4393_v16, 2  ;;  %v7533_v44 = vrot.slane %v4243_v60, 1 }
  0x58   : > { %v1563_v61 = vsel %vm318_vm1, %v7531_v30, %v7428_v40  ;;  %v750_v32 = vadd.f32 %v741_v49, %v576_v35  ;;  %v1410_v43 = vadd.f32 %v1401_v33, %v1343_v15  ;;  %v7433_v30 = vrot.slane %v4410_v18, 1 }
  0x59   : > { %v1773_v36 = vsel %vm143_vm0, %v7533_v44, %v7429_v22  ;;  %v4424_v40 = vmul.f32 %v4378_v51, %v4061_v45  ;;  %v76_v49 = vmul.f32 %v3970_v4, %v4268_v31  ;;  %v2486_v15 = vmax.f32 %v1314_v52, %v2462_v63 }
  0x5a   : > { %v913_v46 = vadd.f32 %v909_v55, %v750_v32  ;;  %v1572_v35 = vadd.f32 %v1563_v61, %v1410_v43  ;;  %v7534_v33 = vrot.slane %v4247_v10, 2  ;;  %v7535_v44 = vrot.slane %v4258_v57, 1  ;;  %v4445_v55 = vld [vmem:[%s3955_s10 + $0x48] sm:$0xff] }
  0x5b   : > { %v7434_v53 = vrot.slane %v4424_v40, 2  ;;  %v80_v31 = vadd.f32 %v76_v49, %v3968_v3  ;;  %v137_v43 = vmul.f32 %v3976_v6, %v4414_v23  ;;  %2490 = vst [vmem:[#allocation2 + $0x8] sm:$0xff] %v2486_v15  ;;  %v312_v10 = vmul.f32 %v3990_v11, %v4414_v23 }
  0x5c   : > { %v1935_v60 = vsel %vm318_vm1, %v7534_v33, %v7435_v62  ;;  %v2153_v22 = vsel %vm143_vm0, %v7535_v44, %v7433_v30  ;;  %v992_v52 = vadd.f32 %v983_v17, %v913_v46  ;;  %v1715_v32 = vadd.f32 %v1711_v41, %v1572_v35  ;;  %v4459_v33 = vld [vmem:[%s3955_s10 + $0x70] sm:$0xff] }
  0x5d   : > { %v494_v57 = vmul.f32 %v4298_v24, %v3992_v12  ;;  %v7536_v61 = vrot.slane %v4273_v28, 2  ;;  %v151_v49 = vrot.slane %v137_v43, 1  ;;  %v555_v15 = vmul.f32 %v4445_v55, %v4009_v20 }
  0x5e   : > { %v729_v17 = vmul.f32 %v4445_v55, %v4011_v21  ;;  %v1166_v41 = vadd.f32 %v1157_v58, %v992_v52  ;;  %v1782_v46 = vadd.f32 %v1773_v36, %v1715_v32  ;;  %v326_v35 = vrot.slane %v312_v10, 2 }
  0x5f   : > { %v2315_v63 = vsel %vm318_vm1, %v7536_v61, %v7434_v53  ;;  %v910_v44 = vmul.f32 %v4318_v38, %v4030_v29  ;;  %v7537_v30 = vrot.slane %v4295_v42, 1  ;;  %v568_v61 = vrot.slane %v555_v15, 1 }
  0x60   : > { %v742_v43 = vrot.slane %v729_v17, 2  ;;  %v971_v53 = vmul.f32 %v4459_v33, %v4046_v39  ;;  %v1315_v62 = vmax.f32 %v1166_v41, 0.0  ;;  %v1944_v23 = vadd.f32 %v1935_v60, %v1782_v46 }
  0x61   : > { %v152_v28 = vsel %vm143_vm0, %v7537_v30, %v151_v49  ;;  %v7538_v58 = vrot.slane %v4303_v56, 2  ;;  %v7539_v52 = vrot.slane %v4315_v50, 1  ;;  %v7540_v42 = vrot.slane %v4323_v25, 2 }
  0x62   : > { %v160_v9 = vadd.f32 %v152_v28, %v80_v31  ;;  %v984_v10 = vrot.slane %v971_v53, 1  ;;  %v1145_v49 = vmul.f32 %v4459_v33, %v4061_v45  ;;  %v2095_v60 = vadd.f32 %v2091_v5, %v1944_v23 }
  0x63   : > { %v327_v36 = vsel %vm318_vm1, %v7538_v58, %v326_v35  ;;  %v569_v32 = vsel %vm143_vm0, %v7539_v52, %v568_v61  ;;  %v743_v30 = vsel %vm318_vm1, %v7540_v42, %v742_v43  ;;  %v1340_v56 = vmul.f32 %v4298_v24, %v3970_v4  ;;  %v4507_v35 = vld [vmem:[%s3955_s10 + $0x98] sm:$0xff] }
  0x64   : > { %v335_v31 = vadd.f32 %v327_v36, %v160_v9  ;;  %v1389_v50 = vmul.f32 %v4445_v55, %v3976_v6  ;;  %v7541_v25 = vrot.slane %v4335_v59, 1  ;;  %v1158_v15 = vrot.slane %v1145_v49, 2 }
  0x65   : > { %v1551_v17 = vmul.f32 %v4445_v55, %v3990_v11  ;;  %v1712_v9 = vmul.f32 %v4318_v38, %v3992_v12  ;;  %v2162_v4 = vadd.f32 %v2153_v22, %v2095_v60  ;;  %v1344_v5 = vadd.f32 %v1340_v56, %v3968_v3 }
  0x66   : > { %v985_v53 = vsel %vm143_vm0, %v7541_v25, %v984_v10  ;;  %v498_v6 = vadd.f32 %v494_v57, %v335_v31  ;;  %v1402_v23 = vrot.slane %v1389_v50, 1  ;;  %v7542_v59 = vrot.slane %v4351_v7, 2 }
  0x67   : > { %v1564_v46 = vrot.slane %v1551_v17, 2  ;;  %v1761_v11 = vmul.f32 %v4459_v33, %v4009_v20  ;;  %v1923_v12 = vmul.f32 %v4459_v33, %v4011_v21  ;;  %v2324_v28 = vadd.f32 %v2315_v63, %v2162_v4 }
  0x68   : > { %v1159_v41 = vsel %vm318_vm1, %v7542_v59, %v1158_v15  ;;  %v577_v61 = vadd.f32 %v569_v32, %v498_v6  ;;  %v7543_v22 = vrot.slane %v4368_v8, 1  ;;  %v2092_v7 = vmul.f32 %v4378_v51, %v4030_v29 }
  0x69   : > { %v7544_v20 = vrot.slane %v4372_v54, 2  ;;  %v1774_v21 = vrot.slane %v1761_v11, 1  ;;  %v1936_v58 = vrot.slane %v1923_v12, 2  ;;  %v2463_v36 = vmax.f32 %v2324_v28, 0.0 }
  0x6a   : > { %v1403_v3 = vsel %vm143_vm0, %v7543_v22, %v1402_v23  ;;  %v751_v63 = vadd.f32 %v743_v30, %v577_v61  ;;  %v2141_v8 = vmul.f32 %v4507_v35, %v4046_v39  ;;  %v2303_v29 = vmul.f32 %v4507_v35, %v4061_v45 }
  0x6b   : > { %v1411_v57 = vadd.f32 %v1403_v3, %v1344_v5  ;;  %v1565_v43 = vsel %vm318_vm1, %v7544_v20, %v1564_v46  ;;  %v7545_v54 = vrot.slane %v4389_v13, 1  ;;  %v7546_v42 = vrot.slane %v4393_v16, 2 }
  0x6c   : > { %v4532_v30 = vstv %s4479_s16  ;;  %v2487_v49 = vmax.f32 %v1315_v62, %v2463_v36  ;;  %v914_v60 = vadd.f32 %v910_v44, %v751_v63  ;;  %v2154_v39 = vrot.slane %v2141_v8, 1  ;;  %s5639_s16 = sld [smem:[#allocation4 + $0x1f]] }
  0x6d   : > { %v1573_v52 = vadd.f32 %v1565_v43, %v1411_v57  ;;  %v1775_v32 = vsel %vm143_vm0, %v7545_v54, %v1774_v21  ;;  %v1937_v10 = vsel %vm318_vm1, %v7546_v42, %v1936_v58  ;;  %v2316_v31 = vrot.slane %v2303_v29, 2 }
  0x6e   : > { %v4539_v56 = vstv %s4485_s17  ;;  %v4542_v13 = vstv %s4494_s18  ;;  %v4545_v50 = vstv %s4496_s19  ;;  %2491 = vst [vmem:[#allocation2 + $0x10] sm:$0xff] %v2487_v49  ;;  %v993_v16 = vadd.f32 %v985_v53, %v914_v60  ;;  %s5650_s17 = sld [smem:[#allocation4 + $0x20]]  ;;  %s5652_s18 = sld [smem:[#allocation4 + $0x21]] }
  0x6f   : > { %v1716_v45 = vadd.f32 %v1712_v9, %v1573_v52  ;;  %v7547_v25 = vrot.slane %v4410_v18, 1  ;;  %v7548_v44 = vrot.slane %v4424_v40, 2  ;;  %v83_v17 = vmul.f32 %v4539_v56, %v3958_v0  ;;  %s5671_s19 = sld [smem:[#allocation4 + $0x22]] }
  0x70   : > { %v163_v4 = vmul.f32 %v4542_v13, %v3958_v0  ;;  %v4561_v53 = vmul.f32 %v4542_v13, %v3961_v1  ;;  %v338_v18 = vmul.f32 %v4545_v50, %v3958_v0  ;;  %v1167_v40 = vadd.f32 %v1159_v41, %v993_v16 }
  0x71   : > { %v2155_v62 = vsel %vm143_vm0, %v7547_v25, %v2154_v39  ;;  %v2317_v15 = vsel %vm318_vm1, %v7548_v44, %v2316_v31  ;;  %v1783_v9 = vadd.f32 %v1775_v32, %v1716_v45  ;;  %v87_v6 = vadd.f32 %v83_v17, %v4532_v30 }
  0x72   : > { %v4568_v5 = vmul.f32 %v4545_v50, %v3961_v1  ;;  %v4571_v23 = vstv %s4514_s20  ;;  %v173_v46 = vrot.slane %v163_v4, 1  ;;  %v174_v11 = vrot.slane %v4561_v53, 1  ;;  %s5689_s20 = sld [smem:[#allocation4 + $0x23]] }
  0x73   : > { %v1945_v59 = vadd.f32 %v1937_v10, %v1783_v9  ;;  %v348_v12 = vrot.slane %v338_v18, 2  ;;  %v1316_v28 = vmax.f32 %v1167_v40, 0.0  ;;  %v501_v41 = vmul.f32 %v3964_v2, %v4571_v23 }
  0x74   : > { %v349_v0 = vrot.slane %v4568_v5, 2  ;;  %v4580_v61 = vstv %s4523_s21  ;;  %v175_v3 = vsel %vm143_vm0, %v173_v46, %v174_v11  ;;  %v4595_v58 = vstv %s4534_s22  ;;  %s6122_s21 = sld [smem:[#allocation6 + $0x4]] }
  0x75   : > { %v2096_v22 = vadd.f32 %v2092_v7, %v1945_v59  ;;  %v580_v57 = vmul.f32 %v3964_v2, %v4580_v61  ;;  %v4589_v20 = vmul.f32 %v4007_v19, %v4580_v61  ;;  %v186_v43 = vadd.f32 %v175_v3, %v87_v6  ;;  %s6132_s22 = sld [smem:[#allocation4 + $0x24]] }
  0x76   : > { %v350_v21 = vsel %vm318_vm1, %v348_v12, %v349_v0  ;;  %v4598_v36 = vstv %s4536_s23  ;;  %v754_v29 = vmul.f32 %v3964_v2, %v4595_v58  ;;  %v4605_v54 = vmul.f32 %v4007_v19, %v4595_v58  ;;  %s6137_s23 = sld [smem:[#allocation4 + $0x25]] }
  0x77   : > { %v2163_v7 = vadd.f32 %v2155_v62, %v2096_v22  ;;  %v590_v63 = vrot.slane %v580_v57, 1  ;;  %v591_v8 = vrot.slane %v4589_v20, 1  ;;  %v361_v52 = vadd.f32 %v350_v21, %v186_v43 }
  0x78   : > { %v917_v32 = vmul.f32 %v4037_v34, %v4598_v36  ;;  %v4610_v42 = vstv %s4555_s24  ;;  %v764_v60 = vrot.slane %v754_v29, 2  ;;  %v765_v45 = vrot.slane %v4605_v54, 2  ;;  %s6146_s24 = sld [smem:[#allocation4 + $0x26]] }
  0x79   : > { %v2325_v10 = vadd.f32 %v2317_v15, %v2163_v7  ;;  %v592_v49 = vsel %vm143_vm0, %v590_v63, %v591_v8  ;;  %v996_v39 = vmul.f32 %v4037_v34, %v4610_v42  ;;  %v505_v31 = vadd.f32 %v501_v41, %v361_v52 }
  0x7a   : > { %v4620_v16 = vmul.f32 %v4041_v37, %v4610_v42  ;;  %v4623_v25 = vstv %s4573_s25  ;;  %v766_v4 = vsel %vm318_vm1, %v764_v60, %v765_v45  ;;  %v1345_v40 = vmul.f32 %v3964_v2, %v4539_v56  ;;  %s6157_s25 = sld [smem:[#allocation4 + $0x27]] }
  0x7b   : > { %v2464_v62 = vmax.f32 %v2325_v10, 0.0  ;;  %v1006_v44 = vrot.slane %v996_v39, 1  ;;  %v1170_v15 = vmul.f32 %v4037_v34, %v4623_v25  ;;  %v4629_v17 = vmul.f32 %v4041_v37, %v4623_v25 }
  0x7c   : > { %v603_v9 = vadd.f32 %v592_v49, %v505_v31  ;;  %v1007_v18 = vrot.slane %v4620_v16, 1  ;;  %v1412_v12 = vmul.f32 %v3964_v2, %v4542_v13  ;;  %v1349_v3 = vadd.f32 %v1345_v40, %v4532_v30 }
  0x7d   : > { %v2488_v6 = vmax.f32 %v1316_v28, %v2464_v62  ;;  %v1180_v59 = vrot.slane %v1170_v15, 2  ;;  %v1181_v46 = vrot.slane %v4629_v17, 2  ;;  %v4646_v57 = vmul.f32 %v4007_v19, %v4542_v13 }
  0x7e   : > { %v777_v41 = vadd.f32 %v766_v4, %v603_v9  ;;  %v1008_v22 = vsel %vm143_vm0, %v1006_v44, %v1007_v18  ;;  %v1422_v43 = vrot.slane %v1412_v12, 1  ;;  %v1574_v21 = vmul.f32 %v3964_v2, %v4545_v50 }
  0x7f   : > { %2492 = vst [vmem:[#allocation2 + $0x18] sm:$0xff] %v2488_v6  ;;  %v1182_v28 = vsel %vm318_vm1, %v1180_v59, %v1181_v46  ;;  %v4655_v7 = vmul.f32 %v4007_v19, %v4545_v50  ;;  %v1423_v29 = vrot.slane %v4646_v57, 1  ;;  %v1717_v52 = vmul.f32 %v4037_v34, %v4571_v23 }
  0x80   : > { %v921_v63 = vadd.f32 %v917_v32, %v777_v41  ;;  %v1784_v10 = vmul.f32 %v4037_v34, %v4580_v61  ;;  %v1584_v49 = vrot.slane %v1574_v21, 2  ;;  %v4665_v39 = vmul.f32 %v4041_v37, %v4580_v61 }
  0x81   : > { %v1585_v60 = vrot.slane %v4655_v7, 2  ;;  %v1946_v2 = vmul.f32 %v4037_v34, %v4595_v58  ;;  %v1424_v32 = vsel %vm143_vm0, %v1422_v43, %v1423_v29  ;;  %v4674_v44 = vmul.f32 %v4041_v37, %v4595_v58 }
  0x82   : > { %v1019_v31 = vadd.f32 %v1008_v22, %v921_v63  ;;  %v1794_v62 = vrot.slane %v1784_v10, 1  ;;  %v1435_v15 = vadd.f32 %v1424_v32, %v1349_v3  ;;  %v7442_v4 = vrot.slane %v4665_v39, 1 }
  0x83   : > { %v1586_v9 = vsel %vm318_vm1, %v1584_v49, %v1585_v60  ;;  %v1956_v40 = vrot.slane %v1946_v2, 2  ;;  %v7441_v34 = vrot.slane %v4674_v44, 2  ;;  %v2097_v59 = vmul.f32 %v4098_v14, %v4598_v36 }
  0x84   : > { %v4680_v6 = vadd.f32 %v1182_v28, %v1019_v31  ;;  %v2164_v12 = vmul.f32 %v4098_v14, %v4610_v42  ;;  %v1597_v41 = vadd.f32 %v1586_v9, %v1435_v15  ;;  %v1796_v22 = vsel %vm143_vm0, %v1794_v62, %v7442_v4 }
  0x85   : > { %v4692_v3 = vmul.f32 %v4113_v26, %v4610_v42  ;;  %v2326_v28 = vmul.f32 %v4098_v14, %v4623_v25  ;;  %v1958_v21 = vsel %vm318_vm1, %v1956_v40, %v7441_v34  ;;  %v4702_v10 = vmul.f32 %v4113_v26, %v4623_v25 }
  0x86   : > { %v1317_v43 = vmax.f32 %v4680_v6, 0.0  ;;  %v2174_v63 = vrot.slane %v2164_v12, 1  ;;  %v1721_v49 = vadd.f32 %v1717_v52, %v1597_v41  ;;  %v84_v32 = vmul.f32 %v4539_v56, %v3961_v1 }
  0x87   : > { %v2175_v2 = vrot.slane %v4692_v3, 1  ;;  %v2336_v31 = vrot.slane %v2326_v28, 2  ;;  %v7440_v14 = vrot.slane %v4702_v10, 2  ;;  %v4710_v62 = vmul.f32 %v4542_v13, %v4129_v48 }
  0x88   : > { %v4714_v15 = vmul.f32 %v4545_v50, %v4129_v48  ;;  %v502_v9 = vmul.f32 %v4007_v19, %v4571_v23  ;;  %v1807_v52 = vadd.f32 %v1796_v22, %v1721_v49  ;;  %v88_v6 = vadd.f32 %v84_v32, %v4532_v30 }
  0x89   : > { %v2176_v40 = vsel %vm143_vm0, %v2174_v63, %v2175_v2  ;;  %v4722_v1 = vmul.f32 %v4152_v27, %v4580_v61  ;;  %v2338_v12 = vsel %vm318_vm1, %v2336_v31, %v7440_v14  ;;  %v176_v41 = vrot.slane %v4710_v62, 1 }
  0x8a   : > { %v351_v3 = vrot.slane %v4714_v15, 2  ;;  %v4731_v28 = vmul.f32 %v4152_v27, %v4595_v58  ;;  %v1969_v22 = vadd.f32 %v1958_v21, %v1807_v52  ;;  %v918_v49 = vmul.f32 %v4041_v37, %v4598_v36 }
  0x8b   : > { %v593_v63 = vrot.slane %v4722_v1, 1  ;;  %v4738_v32 = vmul.f32 %v4172_v47, %v4610_v42  ;;  %v177_v31 = vsel %vm143_vm0, %v174_v11, %v176_v41  ;;  %v4753_v14 = vmul.f32 %v4172_v47, %v4623_v25 }
  0x8c   : > { %v352_v21 = vsel %vm318_vm1, %v349_v0, %v351_v3  ;;  %v767_v52 = vrot.slane %v4731_v28, 2  ;;  %v2101_v34 = vadd.f32 %v2097_v59, %v1969_v22  ;;  %v187_v4 = vadd.f32 %v177_v31, %v88_v6 }
  0x8d   : > { %v594_v53 = vsel %vm143_vm0, %v591_v8, %v593_v63  ;;  %v1009_v11 = vrot.slane %v4738_v32, 1  ;;  %v7444_v0 = vrot.slane %v4753_v14, 2  ;;  %v1346_v59 = vmul.f32 %v4007_v19, %v4539_v56 }
  0x8e   : > { %v768_v5 = vsel %vm318_vm1, %v765_v45, %v767_v52  ;;  %v4771_v6 = vmul.f32 %v4152_v27, %v4542_v13  ;;  %v2187_v20 = vadd.f32 %v2176_v40, %v2101_v34  ;;  %v362_v22 = vadd.f32 %v352_v21, %v187_v4 }
  0x8f   : > { %v1010_v8 = vsel %vm143_vm0, %v1007_v18, %v1009_v11  ;;  %v4780_v54 = vmul.f32 %v4152_v27, %v4545_v50  ;;  %v1184_v19 = vsel %vm318_vm1, %v1181_v46, %v7444_v0  ;;  %v1350_v45 = vadd.f32 %v1346_v59, %v4532_v30 }
  0x90   : > { %v7443_v4 = vrot.slane %v4771_v6, 1  ;;  %v1718_v34 = vmul.f32 %v4041_v37, %v4571_v23  ;;  %v2349_v16 = vadd.f32 %v2338_v12, %v2187_v20  ;;  %v506_v40 = vadd.f32 %v502_v9, %v362_v22  ;;  %v7549_v9 = vld [vmem:[#allocation10_spill] sm:$0xff] }
  0x91   : > { %v1587_v18 = vrot.slane %v4780_v54, 2  ;;  %v4794_v31 = vmul.f32 %v4172_v47, %v4580_v61  ;;  %v4803_v46 = vmul.f32 %v4172_v47, %v4595_v58  ;;  %v2098_v37 = vmul.f32 %v4113_v26, %v4598_v36 }
  0x92   : > { %v1426_v17 = vsel %vm143_vm0, %v1423_v29, %v7443_v4  ;;  %v4809_v12 = vmul.f32 %v7549_v9, %v4610_v42  ;;  %v2465_v21 = vmax.f32 %v2349_v16, 0.0  ;;  %v604_v59 = vadd.f32 %v594_v53, %v506_v40 }
  0x93   : > { %v1436_v20 = vadd.f32 %v1426_v17, %v1350_v45  ;;  %v1588_v57 = vsel %vm318_vm1, %v1585_v60, %v1587_v18  ;;  %v1797_v29 = vrot.slane %v4794_v31, 1  ;;  %v1959_v22 = vrot.slane %v4803_v46, 2 }
  0x94   : > { %v7446_v4 = vrot.slane %v4809_v12, 1  ;;  %v4821_v26 = vmul.f32 %v7549_v9, %v4623_v25  ;;  %v2493_v0 = vmax.f32 %v1317_v43, %v2465_v21  ;;  %v778_v16 = vadd.f32 %v768_v5, %v604_v59 }
  0x95   : > { %v1598_v53 = vadd.f32 %v1588_v57, %v1436_v20  ;;  %v85_v45 = vmul.f32 %v4539_v56, %v4129_v48  ;;  %v7550_v7 = vrot.slane %v4665_v39, 1  ;;  %v7551_v40 = vrot.slane %v4674_v44, 2  ;;  %v7552_v39 = vld [vmem:[#allocation11_spill] sm:$0xff] }
  0x96   : > { %v2178_v43 = vsel %vm143_vm0, %v2175_v2, %v7446_v4  ;;  %v7445_v5 = vrot.slane %v4821_v26, 2  ;;  %2497 = vst [vmem:[#allocation2 + $0x20] sm:$0xff] %v2493_v0  ;;  %v922_v48 = vadd.f32 %v918_v49, %v778_v16  ;;  %v4842_v20 = vmul.f32 %v4542_v13, %v7552_v39 }
  0x97   : > { %v1798_v60 = vsel %vm143_vm0, %v7550_v7, %v1797_v29  ;;  %v1960_v17 = vsel %vm318_vm1, %v7551_v40, %v1959_v22  ;;  %v1722_v21 = vadd.f32 %v1718_v34, %v1598_v53  ;;  %v89_v59 = vadd.f32 %v85_v45, %v4532_v30 }
  0x98   : > { %v7553_v44 = vrot.slane %v4702_v10, 2  ;;  %v4851_v2 = vmul.f32 %v4545_v50, %v7552_v39  ;;  %v503_v49 = vmul.f32 %v4152_v27, %v4571_v23  ;;  %v4857_v0 = vmul.f32 %v4298_v24, %v4580_v61 }
  0x99   : > { %v1020_v34 = vadd.f32 %v1010_v8, %v922_v48  ;;  %v1808_v16 = vadd.f32 %v1798_v60, %v1722_v21  ;;  %v178_v53 = vrot.slane %v4842_v20, 1  ;;  %v4862_v10 = vmul.f32 %v4298_v24, %v4595_v58 }
  0x9a   : > { %v2340_v57 = vsel %vm318_vm1, %v7553_v44, %v7445_v5  ;;  %v353_v45 = vrot.slane %v4851_v2, 2  ;;  %v595_v7 = vrot.slane %v4857_v0, 1  ;;  %v919_v40 = vmul.f32 %v4172_v47, %v4598_v36 }
  0x9b   : > { %v4870_v44 = vmul.f32 %v4318_v38, %v4610_v42  ;;  %v1194_v5 = vadd.f32 %v1184_v19, %v1020_v34  ;;  %v1970_v8 = vadd.f32 %v1960_v17, %v1808_v16  ;;  %v179_v60 = vsel %vm143_vm0, %v176_v41, %v178_v53 }
  0x9c   : > { %v769_v48 = vrot.slane %v4862_v10, 2  ;;  %v188_v21 = vadd.f32 %v179_v60, %v89_v59  ;;  %v354_v4 = vsel %vm318_vm1, %v351_v3, %v353_v45  ;;  %v596_v19 = vsel %vm143_vm0, %v593_v63, %v595_v7 }
  0x9d   : > { %v1011_v17 = vrot.slane %v4870_v44, 1  ;;  %v1318_v62 = vmax.f32 %v1194_v5, 0.0  ;;  %v2102_v34 = vadd.f32 %v2098_v37, %v1970_v8  ;;  %v4896_v15 = vmul.f32 %v4318_v38, %v4623_v25 }
  0x9e   : > { %v770_v41 = vsel %vm318_vm1, %v767_v52, %v769_v48  ;;  %v363_v3 = vadd.f32 %v354_v4, %v188_v21  ;;  %v1347_v63 = vmul.f32 %v4152_v27, %v4539_v56  ;;  %v4907_v37 = vmul.f32 %v4298_v24, %v4542_v13 }
  0x9f   : > { %v1012_v1 = vsel %vm143_vm0, %v1009_v11, %v1011_v17  ;;  %v2188_v28 = vadd.f32 %v2178_v43, %v2102_v34  ;;  %v1185_v52 = vrot.slane %v4896_v15, 2  ;;  %v4912_v5 = vmul.f32 %v4298_v24, %v4545_v50 }
  0xa0   : > { %v1719_v4 = vmul.f32 %v4172_v47, %v4571_v23  ;;  %v507_v32 = vadd.f32 %v503_v49, %v363_v3  ;;  %v1351_v11 = vadd.f32 %v1347_v63, %v4532_v30  ;;  %v1427_v59 = vrot.slane %v4907_v37, 1 }
  0xa1   : > { %v4920_v27 = vmul.f32 %v4318_v38, %v4580_v61  ;;  %v2350_v16 = vadd.f32 %v2340_v57, %v2188_v28  ;;  %v7554_v43 = vrot.slane %v4753_v14, 2  ;;  %v1589_v60 = vrot.slane %v4912_v5, 2 }
  0xa2   : > { %v4930_v47 = vmul.f32 %v4318_v38, %v4595_v58  ;;  %v605_v49 = vadd.f32 %v596_v19, %v507_v32  ;;  %v7555_v21 = vrot.slane %v4771_v6, 1  ;;  %v2099_v14 = vmul.f32 %v7549_v9, %v4598_v36 }
  0xa3   : > { %v1186_v8 = vsel %vm318_vm1, %v7554_v43, %v1185_v52  ;;  %v1799_v57 = vrot.slane %v4920_v27, 1  ;;  %v2466_v3 = vmax.f32 %v2350_v16, 0.0  ;;  %v1590_v28 = vsel %vm318_vm1, %v1587_v18, %v1589_v60 }
  0xa4   : > { %v1428_v34 = vsel %vm143_vm0, %v7555_v21, %v1427_v59  ;;  %v1961_v19 = vrot.slane %v4930_v47, 2  ;;  %v779_v32 = vadd.f32 %v770_v41, %v605_v49  ;;  %v4953_v9 = vmul.f32 %v4378_v51, %v4610_v42  ;;  %v7556_v49 = vld [vmem:[#allocation12_spill] sm:$0xff] }
  0xa5   : > { %v1437_v63 = vadd.f32 %v1428_v34, %v1351_v11  ;;  %v1800_v6 = vsel %vm143_vm0, %v1797_v29, %v1799_v57  ;;  %v4957_v11 = vmul.f32 %v4378_v51, %v4623_v25  ;;  %v2494_v54 = vmax.f32 %v1318_v62, %v2466_v3 }
  0xa6   : > { %v1962_v18 = vsel %vm318_vm1, %v1959_v22, %v1961_v19  ;;  %v86_v31 = vmul.f32 %v4539_v56, %v7552_v39  ;;  %v923_v29 = vadd.f32 %v919_v40, %v779_v32  ;;  %v2179_v41 = vrot.slane %v4953_v9, 1 }
  0xa7   : > { %v1599_v16 = vadd.f32 %v1590_v28, %v1437_v63  ;;  %v2341_v43 = vrot.slane %v4957_v11, 2  ;;  %v167_v21 = vmul.f32 %v4542_v13, %v7556_v49  ;;  %2498 = vst [vmem:[#allocation2 + $0x28] sm:$0xff] %v2494_v54  ;;  %v342_v46 = vmul.f32 %v4545_v50, %v7556_v49 }
  0xa8   : > { %v90_v34 = vadd.f32 %v86_v31, %v4532_v30  ;;  %v504_v22 = vmul.f32 %v4298_v24, %v4571_v23  ;;  %v1021_v3 = vadd.f32 %v1012_v1, %v923_v29  ;;  %v7557_v39 = vrot.slane %v4809_v12, 1 }
  0xa9   : > { %v1723_v62 = vadd.f32 %v1719_v4, %v1599_v16  ;;  %v7558_v63 = vrot.slane %v4821_v26, 2  ;;  %v180_v28 = vrot.slane %v167_v21, 1  ;;  %v355_v54 = vrot.slane %v342_v46, 2 }
  0xaa   : > { %v2180_v40 = vsel %vm143_vm0, %v7557_v39, %v2179_v41  ;;  %v584_v16 = vmul.f32 %v4445_v55, %v4580_v61  ;;  %v758_v1 = vmul.f32 %v4445_v55, %v4595_v58  ;;  %v1195_v31 = vadd.f32 %v1186_v8, %v1021_v3 }
  0xab   : > { %v2342_v4 = vsel %vm318_vm1, %v7558_v63, %v2341_v43  ;;  %v1809_v32 = vadd.f32 %v1800_v6, %v1723_v62  ;;  %v181_v12 = vsel %vm143_vm0, %v178_v53, %v180_v28  ;;  %v920_v29 = vmul.f32 %v4318_v38, %v4598_v36 }
  0xac   : > { %v1000_v26 = vmul.f32 %v4459_v33, %v4610_v42  ;;  %v189_v6 = vadd.f32 %v181_v12, %v90_v34  ;;  %v356_v21 = vsel %vm318_vm1, %v353_v45, %v355_v54  ;;  %v597_v62 = vrot.slane %v584_v16, 1 }
  0xad   : > { %v1971_v49 = vadd.f32 %v1962_v18, %v1809_v32  ;;  %v1319_v46 = vmax.f32 %v1195_v31, 0.0  ;;  %v771_v39 = vrot.slane %v758_v1, 2  ;;  %v1174_v20 = vmul.f32 %v4459_v33, %v4623_v25  ;;  %v5070_v32 = vld [vmem:[%s3955_s10] sm:$0xff] }
  0xae   : > { %v1013_v8 = vrot.slane %v1000_v26, 1  ;;  %v364_v3 = vadd.f32 %v356_v21, %v189_v6  ;;  %v598_v63 = vsel %vm143_vm0, %v595_v7, %v597_v62  ;;  %v1348_v18 = vmul.f32 %v4298_v24, %v4539_v56 }
  0xaf   : > { %v2103_v53 = vadd.f32 %v2099_v14, %v1971_v49  ;;  %v772_v2 = vsel %vm318_vm1, %v769_v48, %v771_v39  ;;  %v1187_v34 = vrot.slane %v1174_v20, 2  ;;  %v1416_v14 = vmul.f32 %v4445_v55, %v4542_v13  ;;  %v5108_v39 = vld [vmem:[%s3955_s10 + $0x28] sm:$0xff] }
  0xb0   : > { %v1014_v45 = vsel %vm143_vm0, %v1011_v17, %v1013_v8  ;;  %v508_v7 = vadd.f32 %v504_v22, %v364_v3  ;;  %v1352_v24 = vadd.f32 %v1348_v18, %v4532_v30  ;;  %v1578_v56 = vmul.f32 %v4445_v55, %v4545_v50 }
  0xb1   : > { %v2189_v0 = vadd.f32 %v2180_v40, %v2103_v53  ;;  %v1188_v10 = vsel %vm318_vm1, %v1185_v52, %v1187_v34  ;;  %v1429_v44 = vrot.slane %v1416_v14, 1  ;;  %v1720_v48 = vmul.f32 %v4318_v38, %v4571_v23  ;;  %v5125_v34 = vld [vmem:[%s3955_s10 + $0x30] sm:$0xff] }
  0xb2   : > { %v1788_v13 = vmul.f32 %v4459_v33, %v4580_v61  ;;  %v606_v30 = vadd.f32 %v598_v63, %v508_v7  ;;  %v1591_v22 = vrot.slane %v1578_v56, 2  ;;  %v1950_v55 = vmul.f32 %v4459_v33, %v4595_v58 }
  0xb3   : > { %v2351_v17 = vadd.f32 %v2342_v4, %v2189_v0  ;;  %v1430_v50 = vsel %vm143_vm0, %v1427_v59, %v1429_v44  ;;  %v2100_v52 = vmul.f32 %v4378_v51, %v4598_v36  ;;  %v2168_v38 = vmul.f32 %v4507_v35, %v4610_v42 }
  0xb4   : > { %v1801_v15 = vrot.slane %v1788_v13, 1  ;;  %v780_v61 = vadd.f32 %v772_v2, %v606_v30  ;;  %v1438_v40 = vadd.f32 %v1430_v50, %v1352_v24  ;;  %v1592_v33 = vsel %vm318_vm1, %v1589_v60, %v1591_v22  ;;  %v5146_v22 = vld [vmem:[%s3955_s10 + $0x50] sm:$0xff] }
  0xb5   : > { %v2467_v23 = vmax.f32 %v2351_v17, 0.0  ;;  %v1963_v37 = vrot.slane %v1950_v55, 2  ;;  %v2181_v51 = vrot.slane %v2168_v38, 1  ;;  %v2330_v36 = vmul.f32 %v4507_v35, %v4623_v25 }
  0xb6   : > { %v1802_v58 = vsel %vm143_vm0, %v1799_v57, %v1801_v15  ;;  %v924_v59 = vadd.f32 %v920_v29, %v780_v61  ;;  %v1600_v5 = vadd.f32 %v1592_v33, %v1438_v40  ;;  %v5056_v60 = vstv %s5006_s26  ;;  %v5162_v40 = vld [vmem:[%s3955_s10 + $0x58] sm:$0xff]  ;;  %s6167_s26 = sld [smem:[#allocation4 + $0x28]] }
  0xb7   : > { %v2495_v42 = vmax.f32 %v1319_v46, %v2467_v23  ;;  %v1964_v27 = vsel %vm318_vm1, %v1961_v19, %v1963_v37  ;;  %v2182_v35 = vsel %vm143_vm0, %v2179_v41, %v2181_v51  ;;  %v2343_v25 = vrot.slane %v2330_v36, 2  ;;  %v5083_v41 = vld [vmem:[%s3955_s10 + $0x8] sm:$0xff] }
  0xb8   : > { %v5065_v57 = vstv %s5016_s1  ;;  %v1022_v4 = vadd.f32 %v1014_v45, %v924_v59  ;;  %v1724_v28 = vadd.f32 %v1720_v48, %v1600_v5  ;;  %v5075_v54 = vstv %s5021_s27  ;;  %s6169_s1 = sld [smem:[#allocation4 + $0x29]]  ;;  %s6183_s27 = sld [smem:[#allocation4 + $0x2a]] }
  0xb9   : > { %2499 = vst [vmem:[#allocation2 + $0x30] sm:$0xff] %v2495_v42  ;;  %v93_v47 = vmul.f32 %v5070_v32, %v5065_v57  ;;  %v2344_v19 = vsel %vm318_vm1, %v2341_v43, %v2343_v25  ;;  %v192_v9 = vmul.f32 %v5070_v32, %v5075_v54  ;;  %v5087_v16 = vmul.f32 %v5083_v41, %v5075_v54 }
  0xba   : > { %v5090_v1 = vstv %s5030_s28  ;;  %v1196_v31 = vadd.f32 %v1188_v10, %v1022_v4  ;;  %v1810_v12 = vadd.f32 %v1802_v58, %v1724_v28  ;;  %v5103_v6 = vstv %s5041_s29  ;;  %s6208_s28 = sld [smem:[#allocation4 + $0x2b]]  ;;  %s6221_s29 = sld [smem:[#allocation4 + $0x2c]] }
  0xbb   : > { %v97_v11 = vadd.f32 %v93_v47, %v5056_v60  ;;  %v367_v43 = vmul.f32 %v5070_v32, %v5090_v1  ;;  %v202_v29 = vrot.slane %v192_v9, 1  ;;  %v203_v26 = vrot.slane %v5087_v16, 1 }
  0xbc   : > { %v5100_v49 = vmul.f32 %v5083_v41, %v5090_v1  ;;  %v1320_v21 = vmax.f32 %v1196_v31, 0.0  ;;  %v1972_v62 = vadd.f32 %v1964_v27, %v1810_v12  ;;  %v511_v8 = vmul.f32 %v5108_v39, %v5103_v6 }
  0xbd   : > { %v377_v46 = vrot.slane %v367_v43, 2  ;;  %v204_v20 = vsel %vm143_vm0, %v202_v29, %v203_v26  ;;  %v5117_v3 = vstv %s5051_s30  ;;  %v5120_v63 = vstv %s5053_s6  ;;  %s6711_s30 = sld [smem:[#allocation6 + $0x5]] }
  0xbe   : > { %v378_v53 = vrot.slane %v5100_v49, 2  ;;  %v2104_v18 = vadd.f32 %v2100_v52, %v1972_v62  ;;  %v215_v2 = vadd.f32 %v204_v20, %v97_v11  ;;  %v609_v45 = vmul.f32 %v5108_v39, %v5117_v3  ;;  %s6717_s6 = sld [smem:[#allocation4 + $0x2d]] }
  0xbf   : > { %v5129_v14 = vmul.f32 %v5125_v34, %v5117_v3  ;;  %v783_v7 = vmul.f32 %v5108_v39, %v5120_v63  ;;  %v5138_v24 = vmul.f32 %v5125_v34, %v5120_v63  ;;  %v5141_v56 = vstv %s5067_s7  ;;  %s6726_s7 = sld [smem:[#allocation4 + $0x2e]] }
  0xc0   : > { %v379_v0 = vsel %vm318_vm1, %v377_v46, %v378_v53  ;;  %v2190_v10 = vadd.f32 %v2182_v35, %v2104_v18  ;;  %v619_v48 = vrot.slane %v609_v45, 1  ;;  %v927_v55 = vmul.f32 %v5146_v22, %v5141_v56 }
  0xc1   : > { %v390_v44 = vadd.f32 %v379_v0, %v215_v2  ;;  %v620_v13 = vrot.slane %v5129_v14, 1  ;;  %v793_v17 = vrot.slane %v783_v7, 2  ;;  %v794_v30 = vrot.slane %v5138_v24, 2 }
  0xc2   : > { %v5151_v50 = vstv %s5092_s8  ;;  %v2352_v15 = vadd.f32 %v2344_v19, %v2190_v10  ;;  %v5169_v58 = vstv %s5105_s9  ;;  %v1353_v37 = vmul.f32 %v5108_v39, %v5065_v57  ;;  %s6728_s8 = sld [smem:[#allocation4 + $0x2f]]  ;;  %s6743_s9 = sld [smem:[#allocation4 + $0x30]] }
  0xc3   : > { %v515_v52 = vadd.f32 %v511_v8, %v390_v44  ;;  %v621_v38 = vsel %vm143_vm0, %v619_v48, %v620_v13  ;;  %v1025_v23 = vmul.f32 %v5146_v22, %v5151_v50  ;;  %v795_v61 = vsel %vm318_vm1, %v793_v17, %v794_v30 }
  0xc4   : > { %v5166_v33 = vmul.f32 %v5162_v40, %v5151_v50  ;;  %v2468_v51 = vmax.f32 %v2352_v15, 0.0  ;;  %v1199_v59 = vmul.f32 %v5146_v22, %v5169_v58  ;;  %v5178_v27 = vmul.f32 %v5162_v40, %v5169_v58 }
  0xc5   : > { %v632_v36 = vadd.f32 %v621_v38, %v515_v52  ;;  %v1035_v42 = vrot.slane %v1025_v23, 1  ;;  %v1357_v35 = vadd.f32 %v1353_v37, %v5056_v60  ;;  %v1439_v25 = vmul.f32 %v5108_v39, %v5075_v54  ;;  %v5226_v38 = vld [vmem:[%s3955_s10 + $0x78] sm:$0xff] }
  0xc6   : > { %v1036_v5 = vrot.slane %v5166_v33, 1  ;;  %v2496_v4 = vmax.f32 %v1320_v21, %v2468_v51  ;;  %v1209_v47 = vrot.slane %v1199_v59, 2  ;;  %v5185_v19 = vmul.f32 %v5125_v34, %v5075_v54  ;;  %v5238_v59 = vld [vmem:[%s3955_s10 + $0x80] sm:$0xff] }
  0xc7   : > { %v806_v28 = vadd.f32 %v795_v61, %v632_v36  ;;  %v1210_v31 = vrot.slane %v5178_v27, 2  ;;  %v1449_v12 = vrot.slane %v1439_v25, 1  ;;  %v1601_v11 = vmul.f32 %v5108_v39, %v5090_v1 }
  0xc8   : > { %v1037_v9 = vsel %vm143_vm0, %v1035_v42, %v1036_v5  ;;  %2500 = vst [vmem:[#allocation2 + $0x38] sm:$0xff] %v2496_v4  ;;  %v1450_v29 = vrot.slane %v5185_v19, 1  ;;  %v5196_v21 = vmul.f32 %v5125_v34, %v5090_v1  ;;  %v1725_v62 = vmul.f32 %v5146_v22, %v5103_v6 }
  0xc9   : > { %v931_v43 = vadd.f32 %v927_v55, %v806_v28  ;;  %v1211_v46 = vsel %vm318_vm1, %v1209_v47, %v1210_v31  ;;  %v1611_v8 = vrot.slane %v1601_v11, 2  ;;  %v1811_v20 = vmul.f32 %v5146_v22, %v5117_v3 }
  0xca   : > { %v5207_v18 = vmul.f32 %v5162_v40, %v5117_v3  ;;  %v1451_v45 = vsel %vm143_vm0, %v1449_v12, %v1450_v29  ;;  %v1612_v0 = vrot.slane %v5196_v21, 2  ;;  %v1973_v7 = vmul.f32 %v5146_v22, %v5120_v63 }
  0xcb   : > { %v1048_v2 = vadd.f32 %v1037_v9, %v931_v43  ;;  %v1462_v10 = vadd.f32 %v1451_v45, %v1357_v35  ;;  %v1821_v44 = vrot.slane %v1811_v20, 1  ;;  %v5218_v17 = vmul.f32 %v5162_v40, %v5120_v63 }
  0xcc   : > { %v7451_v48 = vrot.slane %v5207_v18, 1  ;;  %v1613_v15 = vsel %vm318_vm1, %v1611_v8, %v1612_v0  ;;  %v1983_v52 = vrot.slane %v1973_v7, 2  ;;  %v2105_v23 = vmul.f32 %v5226_v38, %v5141_v56  ;;  %v5258_v8 = vld [vmem:[%s3955_s10 + $0x10] sm:$0xff] }
  0xcd   : > { %v5220_v55 = vadd.f32 %v1211_v46, %v1048_v2  ;;  %v1624_v61 = vadd.f32 %v1613_v15, %v1462_v10  ;;  %v7450_v51 = vrot.slane %v5218_v17, 2  ;;  %v2191_v36 = vmul.f32 %v5226_v38, %v5151_v50 }
  0xce   : > { %v1823_v37 = vsel %vm143_vm0, %v1821_v44, %v7451_v48  ;;  %v5242_v35 = vmul.f32 %v5238_v59, %v5151_v50  ;;  %v2353_v25 = vmul.f32 %v5226_v38, %v5169_v58  ;;  %v5248_v4 = vmul.f32 %v5238_v59, %v5169_v58 }
  0xcf   : > { %v1321_v42 = vmax.f32 %v5220_v55, 0.0  ;;  %v1729_v28 = vadd.f32 %v1725_v62, %v1624_v61  ;;  %v1985_v47 = vsel %vm318_vm1, %v1983_v52, %v7450_v51  ;;  %v2201_v9 = vrot.slane %v2191_v36, 1  ;;  %v5279_v52 = vld [vmem:[%s3955_s10 + $0x38] sm:$0xff] }
  0xd0   : > { %v94_v12 = vmul.f32 %v5083_v41, %v5065_v57  ;;  %v7448_v11 = vrot.slane %v5242_v35, 1  ;;  %v2363_v43 = vrot.slane %v2353_v25, 2  ;;  %v7447_v46 = vrot.slane %v5248_v4, 2 }
  0xd1   : > { %v5262_v20 = vmul.f32 %v5258_v8, %v5075_v54  ;;  %v1834_v62 = vadd.f32 %v1823_v37, %v1729_v28  ;;  %v5267_v45 = vmul.f32 %v5258_v8, %v5090_v1  ;;  %v512_v7 = vmul.f32 %v5125_v34, %v5103_v6 }
  0xd2   : > { %v98_v2 = vadd.f32 %v94_v12, %v5056_v60  ;;  %v2203_v10 = vsel %vm143_vm0, %v2201_v9, %v7448_v11  ;;  %v2365_v44 = vsel %vm318_vm1, %v2363_v43, %v7447_v46  ;;  %v5283_v61 = vmul.f32 %v5279_v52, %v5117_v3  ;;  %v5299_v43 = vld [vmem:[%s3955_s10 + $0x60] sm:$0xff] }
  0xd3   : > { %v7449_v15 = vrot.slane %v5262_v20, 1  ;;  %v1996_v37 = vadd.f32 %v1985_v47, %v1834_v62  ;;  %v380_v36 = vrot.slane %v5267_v45, 2  ;;  %v5288_v25 = vmul.f32 %v5279_v52, %v5120_v63 }
  0xd4   : > { %v928_v28 = vmul.f32 %v5162_v40, %v5141_v56  ;;  %v622_v12 = vrot.slane %v5283_v61, 1  ;;  %v5303_v47 = vmul.f32 %v5299_v43, %v5151_v50  ;;  %v5307_v62 = vmul.f32 %v5299_v43, %v5169_v58 }
  0xd5   : > { %v206_v9 = vsel %vm143_vm0, %v203_v26, %v7449_v15  ;;  %v2109_v46 = vadd.f32 %v2105_v23, %v1996_v37  ;;  %v381_v16 = vsel %vm318_vm1, %v378_v53, %v380_v36  ;;  %v796_v26 = vrot.slane %v5288_v25, 2 }
  0xd6   : > { %v216_v11 = vadd.f32 %v206_v9, %v98_v2  ;;  %v623_v15 = vsel %vm143_vm0, %v620_v13, %v622_v12  ;;  %v1038_v51 = vrot.slane %v5303_v47, 1  ;;  %v7458_v48 = vrot.slane %v5307_v62, 2 }
  0xd7   : > { %v1354_v23 = vmul.f32 %v5125_v34, %v5065_v57  ;;  %v2214_v2 = vadd.f32 %v2203_v10, %v2109_v46  ;;  %v797_v49 = vsel %vm318_vm1, %v794_v30, %v796_v26  ;;  %v5331_v53 = vmul.f32 %v5279_v52, %v5075_v54 }
  0xd8   : > { %v391_v37 = vadd.f32 %v381_v16, %v216_v11  ;;  %v1039_v14 = vsel %vm143_vm0, %v1036_v5, %v1038_v51  ;;  %v1213_v13 = vsel %vm318_vm1, %v1210_v31, %v7458_v48  ;;  %v5346_v30 = vmul.f32 %v5279_v52, %v5090_v1 }
  0xd9   : > { %v1358_v24 = vadd.f32 %v1354_v23, %v5056_v60  ;;  %v2376_v11 = vadd.f32 %v2365_v44, %v2214_v2  ;;  %v7452_v10 = vrot.slane %v5331_v53, 1  ;;  %v1726_v33 = vmul.f32 %v5162_v40, %v5103_v6  ;;  %v5368_v23 = vld [vmem:[%s3955_s10 + $0x88] sm:$0xff] }
  0xda   : > { %v516_v46 = vadd.f32 %v512_v7, %v391_v37  ;;  %v7453_v5 = vrot.slane %v5346_v30, 2  ;;  %v5354_v27 = vmul.f32 %v5299_v43, %v5117_v3  ;;  %v5358_v31 = vmul.f32 %v5299_v43, %v5120_v63  ;;  %7559 = vst [vmem:[#allocation10_spill] sm:$0xff] %v5368_v23 }
  0xdb   : > { %v2106_v9 = vmul.f32 %v5238_v59, %v5141_v56  ;;  %v2469_v44 = vmax.f32 %v2376_v11, 0.0  ;;  %v1453_v16 = vsel %vm143_vm0, %v1450_v29, %v7452_v10  ;;  %v5372_v2 = vmul.f32 %v5368_v23, %v5151_v50 }
  0xdc   : > { %v633_v7 = vadd.f32 %v623_v15, %v516_v46  ;;  %v1463_v37 = vadd.f32 %v1453_v16, %v1358_v24  ;;  %v1615_v15 = vsel %vm318_vm1, %v1612_v0, %v7453_v5  ;;  %v7457_v11 = vrot.slane %v5354_v27, 1 }
  0xdd   : > { %v7456_v19 = vrot.slane %v5358_v31, 2  ;;  %v2501_v29 = vmax.f32 %v1321_v42, %v2469_v44  ;;  %v7454_v10 = vrot.slane %v5372_v2, 1  ;;  %v5386_v24 = vmul.f32 %v5368_v23, %v5169_v58 }
  0xde   : > { %v807_v46 = vadd.f32 %v797_v49, %v633_v7  ;;  %v1625_v16 = vadd.f32 %v1615_v15, %v1463_v37  ;;  %v7560_v21 = vrot.slane %v5207_v18, 1  ;;  %v7561_v5 = vrot.slane %v5218_v17, 2  ;;  %v5407_v37 = vld [vmem:[%s3955_s10 + $0x18] sm:$0xff] }
  0xdf   : > { %v95_v42 = vmul.f32 %v5258_v8, %v5065_v57  ;;  %2505 = vst [vmem:[#allocation2 + $0x40] sm:$0xff] %v2501_v29  ;;  %v7562_v44 = vrot.slane %v5242_v35, 1  ;;  %v7455_v7 = vrot.slane %v5386_v24, 2  ;;  %7563 = vst [vmem:[#allocation11_spill] sm:$0xff] %v5407_v37  ;;  %v5411_v17 = vmul.f32 %v5407_v37, %v5075_v54 }
  0xe0   : > { %v1825_v0 = vsel %vm143_vm0, %v7560_v21, %v7457_v11  ;;  %v1987_v55 = vsel %vm318_vm1, %v7561_v5, %v7456_v19  ;;  %v932_v49 = vadd.f32 %v928_v28, %v807_v46  ;;  %v1730_v5 = vadd.f32 %v1726_v33, %v1625_v16  ;;  %v5427_v33 = vld [vmem:[%s3955_s10 + $0x40] sm:$0xff]  ;;  %v5447_v11 = vld [vmem:[%s3955_s10 + $0x68] sm:$0xff] }
  0xe1   : > { %v2205_v18 = vsel %vm143_vm0, %v7562_v44, %v7454_v10  ;;  %v99_v15 = vadd.f32 %v95_v42, %v5056_v60  ;;  %v5416_v28 = vmul.f32 %v5407_v37, %v5090_v1  ;;  %v513_v35 = vmul.f32 %v5279_v52, %v5103_v6 }
  0xe2   : > { %v1049_v29 = vadd.f32 %v1039_v14, %v932_v49  ;;  %v7564_v46 = vrot.slane %v5248_v4, 2  ;;  %v7459_v44 = vrot.slane %v5411_v17, 1  ;;  %v5431_v16 = vmul.f32 %v5427_v33, %v5117_v3 }
  0xe3   : > { %v1835_v42 = vadd.f32 %v1825_v0, %v1730_v5  ;;  %v7467_v10 = vrot.slane %v5416_v28, 2  ;;  %v5436_v14 = vmul.f32 %v5427_v33, %v5120_v63  ;;  %v929_v4 = vmul.f32 %v5299_v43, %v5141_v56 }
  0xe4   : > { %v2367_v21 = vsel %vm318_vm1, %v7564_v46, %v7455_v7  ;;  %v1223_v49 = vadd.f32 %v1213_v13, %v1049_v29  ;;  %v7565_v46 = vrot.slane %v5262_v20, 1  ;;  %v7465_v19 = vrot.slane %v5431_v16, 1 }
  0xe5   : > { %v5451_v0 = vmul.f32 %v5447_v11, %v5151_v50  ;;  %v1997_v5 = vadd.f32 %v1987_v55, %v1835_v42  ;;  %v383_v13 = vsel %vm318_vm1, %v380_v36, %v7467_v10  ;;  %v7462_v20 = vrot.slane %v5436_v14, 2 }
  0xe6   : > { %v208_v7 = vsel %vm143_vm0, %v7565_v46, %v7459_v44  ;;  %v1322_v29 = vmax.f32 %v1223_v49, 0.0  ;;  %v625_v46 = vsel %vm143_vm0, %v622_v12, %v7465_v19  ;;  %v5467_v55 = vmul.f32 %v5447_v11, %v5169_v58 }
  0xe7   : > { %v217_v48 = vadd.f32 %v208_v7, %v99_v15  ;;  %v7460_v44 = vrot.slane %v5451_v0, 1  ;;  %v2110_v7 = vadd.f32 %v2106_v9, %v1997_v5  ;;  %v799_v45 = vsel %vm318_vm1, %v796_v26, %v7462_v20 }
  0xe8   : > { %v1355_v36 = vmul.f32 %v5279_v52, %v5065_v57  ;;  %v7461_v12 = vrot.slane %v5467_v55, 2  ;;  %v5488_v25 = vmul.f32 %v5427_v33, %v5090_v1  ;;  %v1727_v47 = vmul.f32 %v5299_v43, %v5103_v6 }
  0xe9   : > { %v392_v15 = vadd.f32 %v383_v13, %v217_v48  ;;  %v1041_v61 = vsel %vm143_vm0, %v1038_v51, %v7460_v44  ;;  %v5484_v48 = vmul.f32 %v5427_v33, %v5075_v54  ;;  %v2215_v26 = vadd.f32 %v2205_v18, %v2110_v7 }
  0xea   : > { %v1359_v42 = vadd.f32 %v1355_v36, %v5056_v60  ;;  %v7566_v51 = vrot.slane %v5307_v62, 2  ;;  %v7463_v13 = vrot.slane %v5488_v25, 2  ;;  %v5502_v44 = vmul.f32 %v5447_v11, %v5117_v3 }
  0xeb   : > { %v517_v9 = vadd.f32 %v513_v35, %v392_v15  ;;  %v7464_v5 = vrot.slane %v5484_v48, 1  ;;  %v2377_v18 = vadd.f32 %v2367_v21, %v2215_v26  ;;  %v5506_v7 = vmul.f32 %v5447_v11, %v5120_v63  ;;  %v5522_v26 = vld [vmem:[%s3955_s10 + $0x90] sm:$0xff] }
  0xec   : > { %v1215_v49 = vsel %vm318_vm1, %v7566_v51, %v7461_v12  ;;  %v2107_v15 = vmul.f32 %v5368_v23, %v5141_v56  ;;  %v7567_v62 = vrot.slane %v5331_v53, 1  ;;  %v7568_v51 = vrot.slane %v5346_v30, 2 }
  0xed   : > { %v634_v35 = vadd.f32 %v625_v46, %v517_v9  ;;  %v7466_v46 = vrot.slane %v5502_v44, 1  ;;  %v5526_v9 = vmul.f32 %v5522_v26, %v5151_v50  ;;  %v2470_v12 = vmax.f32 %v2377_v18, 0.0 }
  0xee   : > { %v1455_v36 = vsel %vm143_vm0, %v7567_v62, %v7464_v5  ;;  %v1617_v21 = vsel %vm318_vm1, %v7568_v51, %v7463_v13  ;;  %v7470_v62 = vrot.slane %v5506_v7, 2  ;;  %v7569_v30 = vrot.slane %v5354_v27, 1 }
  0xef   : > { %v808_v20 = vadd.f32 %v799_v45, %v634_v35  ;;  %v1464_v53 = vadd.f32 %v1455_v36, %v1359_v42  ;;  %v7468_v13 = vrot.slane %v5526_v9, 1  ;;  %v5537_v5 = vmul.f32 %v5522_v26, %v5169_v58 }
  0xf0   : > { %v1827_v51 = vsel %vm143_vm0, %v7569_v30, %v7466_v46  ;;  %v96_v19 = vmul.f32 %v5407_v37, %v5065_v57  ;;  %v2502_v18 = vmax.f32 %v1322_v29, %v2470_v12  ;;  %v7570_v35 = vrot.slane %v5358_v31, 2  ;;  %v5554_v29 = vld [vmem:[%s3955_s10 + $0x20] sm:$0xff] }
  0xf1   : > { %v933_v45 = vadd.f32 %v929_v4, %v808_v20  ;;  %v1626_v42 = vadd.f32 %v1617_v21, %v1464_v53  ;;  %v7571_v36 = vrot.slane %v5372_v2, 1  ;;  %v7469_v46 = vrot.slane %v5537_v5, 2  ;;  %7572 = vst [vmem:[#allocation12_spill] sm:$0xff] %v5554_v29 }
  0xf2   : > { %v1989_v27 = vsel %vm318_vm1, %v7570_v35, %v7470_v62  ;;  %v100_v10 = vadd.f32 %v96_v19, %v5056_v60  ;;  %v196_v4 = vmul.f32 %v5554_v29, %v5075_v54  ;;  %2506 = vst [vmem:[#allocation2 + $0x48] sm:$0xff] %v2502_v18  ;;  %v371_v12 = vmul.f32 %v5554_v29, %v5090_v1  ;;  %v5568_v35 = vld [vmem:[%s3955_s10 + $0x48] sm:$0xff] }
  0xf3   : > { %v2207_v30 = vsel %vm143_vm0, %v7571_v36, %v7468_v13  ;;  %v1050_v20 = vadd.f32 %v1041_v61, %v933_v45  ;;  %v1731_v31 = vadd.f32 %v1727_v47, %v1626_v42  ;;  %v514_v2 = vmul.f32 %v5427_v33, %v5103_v6 }
  0xf4   : > { %v7573_v21 = vrot.slane %v5386_v24, 2  ;;  %v209_v53 = vrot.slane %v196_v4, 1  ;;  %v613_v61 = vmul.f32 %v5568_v35, %v5117_v3  ;;  %v787_v47 = vmul.f32 %v5568_v35, %v5120_v63 }
  0xf5   : > { %v1224_v18 = vadd.f32 %v1215_v49, %v1050_v20  ;;  %v1836_v45 = vadd.f32 %v1827_v51, %v1731_v31  ;;  %v384_v42 = vrot.slane %v371_v12, 2  ;;  %v930_v36 = vmul.f32 %v5447_v11, %v5141_v56 }
  0xf6   : > { %v2369_v19 = vsel %vm318_vm1, %v7573_v21, %v7469_v46  ;;  %v7574_v13 = vrot.slane %v5411_v17, 1  ;;  %v626_v21 = vrot.slane %v613_v61, 1  ;;  %v800_v4 = vrot.slane %v787_v47, 2  ;;  %v5580_v46 = vld [vmem:[%s3955_s10 + $0x70] sm:$0xff] }
  0xf7   : > { %v1029_v62 = vmul.f32 %v5580_v46, %v5151_v50  ;;  %v1323_v29 = vmax.f32 %v1224_v18, 0.0  ;;  %v1998_v37 = vadd.f32 %v1989_v27, %v1836_v45  ;;  %v7575_v49 = vrot.slane %v5416_v28, 2 }
  0xf8   : > { %v210_v24 = vsel %vm143_vm0, %v7574_v13, %v209_v53  ;;  %v7576_v20 = vrot.slane %v5431_v16, 1  ;;  %v7577_v13 = vrot.slane %v5436_v14, 2  ;;  %v1203_v53 = vmul.f32 %v5580_v46, %v5169_v58 }
  0xf9   : > { %v218_v23 = vadd.f32 %v210_v24, %v100_v10  ;;  %v385_v51 = vsel %vm318_vm1, %v7575_v49, %v384_v42  ;;  %v1042_v12 = vrot.slane %v1029_v62, 1  ;;  %v2111_v27 = vadd.f32 %v2107_v15, %v1998_v37 }
  0xfa   : > { %v627_v17 = vsel %vm143_vm0, %v7576_v20, %v626_v21  ;;  %v801_v31 = vsel %vm318_vm1, %v7577_v13, %v800_v4  ;;  %v1356_v28 = vmul.f32 %v5427_v33, %v5065_v57  ;;  %v1443_v16 = vmul.f32 %v5568_v35, %v5075_v54 }
  0xfb   : > { %v393_v10 = vadd.f32 %v385_v51, %v218_v23  ;;  %v7578_v14 = vrot.slane %v5451_v0, 1  ;;  %v1216_v62 = vrot.slane %v1203_v53, 2  ;;  %v1605_v47 = vmul.f32 %v5568_v35, %v5090_v1  ;;  %v5633_v51 = vld [vmem:[%s3955_s10 + $0x98] sm:$0xff] }
  0xfc   : > { %v1728_v37 = vmul.f32 %v5447_v11, %v5103_v6  ;;  %v2216_v57 = vadd.f32 %v2207_v30, %v2111_v27  ;;  %v1360_v54 = vadd.f32 %v1356_v28, %v5056_v60  ;;  %v1456_v15 = vrot.slane %v1443_v16, 1 }
  0xfd   : > { %v1043_v61 = vsel %vm143_vm0, %v7578_v14, %v1042_v12  ;;  %v518_v23 = vadd.f32 %v514_v2, %v393_v10  ;;  %v7579_v0 = vrot.slane %v5467_v55, 2  ;;  %v1618_v45 = vrot.slane %v1605_v47, 2 }
  0xfe   : > { %v1815_v1 = vmul.f32 %v5580_v46, %v5117_v3  ;;  %v1977_v6 = vmul.f32 %v5580_v46, %v5120_v63  ;;  %v2378_v42 = vadd.f32 %v2369_v19, %v2216_v57  ;;  %v7580_v30 = vrot.slane %v5484_v48, 1 }
  0xff   : > { %v1217_v18 = vsel %vm318_vm1, %v7579_v0, %v1216_v62  ;;  %v635_v24 = vadd.f32 %v627_v17, %v518_v23  ;;  %v2108_v60 = vmul.f32 %v5522_v26, %v5141_v56  ;;  %v7581_v21 = vrot.slane %v5488_v25, 2 }
 0x100   : > { %v1457_v2 = vsel %vm143_vm0, %v7580_v30, %v1456_v15  ;;  %v1828_v4 = vrot.slane %v1815_v1, 1  ;;  %v1990_v49 = vrot.slane %v1977_v6, 2  ;;  %v2471_v63 = vmax.f32 %v2378_v42, 0.0 }
 0x101   : > { %v1465_v55 = vadd.f32 %v1457_v2, %v1360_v54  ;;  %v1619_v3 = vsel %vm318_vm1, %v7581_v21, %v1618_v45  ;;  %v809_v19 = vadd.f32 %v801_v31, %v635_v24  ;;  %v2195_v48 = vmul.f32 %v5633_v51, %v5151_v50 }
 0x102   : > { %v2357_v56 = vmul.f32 %v5633_v51, %v5169_v58  ;;  %v7582_v20 = vrot.slane %v5502_v44, 1  ;;  %v7583_v13 = vrot.slane %v5506_v7, 2  ;;  %v5648_v12 = vstv %s5595_s11  ;;  %s6755_s11 = sld [smem:[#allocation4 + $0x31]] }
 0x103   : > { %v1627_v25 = vadd.f32 %v1619_v3, %v1465_v55  ;;  %v2503_v53 = vmax.f32 %v1323_v29, %v2471_v63  ;;  %v934_v27 = vadd.f32 %v930_v36, %v809_v19  ;;  %v2208_v50 = vrot.slane %v2195_v48, 1 }
 0x104   : > { %v1829_v17 = vsel %vm143_vm0, %v7582_v20, %v1828_v4  ;;  %v1991_v31 = vsel %vm318_vm1, %v7583_v13, %v1990_v49  ;;  %v2370_v10 = vrot.slane %v2357_v56, 2  ;;  %v5655_v28 = vstv %s5601_s12  ;;  %s6768_s12 = sld [smem:[#allocation4 + $0x33]] }
 0x105   : > { %v1732_v58 = vadd.f32 %v1728_v37, %v1627_v25  ;;  %v5658_v44 = vstv %s5610_s13  ;;  %v5661_v16 = vstv %s5612_s14  ;;  %2507 = vst [vmem:[#allocation2 + $0x50] sm:$0xff] %v2503_v53  ;;  %v1051_v7 = vadd.f32 %v1043_v61, %v934_v27  ;;  %s6787_s13 = sld [smem:[#allocation4 + $0x34]]  ;;  %s6805_s14 = sld [smem:[#allocation4 + $0x35]] }
 0x106   : > { %v7584_v14 = vrot.slane %v5526_v9, 1  ;;  %v7585_v36 = vrot.slane %v5537_v5, 2  ;;  %v103_v47 = vmul.f32 %v5070_v32, %v5655_v28  ;;  %v221_v57 = vmul.f32 %v5070_v32, %v5658_v44 }
 0x107   : > { %v1837_v37 = vadd.f32 %v1829_v17, %v1732_v58  ;;  %v5677_v61 = vmul.f32 %v5083_v41, %v5658_v44  ;;  %v396_v9 = vmul.f32 %v5070_v32, %v5661_v16  ;;  %v1225_v5 = vadd.f32 %v1217_v18, %v1051_v7 }
 0x108   : > { %v2209_v29 = vsel %vm143_vm0, %v7584_v14, %v2208_v50  ;;  %v2371_v62 = vsel %vm318_vm1, %v7585_v36, %v2370_v10  ;;  %v107_v23 = vadd.f32 %v103_v47, %v5648_v12  ;;  %v5684_v54 = vmul.f32 %v5083_v41, %v5661_v16 }
 0x109   : > { %v5687_v15 = vstv %s5627_s15  ;;  %v1999_v0 = vadd.f32 %v1991_v31, %v1837_v37  ;;  %v231_v45 = vrot.slane %v221_v57, 1  ;;  %v232_v1 = vrot.slane %v5677_v61, 1  ;;  %s3419_s15 = sshll.u32 %s3904_s2, 4  ;;  %s50_s2 = sadd.s32 1, %s3904_s2  }
 0x10a   : > { %v406_v6 = vrot.slane %v396_v9, 2  ;;  %v1324_v42 = vmax.f32 %v1225_v5, 0.0  ;;  %v407_v32 = vrot.slane %v5684_v54, 2  ;;  %v521_v18 = vmul.f32 %v5108_v39, %v5687_v15  ;;  %p47_p10 = scmp.ge.s32.totalorder %s50_s2, 15  }
 0x10b   : > { %v5696_v24 = vstv %s5639_s16  ;;  %v2112_v30 = vadd.f32 %v2108_v60, %v1999_v0  ;;  %v233_v2 = vsel %vm143_vm0, %v231_v45, %v232_v1  ;;  %v5711_v49 = vstv %s5650_s17  ;;  %s7280_s16 = scalar_lea.vmem [#allocation3], %s3419_s15 }
 0x10c   : > { %v638_v55 = vmul.f32 %v5108_v39, %v5696_v24  ;;  %v5705_v21 = vmul.f32 %v5125_v34, %v5696_v24  ;;  %v244_v3 = vadd.f32 %v233_v2, %v107_v23  ;;  %v408_v4 = vsel %vm318_vm1, %v406_v6, %v407_v32 }
 0x10d   : > { %v5714_v63 = vstv %s5652_s18  ;;  %v2217_v60 = vadd.f32 %v2209_v29, %v2112_v30  ;;  %v812_v56 = vmul.f32 %v5108_v39, %v5711_v49  ;;  %v5721_v20 = vmul.f32 %v5125_v34, %v5711_v49 }
 0x10e   : > { %v648_v19 = vrot.slane %v638_v55, 1  ;;  %v649_v48 = vrot.slane %v5705_v21, 1  ;;  %v419_v25 = vadd.f32 %v408_v4, %v244_v3  ;;  %v937_v17 = vmul.f32 %v5146_v22, %v5714_v63 }
 0x10f   : > { %v5726_v13 = vstv %s5671_s19  ;;  %v2379_v31 = vadd.f32 %v2371_v62, %v2217_v60  ;;  %v822_v27 = vrot.slane %v812_v56, 2  ;;  %v823_v58 = vrot.slane %v5721_v20, 2 }
 0x110   : > { %v650_v53 = vsel %vm143_vm0, %v648_v19, %v649_v48  ;;  %v1054_v50 = vmul.f32 %v5146_v22, %v5726_v13  ;;  %v525_v10 = vadd.f32 %v521_v18, %v419_v25  ;;  %v5736_v7 = vmul.f32 %v5162_v40, %v5726_v13 }
 0x111   : > { %v5739_v14 = vstv %s5689_s20  ;;  %v2472_v29 = vmax.f32 %v2379_v31, 0.0  ;;  %v824_v57 = vsel %vm318_vm1, %v822_v27, %v823_v58  ;;  %v1361_v5 = vmul.f32 %v5108_v39, %v5655_v28 }
 0x112   : > { %v1064_v36 = vrot.slane %v1054_v50, 1  ;;  %v1228_v62 = vmul.f32 %v5146_v22, %v5739_v14  ;;  %v5745_v47 = vmul.f32 %v5162_v40, %v5739_v14  ;;  %v661_v37 = vadd.f32 %v650_v53, %v525_v10 }
 0x113   : > { %v1065_v9 = vrot.slane %v5736_v7, 1  ;;  %v2504_v23 = vmax.f32 %v1324_v42, %v2472_v29  ;;  %v1466_v6 = vmul.f32 %v5108_v39, %v5658_v44  ;;  %v1365_v2 = vadd.f32 %v1361_v5, %v5648_v12 }
 0x114   : > { %v1238_v0 = vrot.slane %v1228_v62, 2  ;;  %v1239_v45 = vrot.slane %v5745_v47, 2  ;;  %v835_v18 = vadd.f32 %v824_v57, %v661_v37  ;;  %v5762_v55 = vmul.f32 %v5125_v34, %v5658_v44 }
 0x115   : > { %v1066_v30 = vsel %vm143_vm0, %v1064_v36, %v1065_v9  ;;  %2508 = vst [vmem:[#allocation2 + $0x58] sm:$0xff] %v2504_v23  ;;  %v1476_v3 = vrot.slane %v1466_v6, 1  ;;  %v1628_v4 = vmul.f32 %v5108_v39, %v5661_v16  ;;  %v5771_v60 = vmul.f32 %v5125_v34, %v5661_v16 }
 0x116   : > { %v1240_v42 = vsel %vm318_vm1, %v1238_v0, %v1239_v45  ;;  %v941_v19 = vadd.f32 %v937_v17, %v835_v18  ;;  %v1477_v56 = vrot.slane %v5762_v55, 1  ;;  %v1733_v25 = vmul.f32 %v5146_v22, %v5687_v15 }
 0x117   : > { %v1838_v31 = vmul.f32 %v5146_v22, %v5696_v24  ;;  %v1638_v53 = vrot.slane %v1628_v4, 2  ;;  %v1639_v27 = vrot.slane %v5771_v60, 2  ;;  %v5781_v50 = vmul.f32 %v5162_v40, %v5696_v24 }
 0x118   : > { %v2000_v39 = vmul.f32 %v5146_v22, %v5711_v49  ;;  %v1077_v10 = vadd.f32 %v1066_v30, %v941_v19  ;;  %v1478_v17 = vsel %vm143_vm0, %v1476_v3, %v1477_v56  ;;  %v5790_v36 = vmul.f32 %v5162_v40, %v5711_v49 }
 0x119   : > { %v1848_v29 = vrot.slane %v1838_v31, 1  ;;  %v1489_v62 = vadd.f32 %v1478_v17, %v1365_v2  ;;  %v1640_v37 = vsel %vm318_vm1, %v1638_v53, %v1639_v27  ;;  %v7479_v57 = vrot.slane %v5781_v50, 1 }
 0x11a   : > { %v2010_v5 = vrot.slane %v2000_v39, 2  ;;  %v5796_v23 = vadd.f32 %v1240_v42, %v1077_v10  ;;  %v7478_v22 = vrot.slane %v5790_v36, 2  ;;  %v2113_v0 = vmul.f32 %v5226_v38, %v5714_v63 }
 0x11b   : > { %v2218_v6 = vmul.f32 %v5226_v38, %v5726_v13  ;;  %v1651_v18 = vadd.f32 %v1640_v37, %v1489_v62  ;;  %v1850_v30 = vsel %vm143_vm0, %v1848_v29, %v7479_v57  ;;  %v5808_v2 = vmul.f32 %v5238_v59, %v5726_v13 }
 0x11c   : > { %v2380_v42 = vmul.f32 %v5226_v38, %v5739_v14  ;;  %v1325_v3 = vmax.f32 %v5796_v23, 0.0  ;;  %v2012_v4 = vsel %vm318_vm1, %v2010_v5, %v7478_v22  ;;  %v5818_v31 = vmul.f32 %v5238_v59, %v5739_v14 }
 0x11d   : > { %v2228_v19 = vrot.slane %v2218_v6, 1  ;;  %v1737_v53 = vadd.f32 %v1733_v25, %v1651_v18  ;;  %v2229_v39 = vrot.slane %v5808_v2, 1  ;;  %v104_v17 = vmul.f32 %v5083_v41, %v5655_v28 }
 0x11e   : > { %v2390_v10 = vrot.slane %v2380_v42, 2  ;;  %v7477_v38 = vrot.slane %v5818_v31, 2  ;;  %v5826_v29 = vmul.f32 %v5258_v8, %v5658_v44  ;;  %v5830_v62 = vmul.f32 %v5258_v8, %v5661_v16 }
 0x11f   : > { %v522_v37 = vmul.f32 %v5125_v34, %v5687_v15  ;;  %v1861_v25 = vadd.f32 %v1850_v30, %v1737_v53  ;;  %v2230_v5 = vsel %vm143_vm0, %v2228_v19, %v2229_v39  ;;  %v108_v23 = vadd.f32 %v104_v17, %v5648_v12 }
 0x120   : > { %v5838_v41 = vmul.f32 %v5279_v52, %v5696_v24  ;;  %v2392_v6 = vsel %vm318_vm1, %v2390_v10, %v7477_v38  ;;  %v234_v18 = vrot.slane %v5826_v29, 1  ;;  %v409_v2 = vrot.slane %v5830_v62, 2 }
 0x121   : > { %v5847_v42 = vmul.f32 %v5279_v52, %v5711_v49  ;;  %v2023_v30 = vadd.f32 %v2012_v4, %v1861_v25  ;;  %v938_v53 = vmul.f32 %v5162_v40, %v5714_v63  ;;  %v5854_v17 = vmul.f32 %v5299_v43, %v5726_v13 }
 0x122   : > { %v651_v19 = vrot.slane %v5838_v41, 1  ;;  %v235_v10 = vsel %vm143_vm0, %v232_v1, %v234_v18  ;;  %v410_v4 = vsel %vm318_vm1, %v407_v32, %v409_v2  ;;  %v5869_v38 = vmul.f32 %v5299_v43, %v5739_v14 }
 0x123   : > { %v825_v25 = vrot.slane %v5847_v42, 2  ;;  %v2117_v22 = vadd.f32 %v2113_v0, %v2023_v30  ;;  %v245_v57 = vadd.f32 %v235_v10, %v108_v23  ;;  %v1067_v1 = vrot.slane %v5854_v17, 1 }
 0x124   : > { %v652_v61 = vsel %vm143_vm0, %v649_v48, %v651_v19  ;;  %v7481_v32 = vrot.slane %v5869_v38, 2  ;;  %v1362_v0 = vmul.f32 %v5125_v34, %v5655_v28  ;;  %v5887_v23 = vmul.f32 %v5279_v52, %v5658_v44 }
 0x125   : > { %v826_v54 = vsel %vm318_vm1, %v823_v58, %v825_v25  ;;  %v2241_v21 = vadd.f32 %v2230_v5, %v2117_v22  ;;  %v420_v30 = vadd.f32 %v410_v4, %v245_v57  ;;  %v1068_v48 = vsel %vm143_vm0, %v1065_v9, %v1067_v1 }
 0x126   : > { %v5896_v20 = vmul.f32 %v5279_v52, %v5661_v16  ;;  %v1242_v34 = vsel %vm318_vm1, %v1239_v45, %v7481_v32  ;;  %v1366_v58 = vadd.f32 %v1362_v0, %v5648_v12  ;;  %v7480_v57 = vrot.slane %v5887_v23, 1 }
 0x127   : > { %v1734_v22 = vmul.f32 %v5162_v40, %v5687_v15  ;;  %v2403_v7 = vadd.f32 %v2392_v6, %v2241_v21  ;;  %v526_v5 = vadd.f32 %v522_v37, %v420_v30  ;;  %v5910_v10 = vmul.f32 %v5299_v43, %v5696_v24  ;;  %v7586_v37 = vld [vmem:[#allocation10_spill] sm:$0xff] }
 0x128   : > { %v1641_v9 = vrot.slane %v5896_v20, 2  ;;  %v1480_v47 = vsel %vm143_vm0, %v1477_v56, %v7480_v57  ;;  %v5919_v45 = vmul.f32 %v5299_v43, %v5711_v49  ;;  %v2114_v40 = vmul.f32 %v5238_v59, %v5714_v63 }
 0x129   : > { %v5925_v6 = vmul.f32 %v7586_v37, %v5726_v13  ;;  %v2473_v4 = vmax.f32 %v2403_v7, 0.0  ;;  %v662_v0 = vadd.f32 %v652_v61, %v526_v5  ;;  %v1490_v21 = vadd.f32 %v1480_v47, %v1366_v58 }
 0x12a   : > { %v1642_v55 = vsel %vm318_vm1, %v1639_v27, %v1641_v9  ;;  %v1851_v56 = vrot.slane %v5910_v10, 1  ;;  %v2013_v30 = vrot.slane %v5919_v45, 2  ;;  %v5937_v59 = vmul.f32 %v7586_v37, %v5739_v14 }
 0x12b   : > { %v7483_v57 = vrot.slane %v5925_v6, 1  ;;  %v2509_v32 = vmax.f32 %v1325_v3, %v2473_v4  ;;  %v836_v7 = vadd.f32 %v826_v54, %v662_v0  ;;  %v1652_v61 = vadd.f32 %v1642_v55, %v1490_v21 }
 0x12c   : > { %v105_v58 = vmul.f32 %v5258_v8, %v5655_v28  ;;  %v7587_v60 = vrot.slane %v5781_v50, 1  ;;  %v7588_v5 = vrot.slane %v5790_v36, 2  ;;  %v7482_v54 = vrot.slane %v5937_v59, 2  ;;  %v7589_v50 = vld [vmem:[#allocation11_spill] sm:$0xff] }
 0x12d   : > { %v2232_v3 = vsel %vm143_vm0, %v2229_v39, %v7483_v57  ;;  %2513 = vst [vmem:[#allocation2 + $0x60] sm:$0xff] %v2509_v32  ;;  %v942_v8 = vadd.f32 %v938_v53, %v836_v7  ;;  %v1738_v4 = vadd.f32 %v1734_v22, %v1652_v61  ;;  %v5958_v21 = vmul.f32 %v7589_v50, %v5658_v44 }
 0x12e   : > { %v1852_v27 = vsel %vm143_vm0, %v7587_v60, %v1851_v56  ;;  %v2014_v47 = vsel %vm318_vm1, %v7588_v5, %v2013_v30  ;;  %v109_v0 = vadd.f32 %v105_v58, %v5648_v12  ;;  %v7590_v36 = vrot.slane %v5818_v31, 2 }
 0x12f   : > { %v5967_v39 = vmul.f32 %v7589_v50, %v5661_v16  ;;  %v523_v53 = vmul.f32 %v5279_v52, %v5687_v15  ;;  %v5973_v32 = vmul.f32 %v5427_v33, %v5696_v24  ;;  %v1078_v22 = vadd.f32 %v1068_v48, %v942_v8 }
 0x130   : > { %v2394_v55 = vsel %vm318_vm1, %v7590_v36, %v7482_v54  ;;  %v1862_v7 = vadd.f32 %v1852_v27, %v1738_v4  ;;  %v236_v61 = vrot.slane %v5958_v21, 1  ;;  %v5978_v31 = vmul.f32 %v5427_v33, %v5711_v49 }
 0x131   : > { %v411_v58 = vrot.slane %v5967_v39, 2  ;;  %v653_v60 = vrot.slane %v5973_v32, 1  ;;  %v939_v5 = vmul.f32 %v5299_v43, %v5714_v63  ;;  %v5986_v36 = vmul.f32 %v5447_v11, %v5726_v13 }
 0x132   : > { %v1252_v54 = vadd.f32 %v1242_v34, %v1078_v22  ;;  %v2024_v48 = vadd.f32 %v2014_v47, %v1862_v7  ;;  %v237_v27 = vsel %vm143_vm0, %v234_v18, %v236_v61  ;;  %v827_v8 = vrot.slane %v5978_v31, 2 }
 0x133   : > { %v246_v4 = vadd.f32 %v237_v27, %v109_v0  ;;  %v412_v57 = vsel %vm318_vm1, %v409_v2, %v411_v58  ;;  %v654_v34 = vsel %vm143_vm0, %v651_v19, %v653_v60  ;;  %v1069_v47 = vrot.slane %v5986_v36, 1 }
 0x134   : > { %v1326_v29 = vmax.f32 %v1252_v54, 0.0  ;;  %v2118_v22 = vadd.f32 %v2114_v40, %v2024_v48  ;;  %v828_v18 = vsel %vm318_vm1, %v825_v25, %v827_v8  ;;  %v6012_v62 = vmul.f32 %v5447_v11, %v5739_v14 }
 0x135   : > { %v421_v2 = vadd.f32 %v412_v57, %v246_v4  ;;  %v1070_v41 = vsel %vm143_vm0, %v1067_v1, %v1069_v47  ;;  %v1363_v19 = vmul.f32 %v5279_v52, %v5655_v28  ;;  %v6023_v40 = vmul.f32 %v5427_v33, %v5658_v44 }
 0x136   : > { %v2242_v42 = vadd.f32 %v2232_v3, %v2118_v22  ;;  %v1243_v25 = vrot.slane %v6012_v62, 2  ;;  %v6028_v54 = vmul.f32 %v5427_v33, %v5661_v16  ;;  %v1735_v57 = vmul.f32 %v5299_v43, %v5687_v15 }
 0x137   : > { %v527_v17 = vadd.f32 %v523_v53, %v421_v2  ;;  %v1367_v1 = vadd.f32 %v1363_v19, %v5648_v12  ;;  %v1481_v0 = vrot.slane %v6023_v40, 1  ;;  %v6036_v52 = vmul.f32 %v5447_v11, %v5696_v24 }
 0x138   : > { %v2404_v7 = vadd.f32 %v2394_v55, %v2242_v42  ;;  %v7591_v3 = vrot.slane %v5869_v38, 2  ;;  %v1643_v27 = vrot.slane %v6028_v54, 2  ;;  %v6046_v43 = vmul.f32 %v5447_v11, %v5711_v49 }
 0x139   : > { %v663_v53 = vadd.f32 %v654_v34, %v527_v17  ;;  %v7592_v4 = vrot.slane %v5887_v23, 1  ;;  %v1853_v55 = vrot.slane %v6036_v52, 1  ;;  %v2115_v38 = vmul.f32 %v7586_v37, %v5714_v63 }
 0x13a   : > { %v1244_v48 = vsel %vm318_vm1, %v7591_v3, %v1243_v25  ;;  %v2474_v2 = vmax.f32 %v2404_v7, 0.0  ;;  %v1644_v42 = vsel %vm318_vm1, %v1641_v9, %v1643_v27  ;;  %v2015_v34 = vrot.slane %v6046_v43, 2 }
 0x13b   : > { %v1482_v22 = vsel %vm143_vm0, %v7592_v4, %v1481_v0  ;;  %v837_v17 = vadd.f32 %v828_v18, %v663_v53  ;;  %v1854_v23 = vsel %vm143_vm0, %v1851_v56, %v1853_v55  ;;  %v6069_v37 = vmul.f32 %v5522_v26, %v5726_v13  ;;  %v7593_v53 = vld [vmem:[#allocation12_spill] sm:$0xff] }
 0x13c   : > { %v1491_v19 = vadd.f32 %v1482_v22, %v1367_v1  ;;  %v6073_v1 = vmul.f32 %v5522_v26, %v5739_v14  ;;  %v2510_v20 = vmax.f32 %v1326_v29, %v2474_v2  ;;  %v2016_v9 = vsel %vm318_vm1, %v2013_v30, %v2015_v34 }
 0x13d   : > { %v106_v10 = vmul.f32 %v7589_v50, %v5655_v28  ;;  %v943_v56 = vadd.f32 %v939_v5, %v837_v17  ;;  %v2233_v18 = vrot.slane %v6069_v37, 1  ;;  %v225_v4 = vmul.f32 %v7593_v53, %v5658_v44 }
 0x13e   : > { %v1653_v7 = vadd.f32 %v1644_v42, %v1491_v19  ;;  %v2395_v3 = vrot.slane %v6073_v1, 2  ;;  %2514 = vst [vmem:[#allocation2 + $0x68] sm:$0xff] %v2510_v20  ;;  %v400_v45 = vmul.f32 %v7593_v53, %v5661_v16  ;;  %v524_v30 = vmul.f32 %v5427_v33, %v5687_v15 }
 0x13f   : > { %v110_v22 = vadd.f32 %v106_v10, %v5648_v12  ;;  %v1079_v2 = vadd.f32 %v1070_v41, %v943_v56  ;;  %v7594_v50 = vrot.slane %v5925_v6, 1  ;;  %v7595_v19 = vrot.slane %v5937_v59, 2 }
 0x140   : > { %v1739_v29 = vadd.f32 %v1735_v57, %v1653_v7  ;;  %v238_v42 = vrot.slane %v225_v4, 1  ;;  %v413_v20 = vrot.slane %v400_v45, 2  ;;  %v642_v7 = vmul.f32 %v5568_v35, %v5696_v24 }
 0x141   : > { %v2234_v5 = vsel %vm143_vm0, %v7594_v50, %v2233_v18  ;;  %v2396_v57 = vsel %vm318_vm1, %v7595_v19, %v2395_v3  ;;  %v816_v41 = vmul.f32 %v5568_v35, %v5711_v49  ;;  %v1253_v10 = vadd.f32 %v1244_v48, %v1079_v2 }
 0x142   : > { %v1863_v17 = vadd.f32 %v1854_v23, %v1739_v29  ;;  %v239_v6 = vsel %vm143_vm0, %v236_v61, %v238_v42  ;;  %v940_v56 = vmul.f32 %v5447_v11, %v5714_v63  ;;  %v1058_v59 = vmul.f32 %v5580_v46, %v5726_v13 }
 0x143   : > { %v247_v23 = vadd.f32 %v239_v6, %v110_v22  ;;  %v414_v4 = vsel %vm318_vm1, %v411_v58, %v413_v20  ;;  %v655_v29 = vrot.slane %v642_v7, 1  ;;  %v1327_v45 = vmax.f32 %v1253_v10, 0.0 }
 0x144   : > { %v2025_v53 = vadd.f32 %v2016_v9, %v1863_v17  ;;  %v829_v50 = vrot.slane %v816_v41, 2  ;;  %v1071_v48 = vrot.slane %v1058_v59, 1  ;;  %v1232_v21 = vmul.f32 %v5580_v46, %v5739_v14  ;;  %v6186_v17 = vld [vmem:[%s3955_s10] sm:$0xff] }
 0x145   : > { %v422_v2 = vadd.f32 %v414_v4, %v247_v23  ;;  %v656_v19 = vsel %vm143_vm0, %v653_v60, %v655_v29  ;;  %v1364_v9 = vmul.f32 %v5427_v33, %v5655_v28  ;;  %v1632_v28 = vmul.f32 %v5568_v35, %v5661_v16 }
 0x146   : > { %v2119_v61 = vadd.f32 %v2115_v38, %v2025_v53  ;;  %v830_v39 = vsel %vm318_vm1, %v827_v8, %v829_v50  ;;  %v1072_v58 = vsel %vm143_vm0, %v1069_v47, %v1071_v48  ;;  %v1245_v22 = vrot.slane %v1232_v21, 2  ;;  %v6224_v50 = vld [vmem:[%s3955_s10 + $0x28] sm:$0xff] }
 0x147   : > { %v1470_v38 = vmul.f32 %v5568_v35, %v5658_v44  ;;  %v528_v60 = vadd.f32 %v524_v30, %v422_v2  ;;  %v1368_v33 = vadd.f32 %v1364_v9, %v5648_v12  ;;  %v1736_v8 = vmul.f32 %v5447_v11, %v5687_v15 }
 0x148   : > { %v2243_v32 = vadd.f32 %v2234_v5, %v2119_v61  ;;  %v1246_v31 = vsel %vm318_vm1, %v1243_v25, %v1245_v22  ;;  %v1842_v44 = vmul.f32 %v5580_v46, %v5696_v24  ;;  %v1645_v30 = vrot.slane %v1632_v28, 2  ;;  %v6241_v22 = vld [vmem:[%s3955_s10 + $0x30] sm:$0xff] }
 0x149   : > { %v1483_v36 = vrot.slane %v1470_v38, 1  ;;  %v664_v12 = vadd.f32 %v656_v19, %v528_v60  ;;  %v2004_v35 = vmul.f32 %v5580_v46, %v5711_v49  ;;  %v2116_v25 = vmul.f32 %v5522_v26, %v5714_v63 }
 0x14a   : > { %v2405_v47 = vadd.f32 %v2396_v57, %v2243_v32  ;;  %v1855_v62 = vrot.slane %v1842_v44, 1  ;;  %v2222_v11 = vmul.f32 %v5633_v51, %v5726_v13  ;;  %v1646_v46 = vsel %vm318_vm1, %v1643_v27, %v1645_v30  ;;  %v6262_v30 = vld [vmem:[%s3955_s10 + $0x50] sm:$0xff] }
 0x14b   : > { %v1484_v16 = vsel %vm143_vm0, %v1481_v0, %v1483_v36  ;;  %v838_v24 = vadd.f32 %v830_v39, %v664_v12  ;;  %v2017_v40 = vrot.slane %v2004_v35, 2  ;;  %v2384_v63 = vmul.f32 %v5633_v51, %v5739_v14 }
 0x14c   : > { %v2475_v15 = vmax.f32 %v2405_v47, 0.0  ;;  %v1492_v5 = vadd.f32 %v1484_v16, %v1368_v33  ;;  %v1856_v49 = vsel %vm143_vm0, %v1853_v55, %v1855_v62  ;;  %v2235_v26 = vrot.slane %v2222_v11, 1 }
 0x14d   : > { %v944_v0 = vadd.f32 %v940_v56, %v838_v24  ;;  %v6172_v27 = vstv %s6122_s21  ;;  %v2018_v52 = vsel %vm318_vm1, %v2015_v34, %v2017_v40  ;;  %v2397_v14 = vrot.slane %v2384_v63, 2 }
 0x14e   : > { %v2511_v13 = vmax.f32 %v1327_v45, %v2475_v15  ;;  %v1654_v54 = vadd.f32 %v1646_v46, %v1492_v5  ;;  %v2236_v51 = vsel %vm143_vm0, %v2233_v18, %v2235_v26  ;;  %v6181_v55 = vstv %s6132_s22  ;;  %v6199_v18 = vld [vmem:[%s3955_s10 + $0x8] sm:$0xff]  ;;  %v6278_v5 = vld [vmem:[%s3955_s10 + $0x58] sm:$0xff] }
 0x14f   : > { %v1080_v57 = vadd.f32 %v1072_v58, %v944_v0  ;;  %v113_v43 = vmul.f32 %v6186_v17, %v6181_v55  ;;  %v6191_v20 = vstv %s6137_s23  ;;  %v2398_v34 = vsel %vm318_vm1, %v2395_v3, %v2397_v14 }
 0x150   : > { %2515 = vst [vmem:[#allocation2 + $0x70] sm:$0xff] %v2511_v13  ;;  %v1740_v42 = vadd.f32 %v1736_v8, %v1654_v54  ;;  %v250_v37 = vmul.f32 %v6186_v17, %v6191_v20  ;;  %v6203_v7 = vmul.f32 %v6199_v18, %v6191_v20  ;;  %v6206_v41 = vstv %s6146_s24 }
 0x151   : > { %v1254_v10 = vadd.f32 %v1246_v31, %v1080_v57  ;;  %v117_v1 = vadd.f32 %v113_v43, %v6172_v27  ;;  %v425_v3 = vmul.f32 %v6186_v17, %v6206_v41  ;;  %v6216_v53 = vmul.f32 %v6199_v18, %v6206_v41 }
 0x152   : > { %v1864_v6 = vadd.f32 %v1856_v49, %v1740_v42  ;;  %v260_v56 = vrot.slane %v250_v37, 1  ;;  %v261_v59 = vrot.slane %v6203_v7, 1  ;;  %v6219_v23 = vstv %s6157_s25 }
 0x153   : > { %v1328_v4 = vmax.f32 %v1254_v10, 0.0  ;;  %v435_v45 = vrot.slane %v425_v3, 2  ;;  %v531_v48 = vmul.f32 %v6224_v50, %v6219_v23  ;;  %v436_v61 = vrot.slane %v6216_v53, 2 }
 0x154   : > { %v2026_v29 = vadd.f32 %v2018_v52, %v1864_v6  ;;  %v262_v21 = vsel %vm143_vm0, %v260_v56, %v261_v59  ;;  %v6233_v2 = vstv %s6167_s26  ;;  %v6236_v19 = vstv %s6169_s1 }
 0x155   : > { %v273_v39 = vadd.f32 %v262_v21, %v117_v1  ;;  %v667_v58 = vmul.f32 %v6224_v50, %v6233_v2  ;;  %v6245_v38 = vmul.f32 %v6241_v22, %v6233_v2  ;;  %v437_v32 = vsel %vm318_vm1, %v435_v45, %v436_v61 }
 0x156   : > { %v2120_v9 = vadd.f32 %v2116_v25, %v2026_v29  ;;  %v841_v60 = vmul.f32 %v6224_v50, %v6236_v19  ;;  %v6254_v33 = vmul.f32 %v6241_v22, %v6236_v19  ;;  %v6257_v28 = vstv %s6183_s27 }
 0x157   : > { %v448_v36 = vadd.f32 %v437_v32, %v273_v39  ;;  %v677_v8 = vrot.slane %v667_v58, 1  ;;  %v678_v44 = vrot.slane %v6245_v38, 1  ;;  %v947_v35 = vmul.f32 %v6262_v30, %v6257_v28 }
 0x158   : > { %v2244_v31 = vadd.f32 %v2236_v51, %v2120_v9  ;;  %v851_v47 = vrot.slane %v841_v60, 2  ;;  %v852_v12 = vrot.slane %v6254_v33, 2  ;;  %v6267_v16 = vstv %s6208_s28 }
 0x159   : > { %v535_v25 = vadd.f32 %v531_v48, %v448_v36  ;;  %v679_v11 = vsel %vm143_vm0, %v677_v8, %v678_v44  ;;  %v1083_v15 = vmul.f32 %v6262_v30, %v6267_v16  ;;  %v6282_v46 = vmul.f32 %v6278_v5, %v6267_v16 }
 0x15a   : > { %v2406_v62 = vadd.f32 %v2398_v34, %v2244_v31  ;;  %v853_v24 = vsel %vm318_vm1, %v851_v47, %v852_v12  ;;  %v6285_v49 = vstv %s6221_s29  ;;  %v1369_v40 = vmul.f32 %v6224_v50, %v6181_v55 }
 0x15b   : > { %v690_v63 = vadd.f32 %v679_v11, %v535_v25  ;;  %v1093_v13 = vrot.slane %v1083_v15, 1  ;;  %v1257_v0 = vmul.f32 %v6262_v30, %v6285_v49  ;;  %v1094_v54 = vrot.slane %v6282_v46, 1  ;;  %v6342_v11 = vld [vmem:[%s3955_s10 + $0x78] sm:$0xff] }
 0x15c   : > { %v2476_v26 = vmax.f32 %v2406_v62, 0.0  ;;  %v6294_v52 = vmul.f32 %v6278_v5, %v6285_v49  ;;  %v1373_v51 = vadd.f32 %v1369_v40, %v6172_v27  ;;  %v1493_v14 = vmul.f32 %v6224_v50, %v6191_v20 }
 0x15d   : > { %v864_v42 = vadd.f32 %v853_v24, %v690_v63  ;;  %v1267_v43 = vrot.slane %v1257_v0, 2  ;;  %v6301_v34 = vmul.f32 %v6241_v22, %v6191_v20  ;;  %v1095_v37 = vsel %vm143_vm0, %v1093_v13, %v1094_v54  ;;  %v6354_v0 = vld [vmem:[%s3955_s10 + $0x80] sm:$0xff] }
 0x15e   : > { %v2512_v57 = vmax.f32 %v1328_v4, %v2476_v26  ;;  %v1268_v10 = vrot.slane %v6294_v52, 2  ;;  %v1503_v6 = vrot.slane %v1493_v14, 1  ;;  %v1655_v1 = vmul.f32 %v6224_v50, %v6206_v41 }
 0x15f   : > { %v951_v3 = vadd.f32 %v947_v35, %v864_v42  ;;  %v1504_v56 = vrot.slane %v6301_v34, 1  ;;  %v6312_v4 = vmul.f32 %v6241_v22, %v6206_v41  ;;  %v1741_v29 = vmul.f32 %v6262_v30, %v6219_v23 }
 0x160   : > { %2516 = vst [vmem:[#allocation2 + $0x78] sm:$0xff] %v2512_v57  ;;  %v1269_v45 = vsel %vm318_vm1, %v1267_v43, %v1268_v10  ;;  %v1665_v48 = vrot.slane %v1655_v1, 2  ;;  %v1865_v21 = vmul.f32 %v6262_v30, %v6233_v2  ;;  %v6323_v9 = vmul.f32 %v6278_v5, %v6233_v2 }
 0x161   : > { %v1106_v39 = vadd.f32 %v1095_v37, %v951_v3  ;;  %v1505_v58 = vsel %vm143_vm0, %v1503_v6, %v1504_v56  ;;  %v1666_v32 = vrot.slane %v6312_v4, 2  ;;  %v2027_v60 = vmul.f32 %v6262_v30, %v6236_v19 }
 0x162   : > { %v1516_v31 = vadd.f32 %v1505_v58, %v1373_v51  ;;  %v1875_v36 = vrot.slane %v1865_v21, 1  ;;  %v7488_v8 = vrot.slane %v6323_v9, 1  ;;  %v6334_v47 = vmul.f32 %v6278_v5, %v6236_v19 }
 0x163   : > { %v6336_v35 = vadd.f32 %v1269_v45, %v1106_v39  ;;  %v1667_v62 = vsel %vm318_vm1, %v1665_v48, %v1666_v32  ;;  %v2037_v25 = vrot.slane %v2027_v60, 2  ;;  %v2121_v15 = vmul.f32 %v6342_v11, %v6257_v28  ;;  %v6374_v48 = vld [vmem:[%s3955_s10 + $0x10] sm:$0xff] }
 0x164   : > { %v1678_v24 = vadd.f32 %v1667_v62, %v1516_v31  ;;  %v1877_v40 = vsel %vm143_vm0, %v1875_v36, %v7488_v8  ;;  %v7487_v26 = vrot.slane %v6334_v47, 2  ;;  %v2245_v63 = vmul.f32 %v6342_v11, %v6267_v16 }
 0x165   : > { %v1329_v13 = vmax.f32 %v6336_v35, 0.0  ;;  %v6358_v51 = vmul.f32 %v6354_v0, %v6267_v16  ;;  %v2407_v14 = vmul.f32 %v6342_v11, %v6285_v49  ;;  %v6364_v57 = vmul.f32 %v6354_v0, %v6285_v49 }
 0x166   : > { %v1745_v42 = vadd.f32 %v1741_v29, %v1678_v24  ;;  %v2039_v43 = vsel %vm318_vm1, %v2037_v25, %v7487_v26  ;;  %v2255_v37 = vrot.slane %v2245_v63, 1  ;;  %v114_v6 = vmul.f32 %v6199_v18, %v6181_v55  ;;  %v6395_v25 = vld [vmem:[%s3955_s10 + $0x38] sm:$0xff] }
 0x167   : > { %v7485_v1 = vrot.slane %v6358_v51, 1  ;;  %v2417_v3 = vrot.slane %v2407_v14, 2  ;;  %v7484_v45 = vrot.slane %v6364_v57, 2  ;;  %v6378_v21 = vmul.f32 %v6374_v48, %v6191_v20 }
 0x168   : > { %v1888_v29 = vadd.f32 %v1877_v40, %v1745_v42  ;;  %v118_v39 = vadd.f32 %v114_v6, %v6172_v27  ;;  %v6383_v58 = vmul.f32 %v6374_v48, %v6206_v41  ;;  %v532_v60 = vmul.f32 %v6241_v22, %v6219_v23 }
 0x169   : > { %v2257_v31 = vsel %vm143_vm0, %v2255_v37, %v7485_v1  ;;  %v2419_v36 = vsel %vm318_vm1, %v2417_v3, %v7484_v45  ;;  %v7486_v62 = vrot.slane %v6378_v21, 1  ;;  %v6399_v24 = vmul.f32 %v6395_v25, %v6233_v2  ;;  %v6415_v3 = vld [vmem:[%s3955_s10 + $0x60] sm:$0xff] }
 0x16a   : > { %v2050_v40 = vadd.f32 %v2039_v43, %v1888_v29  ;;  %v438_v63 = vrot.slane %v6383_v58, 2  ;;  %v6404_v14 = vmul.f32 %v6395_v25, %v6236_v19  ;;  %v948_v42 = vmul.f32 %v6278_v5, %v6257_v28 }
 0x16b   : > { %v264_v37 = vsel %vm143_vm0, %v261_v59, %v7486_v62  ;;  %v680_v6 = vrot.slane %v6399_v24, 1  ;;  %v6419_v43 = vmul.f32 %v6415_v3, %v6267_v16  ;;  %v6423_v29 = vmul.f32 %v6415_v3, %v6285_v49 }
 0x16c   : > { %v2125_v45 = vadd.f32 %v2121_v15, %v2050_v40  ;;  %v274_v1 = vadd.f32 %v264_v37, %v118_v39  ;;  %v439_v7 = vsel %vm318_vm1, %v436_v61, %v438_v63  ;;  %v854_v59 = vrot.slane %v6404_v14, 2 }
 0x16d   : > { %v681_v62 = vsel %vm143_vm0, %v678_v44, %v680_v6  ;;  %v1096_v26 = vrot.slane %v6419_v43, 1  ;;  %v7495_v8 = vrot.slane %v6423_v29, 2  ;;  %v1370_v15 = vmul.f32 %v6241_v22, %v6181_v55 }
 0x16e   : > { %v2268_v39 = vadd.f32 %v2257_v31, %v2125_v45  ;;  %v449_v40 = vadd.f32 %v439_v7, %v274_v1  ;;  %v855_v53 = vsel %vm318_vm1, %v852_v12, %v854_v59  ;;  %v6447_v61 = vmul.f32 %v6395_v25, %v6191_v20 }
 0x16f   : > { %v1097_v38 = vsel %vm143_vm0, %v1094_v54, %v1096_v26  ;;  %v1271_v44 = vsel %vm318_vm1, %v1268_v10, %v7495_v8  ;;  %v1374_v33 = vadd.f32 %v1370_v15, %v6172_v27  ;;  %v6462_v12 = vmul.f32 %v6395_v25, %v6206_v41  ;;  %v6484_v15 = vld [vmem:[%s3955_s10 + $0x88] sm:$0xff] }
 0x170   : > { %v2430_v1 = vadd.f32 %v2419_v36, %v2268_v39  ;;  %v536_v45 = vadd.f32 %v532_v60, %v449_v40  ;;  %v7489_v31 = vrot.slane %v6447_v61, 1  ;;  %v1742_v46 = vmul.f32 %v6278_v5, %v6219_v23  ;;  %7596 = vst [vmem:[#allocation10_spill] sm:$0xff] %v6484_v15 }
 0x171   : > { %v7490_v54 = vrot.slane %v6462_v12, 2  ;;  %v6470_v52 = vmul.f32 %v6415_v3, %v6233_v2  ;;  %v6474_v10 = vmul.f32 %v6415_v3, %v6236_v19  ;;  %v2122_v37 = vmul.f32 %v6354_v0, %v6257_v28 }
 0x172   : > { %v2477_v36 = vmax.f32 %v2430_v1, 0.0  ;;  %v691_v60 = vadd.f32 %v681_v62, %v536_v45  ;;  %v1507_v7 = vsel %vm143_vm0, %v1504_v56, %v7489_v31  ;;  %v6488_v39 = vmul.f32 %v6484_v15, %v6267_v16 }
 0x173   : > { %v1517_v40 = vadd.f32 %v1507_v7, %v1374_v33  ;;  %v1669_v62 = vsel %vm318_vm1, %v1666_v32, %v7490_v54  ;;  %v7494_v1 = vrot.slane %v6470_v52, 1  ;;  %v7493_v34 = vrot.slane %v6474_v10, 2 }
 0x174   : > { %v2517_v56 = vmax.f32 %v1329_v13, %v2477_v36  ;;  %v865_v45 = vadd.f32 %v855_v53, %v691_v60  ;;  %v7491_v31 = vrot.slane %v6488_v39, 1  ;;  %v6502_v33 = vmul.f32 %v6484_v15, %v6285_v49 }
 0x175   : > { %v1679_v7 = vadd.f32 %v1669_v62, %v1517_v40  ;;  %v7597_v4 = vrot.slane %v6323_v9, 1  ;;  %v7598_v54 = vrot.slane %v6334_v47, 2  ;;  %v115_v13 = vmul.f32 %v6374_v48, %v6181_v55  ;;  %v6523_v40 = vld [vmem:[%s3955_s10 + $0x18] sm:$0xff] }
 0x176   : > { %2521 = vst [vmem:[#allocation2 + $0x80] sm:$0xff] %v2517_v56  ;;  %v952_v53 = vadd.f32 %v948_v42, %v865_v45  ;;  %v7599_v36 = vrot.slane %v6358_v51, 1  ;;  %v7492_v60 = vrot.slane %v6502_v33, 2  ;;  %7600 = vst [vmem:[#allocation11_spill] sm:$0xff] %v6523_v40  ;;  %v6527_v47 = vmul.f32 %v6523_v40, %v6191_v20 }
 0x177   : > { %v1879_v32 = vsel %vm143_vm0, %v7597_v4, %v7494_v1  ;;  %v2041_v35 = vsel %vm318_vm1, %v7598_v54, %v7493_v34  ;;  %v1746_v54 = vadd.f32 %v1742_v46, %v1679_v7  ;;  %v119_v62 = vadd.f32 %v115_v13, %v6172_v27  ;;  %v6543_v46 = vld [vmem:[%s3955_s10 + $0x40] sm:$0xff]  ;;  %v6563_v1 = vld [vmem:[%s3955_s10 + $0x68] sm:$0xff] }
 0x178   : > { %v2259_v9 = vsel %vm143_vm0, %v7599_v36, %v7491_v31  ;;  %v6532_v42 = vmul.f32 %v6523_v40, %v6206_v41  ;;  %v533_v51 = vmul.f32 %v6395_v25, %v6219_v23  ;;  %v1107_v56 = vadd.f32 %v1097_v38, %v952_v53 }
 0x179   : > { %v7601_v45 = vrot.slane %v6364_v57, 2  ;;  %v7496_v36 = vrot.slane %v6527_v47, 1  ;;  %v6547_v7 = vmul.f32 %v6543_v46, %v6233_v2  ;;  %v1889_v13 = vadd.f32 %v1879_v32, %v1746_v54 }
 0x17a   : > { %v7504_v31 = vrot.slane %v6532_v42, 2  ;;  %v6552_v38 = vmul.f32 %v6543_v46, %v6236_v19  ;;  %v949_v57 = vmul.f32 %v6415_v3, %v6257_v28  ;;  %v1281_v53 = vadd.f32 %v1271_v44, %v1107_v56 }
 0x17b   : > { %v2421_v4 = vsel %vm318_vm1, %v7601_v45, %v7492_v60  ;;  %v7602_v45 = vrot.slane %v6378_v21, 1  ;;  %v7502_v34 = vrot.slane %v6547_v7, 1  ;;  %v6567_v32 = vmul.f32 %v6563_v1, %v6267_v16 }
 0x17c   : > { %v2051_v54 = vadd.f32 %v2041_v35, %v1889_v13  ;;  %v441_v44 = vsel %vm318_vm1, %v438_v63, %v7504_v31  ;;  %v7499_v21 = vrot.slane %v6552_v38, 2  ;;  %v1330_v56 = vmax.f32 %v1281_v53, 0.0 }
 0x17d   : > { %v266_v60 = vsel %vm143_vm0, %v7602_v45, %v7496_v36  ;;  %v683_v45 = vsel %vm143_vm0, %v680_v6, %v7502_v34  ;;  %v7497_v36 = vrot.slane %v6567_v32, 1  ;;  %v6583_v35 = vmul.f32 %v6563_v1, %v6285_v49 }
 0x17e   : > { %v275_v8 = vadd.f32 %v266_v60, %v119_v62  ;;  %v2126_v60 = vadd.f32 %v2122_v37, %v2051_v54  ;;  %v857_v58 = vsel %vm318_vm1, %v854_v59, %v7499_v21  ;;  %v1371_v63 = vmul.f32 %v6395_v25, %v6181_v55 }
 0x17f   : > { %v1099_v24 = vsel %vm143_vm0, %v1096_v26, %v7497_v36  ;;  %v7498_v6 = vrot.slane %v6583_v35, 2  ;;  %v6604_v14 = vmul.f32 %v6543_v46, %v6206_v41  ;;  %v1743_v43 = vmul.f32 %v6415_v3, %v6219_v23 }
 0x180   : > { %v450_v62 = vadd.f32 %v441_v44, %v275_v8  ;;  %v6600_v8 = vmul.f32 %v6543_v46, %v6191_v20  ;;  %v2269_v59 = vadd.f32 %v2259_v9, %v2126_v60  ;;  %v1375_v13 = vadd.f32 %v1371_v63, %v6172_v27 }
 0x181   : > { %v7603_v26 = vrot.slane %v6423_v29, 2  ;;  %v7500_v44 = vrot.slane %v6604_v14, 2  ;;  %v6618_v36 = vmul.f32 %v6563_v1, %v6233_v2  ;;  %v6622_v60 = vmul.f32 %v6563_v1, %v6236_v19 }
 0x182   : > { %v537_v37 = vadd.f32 %v533_v51, %v450_v62  ;;  %v7501_v54 = vrot.slane %v6600_v8, 1  ;;  %v2431_v9 = vadd.f32 %v2421_v4, %v2269_v59  ;;  %v2123_v62 = vmul.f32 %v6484_v15, %v6257_v28  ;;  %v6638_v59 = vld [vmem:[%s3955_s10 + $0x90] sm:$0xff] }
 0x183   : > { %v1273_v53 = vsel %vm318_vm1, %v7603_v26, %v7498_v6  ;;  %v7604_v29 = vrot.slane %v6447_v61, 1  ;;  %v7605_v26 = vrot.slane %v6462_v12, 2  ;;  %v7606_v12 = vrot.slane %v6470_v52, 1 }
 0x184   : > { %v692_v51 = vadd.f32 %v683_v45, %v537_v37  ;;  %v7503_v45 = vrot.slane %v6618_v36, 1  ;;  %v6642_v37 = vmul.f32 %v6638_v59, %v6267_v16  ;;  %v2478_v6 = vmax.f32 %v2431_v9, 0.0 }
 0x185   : > { %v1509_v63 = vsel %vm143_vm0, %v7604_v29, %v7501_v54  ;;  %v1671_v4 = vsel %vm318_vm1, %v7605_v26, %v7500_v44  ;;  %v7507_v29 = vrot.slane %v6622_v60, 2  ;;  %v6653_v54 = vmul.f32 %v6638_v59, %v6285_v49 }
 0x186   : > { %v866_v21 = vadd.f32 %v857_v58, %v692_v51  ;;  %v1518_v61 = vadd.f32 %v1509_v63, %v1375_v13  ;;  %v1881_v26 = vsel %vm143_vm0, %v7606_v12, %v7503_v45  ;;  %v7505_v44 = vrot.slane %v6642_v37, 1 }
 0x187   : > { %v116_v34 = vmul.f32 %v6523_v40, %v6181_v55  ;;  %v2518_v9 = vmax.f32 %v1330_v56, %v2478_v6  ;;  %v7607_v51 = vrot.slane %v6474_v10, 2  ;;  %v7608_v63 = vrot.slane %v6488_v39, 1  ;;  %v6670_v56 = vld [vmem:[%s3955_s10 + $0x20] sm:$0xff] }
 0x188   : > { %v953_v58 = vadd.f32 %v949_v57, %v866_v21  ;;  %v1680_v13 = vadd.f32 %v1671_v4, %v1518_v61  ;;  %v7506_v45 = vrot.slane %v6653_v54, 2  ;;  %7609 = vst [vmem:[#allocation12_spill] sm:$0xff] %v6670_v56  ;;  %v254_v57 = vmul.f32 %v6670_v56, %v6191_v20 }
 0x189   : > { %v2043_v52 = vsel %vm318_vm1, %v7607_v51, %v7507_v29  ;;  %v2261_v12 = vsel %vm143_vm0, %v7608_v63, %v7505_v44  ;;  %v120_v31 = vadd.f32 %v116_v34, %v6172_v27  ;;  %2522 = vst [vmem:[#allocation2 + $0x88] sm:$0xff] %v2518_v9  ;;  %v429_v6 = vmul.f32 %v6670_v56, %v6206_v41  ;;  %v6684_v51 = vld [vmem:[%s3955_s10 + $0x48] sm:$0xff] }
 0x18a   : > { %v1108_v21 = vadd.f32 %v1099_v24, %v953_v58  ;;  %v1747_v10 = vadd.f32 %v1743_v43, %v1680_v13  ;;  %v534_v39 = vmul.f32 %v6543_v46, %v6219_v23  ;;  %v7610_v4 = vrot.slane %v6502_v33, 2 }
 0x18b   : > { %v267_v61 = vrot.slane %v254_v57, 1  ;;  %v671_v24 = vmul.f32 %v6684_v51, %v6233_v2  ;;  %v845_v43 = vmul.f32 %v6684_v51, %v6236_v19  ;;  %v442_v13 = vrot.slane %v429_v6, 2 }
 0x18c   : > { %v2423_v34 = vsel %vm318_vm1, %v7610_v4, %v7506_v45  ;;  %v1282_v9 = vadd.f32 %v1273_v53, %v1108_v21  ;;  %v1890_v58 = vadd.f32 %v1881_v26, %v1747_v10  ;;  %v950_v63 = vmul.f32 %v6563_v1, %v6257_v28  ;;  %v6696_v45 = vld [vmem:[%s3955_s10 + $0x70] sm:$0xff] }
 0x18d   : > { %v7611_v44 = vrot.slane %v6527_v47, 1  ;;  %v684_v4 = vrot.slane %v671_v24, 1  ;;  %v858_v57 = vrot.slane %v845_v43, 2  ;;  %v1087_v29 = vmul.f32 %v6696_v45, %v6267_v16 }
 0x18e   : > { %v1331_v56 = vmax.f32 %v1282_v9, 0.0  ;;  %v2052_v40 = vadd.f32 %v2043_v52, %v1890_v58  ;;  %v7612_v53 = vrot.slane %v6532_v42, 2  ;;  %v7613_v21 = vrot.slane %v6547_v7, 1 }
 0x18f   : > { %v268_v33 = vsel %vm143_vm0, %v7611_v44, %v267_v61  ;;  %v7614_v44 = vrot.slane %v6552_v38, 2  ;;  %v1100_v6 = vrot.slane %v1087_v29, 1  ;;  %v1261_v61 = vmul.f32 %v6696_v45, %v6285_v49 }
 0x190   : > { %v276_v15 = vadd.f32 %v268_v33, %v120_v31  ;;  %v443_v26 = vsel %vm318_vm1, %v7612_v53, %v442_v13  ;;  %v685_v47 = vsel %vm143_vm0, %v7613_v21, %v684_v4  ;;  %v2127_v52 = vadd.f32 %v2123_v62, %v2052_v40 }
 0x191   : > { %v859_v10 = vsel %vm318_vm1, %v7614_v44, %v858_v57  ;;  %v1372_v42 = vmul.f32 %v6543_v46, %v6181_v55  ;;  %v1497_v7 = vmul.f32 %v6684_v51, %v6191_v20  ;;  %v7615_v38 = vrot.slane %v6567_v32, 1 }
 0x192   : > { %v451_v31 = vadd.f32 %v443_v26, %v276_v15  ;;  %v1274_v29 = vrot.slane %v1261_v61, 2  ;;  %v1659_v43 = vmul.f32 %v6684_v51, %v6206_v41  ;;  %v1744_v40 = vmul.f32 %v6563_v1, %v6219_v23  ;;  %v6749_v26 = vld [vmem:[%s3955_s10 + $0x98] sm:$0xff]  ;;  %s6766_s10 = sld [smem:[#allocation4 + $0x32]] }
 0x193   : > { %v1101_v24 = vsel %vm143_vm0, %v7615_v38, %v1100_v6  ;;  %v2270_v55 = vadd.f32 %v2261_v12, %v2127_v52  ;;  %v1376_v20 = vadd.f32 %v1372_v42, %v6172_v27  ;;  %v1510_v62 = vrot.slane %v1497_v7, 1 }
 0x194   : > { %v538_v15 = vadd.f32 %v534_v39, %v451_v31  ;;  %v7616_v32 = vrot.slane %v6583_v35, 2  ;;  %v1672_v58 = vrot.slane %v1659_v43, 2  ;;  %v1869_v41 = vmul.f32 %v6696_v45, %v6233_v2 }
 0x195   : > { %v2031_v23 = vmul.f32 %v6696_v45, %v6236_v19  ;;  %v2432_v13 = vadd.f32 %v2423_v34, %v2270_v55  ;;  %v7617_v12 = vrot.slane %v6600_v8, 1  ;;  %v2124_v27 = vmul.f32 %v6638_v59, %v6257_v28 }
 0x196   : > { %v1275_v9 = vsel %vm318_vm1, %v7616_v32, %v1274_v29  ;;  %v693_v33 = vadd.f32 %v685_v47, %v538_v15  ;;  %v7618_v4 = vrot.slane %v6604_v14, 2  ;;  %v1882_v57 = vrot.slane %v1869_v41, 1 }
 0x197   : > { %v1511_v39 = vsel %vm143_vm0, %v7617_v12, %v1510_v62  ;;  %v2044_v53 = vrot.slane %v2031_v23, 2  ;;  %v2479_v19 = vmax.f32 %v2432_v13, 0.0  ;;  %v2249_v8 = vmul.f32 %v6749_v26, %v6267_v16 }
 0x198   : > { %v1519_v35 = vadd.f32 %v1511_v39, %v1376_v20  ;;  %v1673_v2 = vsel %vm318_vm1, %v7618_v4, %v1672_v58  ;;  %v867_v34 = vadd.f32 %v859_v10, %v693_v33  ;;  %v2411_v28 = vmul.f32 %v6749_v26, %v6285_v49 }
 0x199   : > { %v7619_v21 = vrot.slane %v6618_v36, 1  ;;  %v7620_v44 = vrot.slane %v6622_v60, 2  ;;  %v6764_v6 = vstv %s6711_s30  ;;  %v2519_v61 = vmax.f32 %v1331_v56, %v2479_v19 }
 0x19a   : > { %v1681_v14 = vadd.f32 %v1673_v2, %v1519_v35  ;;  %v954_v52 = vadd.f32 %v950_v63, %v867_v34  ;;  %v2262_v16 = vrot.slane %v2249_v8, 1  ;;  %v2424_v31 = vrot.slane %v2411_v28, 2 }
 0x19b   : > { %v1883_v47 = vsel %vm143_vm0, %v7619_v21, %v1882_v57  ;;  %v2045_v10 = vsel %vm318_vm1, %v7620_v44, %v2044_v53  ;;  %v6771_v42 = vstv %s6717_s6  ;;  %v6774_v36 = vstv %s6726_s7  ;;  %2523 = vst [vmem:[#allocation2 + $0x90] sm:$0xff] %v2519_v61 }
 0x19c   : > { %v1748_v49 = vadd.f32 %v1744_v40, %v1681_v14  ;;  %v6777_v7 = vstv %s6728_s8  ;;  %v1109_v60 = vadd.f32 %v1101_v24, %v954_v52  ;;  %v7621_v38 = vrot.slane %v6642_v37, 1 }
 0x19d   : > { %v7622_v63 = vrot.slane %v6653_v54, 2  ;;  %v123_v43 = vmul.f32 %v6186_v17, %v6771_v42  ;;  %v279_v55 = vmul.f32 %v6186_v17, %v6774_v36  ;;  %v6793_v24 = vmul.f32 %v6199_v18, %v6774_v36 }
 0x19e   : > { %v2263_v56 = vsel %vm143_vm0, %v7621_v38, %v2262_v16  ;;  %v1891_v40 = vadd.f32 %v1883_v47, %v1748_v49  ;;  %v454_v37 = vmul.f32 %v6186_v17, %v6777_v7  ;;  %v1283_v54 = vadd.f32 %v1275_v9, %v1109_v60 }
 0x19f   : > { %v2425_v29 = vsel %vm318_vm1, %v7622_v63, %v2424_v31  ;;  %v127_v15 = vadd.f32 %v123_v43, %v6764_v6  ;;  %v6800_v20 = vmul.f32 %v6199_v18, %v6777_v7  ;;  %v6803_v62 = vstv %s6743_s9 }
 0x1a0   : > { %v2053_v32 = vadd.f32 %v2045_v10, %v1891_v40  ;;  %v289_v58 = vrot.slane %v279_v55, 1  ;;  %v290_v41 = vrot.slane %v6793_v24, 1  ;;  %v464_v23 = vrot.slane %v454_v37, 2 }
 0x1a1   : > { %v1332_v13 = vmax.f32 %v1283_v54, 0.0  ;;  %v465_v17 = vrot.slane %v6800_v20, 2  ;;  %v541_v9 = vmul.f32 %v6224_v50, %v6803_v62  ;;  %v6812_v33 = vstv %s6755_s11 }
 0x1a2   : > { %v2128_v12 = vadd.f32 %v2124_v27, %v2053_v32  ;;  %v291_v39 = vsel %vm143_vm0, %v289_v58, %v290_v41  ;;  %v696_v35 = vmul.f32 %v6224_v50, %v6812_v33  ;;  %v6821_v4 = vmul.f32 %v6241_v22, %v6812_v33 }
 0x1a3   : > { %v302_v2 = vadd.f32 %v291_v39, %v127_v15  ;;  %v466_v57 = vsel %vm318_vm1, %v464_v23, %v465_v17  ;;  %v6827_v53 = vstv %s6766_s10  ;;  %v6830_v19 = vstv %s6768_s12 }
 0x1a4   : > { %v2271_v27 = vadd.f32 %v2263_v56, %v2128_v12  ;;  %v706_v34 = vrot.slane %v696_v35, 1  ;;  %v707_v8 = vrot.slane %v6821_v4, 1  ;;  %v870_v28 = vmul.f32 %v6224_v50, %v6827_v53 }
 0x1a5   : > { %v477_v14 = vadd.f32 %v466_v57, %v302_v2  ;;  %v6837_v21 = vmul.f32 %v6241_v22, %v6827_v53  ;;  %v957_v47 = vmul.f32 %v6262_v30, %v6830_v19  ;;  %v6842_v44 = vstv %s6787_s13 }
 0x1a6   : > { %v2433_v10 = vadd.f32 %v2425_v29, %v2271_v27  ;;  %v708_v61 = vsel %vm143_vm0, %v706_v34, %v707_v8  ;;  %v880_v52 = vrot.slane %v870_v28, 2  ;;  %v1112_v16 = vmul.f32 %v6262_v30, %v6842_v44 }
 0x1a7   : > { %v545_v31 = vadd.f32 %v541_v9, %v477_v14  ;;  %v881_v49 = vrot.slane %v6837_v21, 2  ;;  %v6852_v60 = vmul.f32 %v6278_v5, %v6842_v44  ;;  %v6855_v38 = vstv %s6805_s14 }
 0x1a8   : > { %v2480_v56 = vmax.f32 %v2433_v10, 0.0  ;;  %v1122_v63 = vrot.slane %v1112_v16, 1  ;;  %v1286_v29 = vmul.f32 %v6262_v30, %v6855_v38  ;;  %v6861_v43 = vmul.f32 %v6278_v5, %v6855_v38 }
 0x1a9   : > { %v719_v40 = vadd.f32 %v708_v61, %v545_v31  ;;  %v882_v55 = vsel %vm318_vm1, %v880_v52, %v881_v49  ;;  %v1123_v37 = vrot.slane %v6852_v60, 1  ;;  %v1377_v54 = vmul.f32 %v6224_v50, %v6771_v42 }
 0x1aa   : > { %v2520_v15 = vmax.f32 %v1332_v13, %v2480_v56  ;;  %v1296_v32 = vrot.slane %v1286_v29, 2  ;;  %v1297_v58 = vrot.slane %v6861_v43, 2  ;;  %v1520_v23 = vmul.f32 %v6224_v50, %v6774_v36 }
 0x1ab   : > { %v893_v9 = vadd.f32 %v882_v55, %v719_v40  ;;  %v1124_v12 = vsel %vm143_vm0, %v1122_v63, %v1123_v37  ;;  %v6877_v39 = vmul.f32 %v6241_v22, %v6774_v36  ;;  %v1381_v35 = vadd.f32 %v1377_v54, %v6764_v6 }
 0x1ac   : > { %2524 = vst [vmem:[#allocation2 + $0x98] sm:$0xff] %v2520_v15  ;;  %v1530_v2 = vrot.slane %v1520_v23, 1  ;;  %v1682_v13 = vmul.f32 %v6224_v50, %v6777_v7  ;;  %v6884_v57 = vmul.f32 %v6241_v22, %v6777_v7  ;;  %v1298_v34 = vsel %vm318_vm1, %v1296_v32, %v1297_v58 }
 0x1ad   : > { %v961_v27 = vadd.f32 %v957_v47, %v893_v9  ;;  %v1531_v28 = vrot.slane %v6877_v39, 1  ;;  %v1892_v14 = vmul.f32 %v6262_v30, %v6812_v33  ;;  %v6895_v50 = vmul.f32 %v6278_v5, %v6812_v33 }
 0x1ae   : > { %v1692_v10 = vrot.slane %v1682_v13, 2  ;;  %v1693_v61 = vrot.slane %v6884_v57, 2  ;;  %v2054_v52 = vmul.f32 %v6262_v30, %v6827_v53  ;;  %v6904_v56 = vmul.f32 %v6278_v5, %v6827_v53 }
 0x1af   : > { %v1135_v47 = vadd.f32 %v1124_v12, %v961_v27  ;;  %v1532_v16 = vsel %vm143_vm0, %v1530_v2, %v1531_v28  ;;  %v1902_v31 = vrot.slane %v1892_v14, 1  ;;  %v1749_v40 = vmul.f32 %v6262_v30, %v6803_v62 }
 0x1b0   : > { %v1543_v63 = vadd.f32 %v1532_v16, %v1381_v35  ;;  %v1694_v29 = vsel %vm318_vm1, %v1692_v10, %v1693_v61  ;;  %v1903_v55 = vrot.slane %v6895_v50, 1  ;;  %v2064_v54 = vrot.slane %v2054_v52, 2 }
 0x1b1   : > { %v7515_v15 = vrot.slane %v6904_v56, 2  ;;  %v2272_v32 = vmul.f32 %v6342_v11, %v6842_v44  ;;  %v6917_v9 = vmul.f32 %v6354_v0, %v6842_v44  ;;  %v2434_v12 = vmul.f32 %v6342_v11, %v6855_v38 }
 0x1b2   : > { %v1705_v23 = vadd.f32 %v1694_v29, %v1543_v63  ;;  %v1309_v35 = vadd.f32 %v1298_v34, %v1135_v47  ;;  %v1904_v30 = vsel %vm143_vm0, %v1902_v31, %v1903_v55  ;;  %v2129_v2 = vmul.f32 %v6342_v11, %v6830_v19 }
 0x1b3   : > { %v6928_v13 = vmul.f32 %v6354_v0, %v6855_v38  ;;  %v2282_v14 = vrot.slane %v2272_v32, 1  ;;  %v7514_v10 = vrot.slane %v6917_v9, 1  ;;  %v124_v52 = vmul.f32 %v6199_v18, %v6771_v42 }
 0x1b4   : > { %v1753_v27 = vadd.f32 %v1749_v40, %v1705_v23  ;;  %v2066_v34 = vsel %vm318_vm1, %v2064_v54, %v7515_v15  ;;  %v2444_v47 = vrot.slane %v2434_v12, 2  ;;  %v6938_v16 = vmul.f32 %v6374_v48, %v6774_v36 }
 0x1b5   : > { %v6942_v11 = vmul.f32 %v6374_v48, %v6777_v7  ;;  %v2445_v63 = vrot.slane %v6928_v13, 2  ;;  %v128_v29 = vadd.f32 %v124_v52, %v6764_v6  ;;  %v6948_v18 = vmul.f32 %v6395_v25, %v6812_v33 }
 0x1b6   : > { %v1915_v31 = vadd.f32 %v1904_v30, %v1753_v27  ;;  %v1333_v40 = vmax.f32 %v1309_v35, 0.0  ;;  %v292_v54 = vrot.slane %v6938_v16, 1  ;;  %v6954_v23 = vmul.f32 %v6395_v25, %v6827_v53 }
 0x1b7   : > { %v7516_v32 = vrot.slane %v6942_v11, 2  ;;  %v2284_v30 = vsel %vm143_vm0, %v2282_v14, %v7514_v10  ;;  %v7517_v27 = vrot.slane %v6948_v18, 1  ;;  %v6962_v52 = vmul.f32 %v6415_v3, %v6842_v44 }
 0x1b8   : > { %v2077_v12 = vadd.f32 %v2066_v34, %v1915_v31  ;;  %v293_v35 = vsel %vm143_vm0, %v290_v41, %v292_v54  ;;  %v7518_v14 = vrot.slane %v6954_v23, 2  ;;  %v6977_v31 = vmul.f32 %v6415_v3, %v6855_v38 }
 0x1b9   : > { %v468_v34 = vsel %vm318_vm1, %v465_v17, %v7516_v32  ;;  %v2446_v15 = vsel %vm318_vm1, %v2444_v47, %v2445_v63  ;;  %v303_v24 = vadd.f32 %v293_v35, %v128_v29  ;;  %v542_v41 = vmul.f32 %v6241_v22, %v6803_v62 }
 0x1ba   : > { %v2133_v10 = vadd.f32 %v2129_v2, %v2077_v12  ;;  %v710_v20 = vsel %vm143_vm0, %v707_v8, %v7517_v27  ;;  %v958_v17 = vmul.f32 %v6278_v5, %v6830_v19  ;;  %v1378_v2 = vmul.f32 %v6241_v22, %v6771_v42 }
 0x1bb   : > { %v6995_v12 = vmul.f32 %v6395_v25, %v6774_v36  ;;  %v478_v29 = vadd.f32 %v468_v34, %v303_v24  ;;  %v1125_v35 = vrot.slane %v6962_v52, 1  ;;  %v7000_v32 = vmul.f32 %v6395_v25, %v6777_v7 }
 0x1bc   : > { %v2295_v47 = vadd.f32 %v2284_v30, %v2133_v10  ;;  %v884_v4 = vsel %vm318_vm1, %v881_v49, %v7518_v14  ;;  %v1299_v22 = vrot.slane %v6977_v31, 2  ;;  %v1382_v8 = vadd.f32 %v1378_v2, %v6764_v6 }
 0x1bd   : > { %v7519_v27 = vrot.slane %v6995_v12, 1  ;;  %v546_v30 = vadd.f32 %v542_v41, %v478_v29  ;;  %v1695_v34 = vrot.slane %v7000_v32, 2  ;;  %v7013_v24 = vmul.f32 %v6415_v3, %v6812_v33 }
 0x1be   : > { %v2457_v10 = vadd.f32 %v2446_v15, %v2295_v47  ;;  %v1750_v49 = vmul.f32 %v6278_v5, %v6803_v62  ;;  %v7024_v2 = vmul.f32 %v6415_v3, %v6827_v53  ;;  %v7623_v15 = vld [vmem:[#allocation10_spill] sm:$0xff]  ;;  %v1126_v5 = vsel %vm143_vm0, %v1123_v37, %v1125_v35 }
 0x1bf   : > { %v1534_v21 = vsel %vm143_vm0, %v1531_v28, %v7519_v27  ;;  %v7028_v41 = vmul.f32 %v7623_v15, %v6842_v44  ;;  %v720_v29 = vadd.f32 %v710_v20, %v546_v30  ;;  %v1696_v39 = vsel %vm318_vm1, %v1693_v61, %v1695_v34 }
 0x1c0   : > { %v2481_v47 = vmax.f32 %v2457_v10, 0.0  ;;  %v1544_v14 = vadd.f32 %v1534_v21, %v1382_v8  ;;  %v1905_v28 = vrot.slane %v7013_v24, 1  ;;  %v2067_v27 = vrot.slane %v7024_v2, 2 }
 0x1c1   : > { %v7044_v20 = vmul.f32 %v7623_v15, %v6855_v38  ;;  %v894_v10 = vadd.f32 %v884_v4, %v720_v29  ;;  %v125_v57 = vmul.f32 %v6374_v48, %v6771_v42  ;;  %v1300_v60 = vsel %vm318_vm1, %v1297_v58, %v1299_v22  ;;  %v7625_v4 = vld [vmem:[#allocation11_spill] sm:$0xff] }
 0x1c2   : > { %v2525_v8 = vmax.f32 %v1333_v40, %v2481_v47  ;;  %v1706_v30 = vadd.f32 %v1696_v39, %v1544_v14  ;;  %v1906_v37 = vsel %vm143_vm0, %v1903_v55, %v1905_v28  ;;  %v2130_v61 = vmul.f32 %v6354_v0, %v6830_v19 }
 0x1c3   : > { %v2285_v40 = vrot.slane %v7028_v41, 1  ;;  %v962_v14 = vadd.f32 %v958_v17, %v894_v10  ;;  %v7624_v43 = vrot.slane %v6904_v56, 2  ;;  %v7068_v21 = vmul.f32 %v7625_v4, %v6774_v36 }
 0x1c4   : > { %2529 = vst [vmem:[#allocation2 + $0xa0] sm:$0xff] %v2525_v8  ;;  %v1754_v48 = vadd.f32 %v1750_v49, %v1706_v30  ;;  %v7522_v50 = vrot.slane %v7044_v20, 2  ;;  %v129_v55 = vadd.f32 %v125_v57, %v6764_v6  ;;  %v7074_v0 = vmul.f32 %v7625_v4, %v6777_v7 }
 0x1c5   : > { %v2068_v58 = vsel %vm318_vm1, %v7624_v43, %v2067_v27  ;;  %v7078_v17 = vmul.f32 %v6543_v46, %v6812_v33  ;;  %v1136_v49 = vadd.f32 %v1126_v5, %v962_v14  ;;  %v294_v47 = vrot.slane %v7068_v21, 1 }
 0x1c6   : > { %v1916_v56 = vadd.f32 %v1906_v37, %v1754_v48  ;;  %v7083_v29 = vmul.f32 %v6543_v46, %v6827_v53  ;;  %v7626_v39 = vrot.slane %v6917_v9, 1  ;;  %v469_v10 = vrot.slane %v7074_v0, 2 }
 0x1c7   : > { %v7520_v30 = vrot.slane %v7078_v17, 1  ;;  %v7094_v5 = vmul.f32 %v6563_v1, %v6842_v44  ;;  %v1310_v57 = vadd.f32 %v1300_v60, %v1136_v49  ;;  %v295_v14 = vsel %vm143_vm0, %v292_v54, %v294_v47 }
 0x1c8   : > { %v2286_v8 = vsel %vm143_vm0, %v7626_v39, %v2285_v40  ;;  %v2078_v37 = vadd.f32 %v2068_v58, %v1916_v56  ;;  %v7521_v9 = vrot.slane %v7083_v29, 2  ;;  %v2448_v48 = vsel %vm318_vm1, %v2445_v63, %v7522_v50 }
 0x1c9   : > { %v304_v43 = vadd.f32 %v295_v14, %v129_v55  ;;  %v7627_v60 = vrot.slane %v6942_v11, 2  ;;  %v543_v16 = vmul.f32 %v6395_v25, %v6803_v62  ;;  %v7628_v54 = vrot.slane %v6948_v18, 1 }
 0x1ca   : > { %v2134_v49 = vadd.f32 %v2130_v61, %v2078_v37  ;;  %v959_v13 = vmul.f32 %v6415_v3, %v6830_v19  ;;  %v7123_v63 = vmul.f32 %v6563_v1, %v6855_v38  ;;  %v1127_v55 = vrot.slane %v7094_v5, 1 }
 0x1cb   : > { %v470_v58 = vsel %vm318_vm1, %v7627_v60, %v469_v10  ;;  %v712_v56 = vsel %vm143_vm0, %v7628_v54, %v7520_v30  ;;  %v1379_v39 = vmul.f32 %v6395_v25, %v6771_v42  ;;  %v7130_v61 = vmul.f32 %v6543_v46, %v6774_v36 }
 0x1cc   : > { %v479_v11 = vadd.f32 %v470_v58, %v304_v43  ;;  %v1334_v18 = vmax.f32 %v1310_v57, 0.0  ;;  %v2296_v37 = vadd.f32 %v2286_v8, %v2134_v49  ;;  %v7629_v14 = vrot.slane %v6954_v23, 2 }
 0x1cd   : > { %v7139_v43 = vmul.f32 %v6543_v46, %v6777_v7  ;;  %v1383_v54 = vadd.f32 %v1379_v39, %v6764_v6  ;;  %v1535_v25 = vrot.slane %v7130_v61, 1  ;;  %v7145_v30 = vmul.f32 %v6563_v1, %v6812_v33 }
 0x1ce   : > { %v886_v60 = vsel %vm318_vm1, %v7629_v14, %v7521_v9  ;;  %v547_v58 = vadd.f32 %v543_v16, %v479_v11  ;;  %v2458_v8 = vadd.f32 %v2448_v48, %v2296_v37  ;;  %v1301_v57 = vrot.slane %v7123_v63, 2 }
 0x1cf   : > { %v1697_v23 = vrot.slane %v7139_v43, 2  ;;  %v7151_v49 = vmul.f32 %v6563_v1, %v6827_v53  ;;  %v7630_v16 = vrot.slane %v6995_v12, 1  ;;  %v1751_v39 = vmul.f32 %v6415_v3, %v6803_v62 }
 0x1d0   : > { %v721_v14 = vadd.f32 %v712_v56, %v547_v58  ;;  %v1907_v48 = vrot.slane %v7145_v30, 1  ;;  %v2482_v37 = vmax.f32 %v2458_v8, 0.0  ;;  %v1128_v12 = vsel %vm143_vm0, %v1125_v35, %v1127_v55 }
 0x1d1   : > { %v1536_v11 = vsel %vm143_vm0, %v7630_v16, %v1535_v25  ;;  %v1698_v50 = vsel %vm318_vm1, %v1695_v34, %v1697_v23  ;;  %v2069_v56 = vrot.slane %v7151_v49, 2  ;;  %v7174_v3 = vmul.f32 %v6638_v59, %v6842_v44 }
 0x1d2   : > { %v1545_v9 = vadd.f32 %v1536_v11, %v1383_v54  ;;  %v895_v58 = vadd.f32 %v886_v60, %v721_v14  ;;  %v7178_v54 = vmul.f32 %v6638_v59, %v6855_v38  ;;  %v2526_v32 = vmax.f32 %v1334_v18, %v2482_v37  ;;  %v7631_v14 = vld [vmem:[#allocation12_spill] sm:$0xff] }
 0x1d3   : > { %v1302_v34 = vsel %vm318_vm1, %v1299_v22, %v1301_v57  ;;  %v126_v52 = vmul.f32 %v7625_v4, %v6771_v42  ;;  %v1908_v8 = vsel %vm143_vm0, %v1905_v28, %v1907_v48  ;;  %v2131_v18 = vmul.f32 %v7623_v15, %v6830_v19 }
 0x1d4   : > { %v1707_v60 = vadd.f32 %v1698_v50, %v1545_v9  ;;  %v963_v35 = vadd.f32 %v959_v13, %v895_v58  ;;  %v283_v16 = vmul.f32 %v7631_v14, %v6774_v36  ;;  %2530 = vst [vmem:[#allocation2 + $0xa8] sm:$0xff] %v2526_v32  ;;  %v2070_v22 = vsel %vm318_vm1, %v2067_v27, %v2069_v56 }
 0x1d5   : > { %v130_v4 = vadd.f32 %v126_v52, %v6764_v6  ;;  %v458_v24 = vmul.f32 %v7631_v14, %v6777_v7  ;;  %v2287_v50 = vrot.slane %v7174_v3, 1  ;;  %v2449_v15 = vrot.slane %v7178_v54, 2 }
 0x1d6   : > { %v1755_v31 = vadd.f32 %v1751_v39, %v1707_v60  ;;  %v1137_v28 = vadd.f32 %v1128_v12, %v963_v35  ;;  %v296_v9 = vrot.slane %v283_v16, 1  ;;  %v700_v39 = vmul.f32 %v6684_v51, %v6812_v33 }
 0x1d7   : > { %v471_v11 = vrot.slane %v458_v24, 2  ;;  %v874_v2 = vmul.f32 %v6684_v51, %v6827_v53  ;;  %v544_v58 = vmul.f32 %v6543_v46, %v6803_v62  ;;  %v1116_v12 = vmul.f32 %v6696_v45, %v6842_v44 }
 0x1d8   : > { %v1917_v13 = vadd.f32 %v1908_v8, %v1755_v31  ;;  %v1311_v27 = vadd.f32 %v1302_v34, %v1137_v28  ;;  %v297_v37 = vsel %vm143_vm0, %v294_v47, %v296_v9  ;;  %v713_v35 = vrot.slane %v700_v39, 1 }
 0x1d9   : > { %v305_v60 = vadd.f32 %v297_v37, %v130_v4  ;;  %v472_v52 = vsel %vm318_vm1, %v469_v10, %v471_v11  ;;  %v2288_v21 = vsel %vm143_vm0, %v2285_v40, %v2287_v50  ;;  %v7632_v47 = vrot.slane %v7044_v20, 2  ;;  %v2537_v11 = vld [vmem:[#allocation2 + $0x1] ss:$2 sm:$0xff] }
 0x1da   : > { %v2079_v32 = vadd.f32 %v2070_v22, %v1917_v13  ;;  %v887_v8 = vrot.slane %v874_v2, 2  ;;  %v960_v0 = vmul.f32 %v6563_v1, %v6830_v19  ;;  %v1380_v10 = vmul.f32 %v6543_v46, %v6771_v42 }
 0x1db   : > { %v2450_v34 = vsel %vm318_vm1, %v7632_v47, %v2449_v15  ;;  %v480_v16 = vadd.f32 %v472_v52, %v305_v60  ;;  %v1335_v31 = vmax.f32 %v1311_v27, 0.0  ;;  %v7633_v41 = vrot.slane %v7078_v17, 1  ;;  %v2549_v60 = vld [vmem:[#allocation2 + $0x30] ss:$2 sm:$0xff]  ;;  %v2553_v52 = vld [vmem:[#allocation2 + $0x31] ss:$2 sm:$0xff] }
 0x1dc   : > { %v2135_v14 = vadd.f32 %v2131_v18, %v2079_v32  ;;  %v1129_v22 = vrot.slane %v1116_v12, 1  ;;  %v1524_v20 = vmul.f32 %v6684_v51, %v6774_v36  ;;  %v1384_v18 = vadd.f32 %v1380_v10, %v6764_v6  ;;  %v2533_v36 = vld [vmem:[#allocation2] ss:$2 sm:$0xff]  ;;  %v2551_v32 = vld [vmem:[#allocation2 + $0x21] ss:$2 sm:$0xff] }
 0x1dd   : > { %v714_v40 = vsel %vm143_vm0, %v7633_v41, %v713_v35  ;;  %v548_v24 = vadd.f32 %v544_v58, %v480_v16  ;;  %v1686_v28 = vmul.f32 %v6684_v51, %v6777_v7  ;;  %v7634_v9 = vrot.slane %v7083_v29, 2  ;;  %v2535_v7 = vld [vmem:[#allocation2 + $0x10] ss:$2 sm:$0xff]  ;;  %v2539_v29 = vld [vmem:[#allocation2 + $0x11] ss:$2 sm:$0xff] }
 0x1de   : > { %v2297_v4 = vadd.f32 %v2288_v21, %v2135_v14  ;;  %v7247_v42 = vmul.f32 %v6696_v45, %v6855_v38  ;;  %v1537_v17 = vrot.slane %v1524_v20, 1  ;;  %v1896_v13 = vmul.f32 %v6696_v45, %v6812_v33  ;;  %v2547_v12 = vld [vmem:[#allocation2 + $0x20] ss:$2 sm:$0xff]  ;;  %v2566_v21 = vld [vmem:[#allocation2 + $0x41] ss:$2 sm:$0xff] }
 0x1df   : > { %v888_v46 = vsel %vm318_vm1, %v7634_v9, %v887_v8  ;;  %v722_v6 = vadd.f32 %v714_v40, %v548_v24  ;;  %v1699_v2 = vrot.slane %v1686_v28, 2  ;;  %v2058_v51 = vmul.f32 %v6696_v45, %v6827_v53  ;;  %v2564_v47 = vld [vmem:[#allocation2 + $0x50] ss:$2 sm:$0xff]  ;;  %v2577_v8 = vld [vmem:[#allocation2 + $0x60] ss:$2 sm:$0xff] }
 0x1e0   : > { %v2459_v39 = vadd.f32 %v2450_v34, %v2297_v4  ;;  %v1538_v27 = vsel %vm143_vm0, %v1535_v25, %v1537_v17  ;;  %v1752_v37 = vmul.f32 %v6563_v1, %v6803_v62  ;;  %v1909_v58 = vrot.slane %v1896_v13, 1  ;;  %v2562_v25 = vld [vmem:[#allocation2 + $0x40] ss:$2 sm:$0xff]  ;;  %v2568_v1 = vld [vmem:[#allocation2 + $0x51] ss:$2 sm:$0xff] }
 0x1e1   : > { %v7261_v33 = vmul.f32 %v6749_v26, %v6842_v44  ;;  %v896_v45 = vadd.f32 %v888_v46, %v722_v6  ;;  %v1546_v53 = vadd.f32 %v1538_v27, %v1384_v18  ;;  %v1700_v61 = vsel %vm318_vm1, %v1697_v23, %v1699_v2  ;;  %v2581_v14 = vld [vmem:[#allocation2 + $0x61] ss:$2 sm:$0xff]  ;;  %v2579_v40 = vld [vmem:[#allocation2 + $0x70] ss:$2 sm:$0xff]  ;;  %v2583_v23 = vld [vmem:[#allocation2 + $0x71] ss:$2 sm:$0xff] }
 0x1e2   : > { %v2483_v35 = vmax.f32 %v2459_v39, 0.0  ;;  %v1130_v62 = vsel %vm143_vm0, %v1127_v55, %v1129_v22  ;;  %v1303_v44 = vrot.slane %v7247_v42, 2  ;;  %v2071_v34 = vrot.slane %v2058_v51, 2  ;;  %v2592_v20 = vld [vmem:[#allocation2 + $0x80] ss:$2 sm:$0xff] }
 0x1e3   : > { %v964_v10 = vadd.f32 %v960_v0, %v896_v45  ;;  %v1708_v41 = vadd.f32 %v1700_v61, %v1546_v53  ;;  %v2540_v43 = vmax.f32 %v2533_v36, %v2537_v11  ;;  %v1910_v4 = vsel %vm143_vm0, %v1907_v48, %v1909_v58  ;;  %v2596_v24 = vld [vmem:[#allocation2 + $0x81] ss:$2 sm:$0xff]  ;;  %v2598_v0 = vld [vmem:[#allocation2 + $0x91] ss:$2 sm:$0xff] }
 0x1e4   : > { %v2527_v16 = vmax.f32 %v1335_v31, %v2483_v35  ;;  %v2132_v5 = vmul.f32 %v6638_v59, %v6830_v19  ;;  %v2438_v55 = vmul.f32 %v6749_v26, %v6855_v38  ;;  %v2541_v22 = vmax.f32 %v2535_v7, %v2539_v29  ;;  %v2594_v31 = vld [vmem:[#allocation2 + $0x90] ss:$2 sm:$0xff]  ;;  %v2607_v26 = vld [vmem:[#allocation2 + $0xa0] ss:$2 sm:$0xff]  ;;  %v2611_v38 = vld [vmem:[#allocation2 + $0xa1] ss:$2 sm:$0xff] }
 0x1e5   : > { %v1756_v18 = vadd.f32 %v1752_v37, %v1708_v41  ;;  %v2289_v28 = vrot.slane %v7261_v33, 1  ;;  %2544 = vst [vmem:[%s7280_s16] sm:$0xff] %v2540_v43  ;;  %v2554_v59 = vmax.f32 %v2547_v12, %v2551_v32  ;;  %v2555_v19 = vmax.f32 %v2549_v60, %v2553_v52 }
 0x1e6   : > { %2531 = vst [vmem:[#allocation2 + $0xb0] sm:$0xff] %v2527_v16  ;;  %v2072_v30 = vsel %vm318_vm1, %v2069_v56, %v2071_v34  ;;  %2545 = vst [vmem:[%s7280_s16 + $0x8] sm:$0xff] %v2541_v22  ;;  %v2569_v48 = vmax.f32 %v2562_v25, %v2566_v21  ;;  %v2570_v9 = vmax.f32 %v2564_v47, %v2568_v1  ;;  %v2451_v11 = vrot.slane %v2438_v55, 2 }
 0x1e7   : > { %v2584_v46 = vmax.f32 %v2577_v8, %v2581_v14  ;;  %v1138_v42 = vadd.f32 %v1130_v62, %v964_v10  ;;  %v1918_v17 = vadd.f32 %v1910_v4, %v1756_v18  ;;  %3421 = vst [vmem:[%s7280_s16 + $0xf0] sm:$0xff] %v2554_v59  ;;  %3422 = vst [vmem:[%s7280_s16 + $0xf8] sm:$0xff] %v2555_v19  ;;  %v3908_v45 = vmov (%p47_p10), 0  }
 0x1e8   : > { %v2585_v13 = vmax.f32 %v2579_v40, %v2583_v23  ;;  %v2599_v36 = vmax.f32 %v2592_v20, %v2596_v24  ;;  %v1304_v49 = vsel %vm318_vm1, %v1301_v57, %v1303_v44  ;;  %3424 = vst [vmem:[%s7280_s16 + $0x1e0] sm:$0xff] %v2569_v48  ;;  %3425 = vst [vmem:[%s7280_s16 + $0x1e8] sm:$0xff] %v2570_v9  ;;  %3869 = vset.pattern.permute.xlu0 (%p47_p10), %v3908_v45  ;;  %vm2837_vm2 = vcmask (%p47_p10), 261120  }
 0x1e9   : > { %3427 = vst [vmem:[%s7280_s16 + $0x2d0] sm:$0xff] %v2584_v46  ;;  %v2600_v56 = vmax.f32 %v2594_v31, %v2598_v0  ;;  %v2614_v39 = vmax.f32 %v2607_v26, %v2611_v38  ;;  %v2080_v6 = vadd.f32 %v2072_v30, %v1918_v17  ;;  %v2290_v2 = vsel %vm143_vm0, %v2287_v50, %v2289_v28 }
 0x1ea   : > { %3428 = vst [vmem:[%s7280_s16 + $0x2d8] sm:$0xff] %v2585_v13  ;;  %3430 = vst [vmem:[%s7280_s16 + $0x3c0] sm:$0xff] %v2599_v36  ;;  %v1312_v51 = vadd.f32 %v1304_v49, %v1138_v42  ;;  %v2452_v57 = vsel %vm318_vm1, %v2449_v15, %v2451_v11 }
 0x1eb   : > { %3431 = vst [vmem:[%s7280_s16 + $0x3c8] sm:$0xff] %v2600_v56  ;;  %3433 = vst [vmem:[%s7280_s16 + $0x4b0] sm:$0xff] %v2614_v39  ;;  %v2136_v63 = vadd.f32 %v2132_v5, %v2080_v6 }
 0x1ec   : > { %v1336_v29 = vmax.f32 %v1312_v51, 0.0 }
 0x1ed   : > { %v2298_v7 = vadd.f32 %v2290_v2, %v2136_v63 }
 0x1ef   : > { %v2460_v27 = vadd.f32 %v2452_v57, %v2298_v7 }
 0x1f1   : > { %v2484_v37 = vmax.f32 %v2460_v27, 0.0 }
 0x1f3   : > { %v2528_v58 = vmax.f32 %v1336_v29, %v2484_v37 }
 0x1f5   : > { %2532 = vst [vmem:[#allocation2 + $0xb8] sm:$0xff] %v2528_v58 }
 0x1f9   :  { %49 = sbr.rel (!%p47_p10) target bundleno = 29 (0x1d), region = 88 }
 0x1fc   : > { %v2609_v33 = vld [vmem:[#allocation2 + $0xb0] ss:$2 sm:$0xff]  ;;  %v2613_v12 = vld [vmem:[#allocation2 + $0xb1] ss:$2 sm:$0xff] }
 0x1fd   : > { %v2615_v3 = vmax.f32 %v2609_v33, %v2613_v12 }
 0x1ff   : > { %3434 = vst [vmem:[%s7280_s16 + $0x4b8] sm:$0xff] %v2615_v3 }
 0x206   :  { %v2661_v50 = vld [vmem:[#allocation3 + $0x80] sm:$0xff]  ;;  %v2662_v54 = vld [vmem:[#allocation3 + $0x88] sm:$0xff]  ;;  %v2663_v47 = vld [vmem:[#allocation3 + $0x90] sm:$0xff] }
 0x207   :  { %v2693_v32 = vld [vmem:[#allocation3 + $0x180] sm:$0xff]  ;;  %v3627_v15 = vpack.c.bf16 %v2662_v54, %v2661_v50  ;;  %v2694_v60 = vld [vmem:[#allocation3 + $0x188] sm:$0xff]  ;;  %v2664_v62 = vld [vmem:[#allocation3 + $0x98] sm:$0xff] }
 0x208   :  { %v2645_v52 = vld [vmem:[#allocation3] sm:$0xff]  ;;  %v2646_v35 = vld [vmem:[#allocation3 + $0x8] sm:$0xff]  ;;  %v3659_v53 = vpack.c.bf16 %v2694_v60, %v2693_v32  ;;  %v2695_v44 = vld [vmem:[#allocation3 + $0x190] sm:$0xff]  ;;  %v3631_v8 = vpack.c.bf16 %v2664_v62, %v2663_v47 }
 0x209   :  { %v3629_v61 = vpack.c.bf16 %v2646_v35, %v2645_v52  ;;  %v2677_v25 = vld [vmem:[#allocation3 + $0x100] sm:$0xff]  ;;  %v2678_v21 = vld [vmem:[#allocation3 + $0x108] sm:$0xff]  ;;  %3628 = vmatprep.subr.bf16.mxu0 %v3627_v15  ;;  %v2696_v34 = vld [vmem:[#allocation3 + $0x198] sm:$0xff] }
 0x20a   :  { %v3661_v1 = vpack.c.bf16 %v2678_v21, %v2677_v25  ;;  %3660 = vmatprep.subr.bf16.mxu1 %v3659_v53  ;;  %v3663_v14 = vpack.c.bf16 %v2696_v34, %v2695_v44  ;;  %v2647_v16 = vld [vmem:[#allocation3 + $0x10] sm:$0xff]  ;;  %v2648_v10 = vld [vmem:[#allocation3 + $0x18] sm:$0xff]  ;;  %v2665_v23 = vld [vmem:[#allocation3 + $0xa0] sm:$0xff] }
 0x20b   :  { %3630 = vmatpush3.bf16.msra.mxu0 %v3629_v61  ;;  %v2679_v41 = vld [vmem:[#allocation3 + $0x110] sm:$0xff]  ;;  %v3633_v43 = vpack.c.bf16 %v2648_v10, %v2647_v16  ;;  %v2680_v40 = vld [vmem:[#allocation3 + $0x118] sm:$0xff]  ;;  %v2666_v20 = vld [vmem:[#allocation3 + $0xa8] sm:$0xff] }
 0x20c   :  { %3662 = vmatpush3.bf16.msra.mxu1 %v3661_v1  ;;  %3632 = vmatprep.subr.bf16.mxu0 %v3631_v8  ;;  %v3665_v4 = vpack.c.bf16 %v2680_v40, %v2679_v41  ;;  %v3635_v5 = vpack.c.bf16 %v2666_v20, %v2665_v23  ;;  %v2697_v55 = vld [vmem:[#allocation3 + $0x1a0] sm:$0xff]  ;;  %v2698_v22 = vld [vmem:[#allocation3 + $0x1a8] sm:$0xff]  ;;  %v2667_v19 = vld [vmem:[#allocation3 + $0xb0] sm:$0xff] }
 0x20d   :  { %3664 = vmatprep.subr.bf16.mxu1 %v3663_v14  ;;  %v2649_v24 = vld [vmem:[#allocation3 + $0x20] sm:$0xff]  ;;  %v3667_v31 = vpack.c.bf16 %v2698_v22, %v2697_v55  ;;  %v2650_v0 = vld [vmem:[#allocation3 + $0x28] sm:$0xff]  ;;  %v2668_v26 = vld [vmem:[#allocation3 + $0xb8] sm:$0xff] }
 0x20e   :  { %v2681_v18 = vld [vmem:[#allocation3 + $0x120] sm:$0xff]  ;;  %v2682_v28 = vld [vmem:[#allocation3 + $0x128] sm:$0xff]  ;;  %v3637_v59 = vpack.c.bf16 %v2650_v0, %v2649_v24  ;;  %v2699_v38 = vld [vmem:[#allocation3 + $0x1b0] sm:$0xff]  ;;  %v3639_v48 = vpack.c.bf16 %v2668_v26, %v2667_v19 }
 0x20f   :  { %3634 = vmatpush3.bf16.msra.mxu0 %v3633_v43  ;;  %v3669_v30 = vpack.c.bf16 %v2682_v28, %v2681_v18  ;;  %v2700_v9 = vld [vmem:[#allocation3 + $0x1b8] sm:$0xff]  ;;  %v2651_v46 = vld [vmem:[#allocation3 + $0x30] sm:$0xff]  ;;  %v2669_v49 = vld [vmem:[#allocation3 + $0xc0] sm:$0xff] }
 0x210   :  { %3666 = vmatpush3.bf16.msra.mxu1 %v3665_v4  ;;  %3636 = vmatprep.subr.bf16.mxu0 %v3635_v5  ;;  %v2652_v42 = vld [vmem:[#allocation3 + $0x38] sm:$0xff]  ;;  %v3671_v17 = vpack.c.bf16 %v2700_v9, %v2699_v38  ;;  %v2683_v13 = vld [vmem:[#allocation3 + $0x130] sm:$0xff]  ;;  %v2670_v11 = vld [vmem:[#allocation3 + $0xc8] sm:$0xff] }
 0x211   :  { %3668 = vmatprep.subr.bf16.mxu1 %v3667_v31  ;;  %v2684_v36 = vld [vmem:[#allocation3 + $0x138] sm:$0xff]  ;;  %v2701_v56 = vld [vmem:[#allocation3 + $0x1c0] sm:$0xff]  ;;  %v2702_v39 = vld [vmem:[#allocation3 + $0x1c8] sm:$0xff]  ;;  %v3641_v6 = vpack.c.bf16 %v2652_v42, %v2651_v46  ;;  %v3643_v51 = vpack.c.bf16 %v2670_v11, %v2669_v49 }
 0x212   :  { %v3673_v2 = vpack.c.bf16 %v2684_v36, %v2683_v13  ;;  %v2653_v63 = vld [vmem:[#allocation3 + $0x40] sm:$0xff]  ;;  %v2654_v57 = vld [vmem:[#allocation3 + $0x48] sm:$0xff]  ;;  %v3675_v29 = vpack.c.bf16 %v2702_v39, %v2701_v56  ;;  %v2671_v37 = vld [vmem:[#allocation3 + $0xd0] sm:$0xff] }
 0x213   :  { %3638 = vmatpush3.bf16.msra.mxu0 %v3637_v59  ;;  %v2685_v7 = vld [vmem:[#allocation3 + $0x140] sm:$0xff]  ;;  %v2686_v27 = vld [vmem:[#allocation3 + $0x148] sm:$0xff]  ;;  %v2672_v58 = vld [vmem:[#allocation3 + $0xd8] sm:$0xff]  ;;  %v3645_v3 = vpack.c.bf16 %v2654_v57, %v2653_v63 }
 0x214   :  { %3670 = vmatpush3.bf16.msra.mxu1 %v3669_v30  ;;  %3640 = vmatprep.subr.bf16.mxu0 %v3639_v48  ;;  %v2703_v33 = vld [vmem:[#allocation3 + $0x1d0] sm:$0xff]  ;;  %v2704_v12 = vld [vmem:[#allocation3 + $0x1d8] sm:$0xff]  ;;  %v3677_v50 = vpack.c.bf16 %v2686_v27, %v2685_v7  ;;  %v3647_v54 = vpack.c.bf16 %v2672_v58, %v2671_v37  ;;  %v2673_v45 = vld [vmem:[#allocation3 + $0xe0] sm:$0xff] }
 0x215   :  { %3672 = vmatprep.subr.bf16.mxu1 %v3671_v17  ;;  %v2655_v32 = vld [vmem:[#allocation3 + $0x50] sm:$0xff]  ;;  %v2656_v15 = vld [vmem:[#allocation3 + $0x58] sm:$0xff]  ;;  %v3679_v52 = vpack.c.bf16 %v2704_v12, %v2703_v33  ;;  %v2674_v53 = vld [vmem:[#allocation3 + $0xe8] sm:$0xff] }
 0x216   :  { %v2687_v60 = vld [vmem:[#allocation3 + $0x150] sm:$0xff]  ;;  %v2688_v35 = vld [vmem:[#allocation3 + $0x158] sm:$0xff]  ;;  %v2705_v61 = vld [vmem:[#allocation3 + $0x1e0] sm:$0xff]  ;;  %v3649_v21 = vpack.c.bf16 %v2656_v15, %v2655_v32  ;;  %v3651_v44 = vpack.c.bf16 %v2674_v53, %v2673_v45 }
 0x217   :  { %3642 = vmatpush3.bf16.msra.mxu0 %v3641_v6  ;;  %v2706_v25 = vld [vmem:[#allocation3 + $0x1e8] sm:$0xff]  ;;  %v2657_v47 = vld [vmem:[#allocation3 + $0x60] sm:$0xff]  ;;  %v3681_v62 = vpack.c.bf16 %v2688_v35, %v2687_v60  ;;  %v2624_v14 = vld [vmem:[%s7408_s3 + $0x18] sm:$0xff] }
 0x218   :  { %3674 = vmatpush3.bf16.msra.mxu1 %v3673_v2  ;;  %3644 = vmatprep.subr.bf16.mxu0 %v3643_v51  ;;  %v2658_v1 = vld [vmem:[#allocation3 + $0x68] sm:$0xff]  ;;  %v2689_v34 = vld [vmem:[#allocation3 + $0x160] sm:$0xff]  ;;  %v3683_v16 = vpack.c.bf16 %v2706_v25, %v2705_v61  ;;  %v2675_v41 = vld [vmem:[#allocation3 + $0xf0] sm:$0xff] }
 0x219   :  { %3676 = vmatprep.subr.bf16.mxu1 %v3675_v29  ;;  %v2622_v8 = vld [vmem:[%s7408_s3 + $0x8] sm:$0xff]  ;;  %v2676_v43 = vld [vmem:[#allocation3 + $0xf8] sm:$0xff]  ;;  %v2707_v40 = vld [vmem:[#allocation3 + $0x1f0] sm:$0xff]  ;;  %2983 = vmatprep.mubr.f32.mxu1 %v2624_v14  ;;  %v3653_v20 = vpack.c.bf16 %v2658_v1, %v2657_v47 }
 0x21a   :  { %v2690_v10 = vld [vmem:[#allocation3 + $0x168] sm:$0xff]  ;;  %2908 = vmatprep.mubr.f32.mxu0 %v2622_v8  ;;  %v2708_v23 = vld [vmem:[#allocation3 + $0x1f8] sm:$0xff]  ;;  %v3655_v5 = vpack.c.bf16 %v2676_v43, %v2675_v41  ;;  %v2659_v55 = vld [vmem:[#allocation3 + $0x70] sm:$0xff] }
 0x21b   :  { %3646 = vmatpush3.bf16.msra.mxu0 %v3645_v3  ;;  %v3685_v4 = vpack.c.bf16 %v2690_v10, %v2689_v34  ;;  %v2660_v22 = vld [vmem:[#allocation3 + $0x78] sm:$0xff]  ;;  %v2691_v24 = vld [vmem:[#allocation3 + $0x170] sm:$0xff]  ;;  %v3687_v31 = vpack.c.bf16 %v2708_v23, %v2707_v40  ;;  %v2725_v18 = vld [vmem:[#allocation3 + $0x280] sm:$0xff] }
 0x21c   :  { %3678 = vmatpush3.bf16.msra.mxu1 %v3677_v50  ;;  %3648 = vmatprep.subr.bf16.mxu0 %v3647_v54  ;;  %v2692_v0 = vld [vmem:[#allocation3 + $0x178] sm:$0xff]  ;;  %v2726_v28 = vld [vmem:[#allocation3 + $0x288] sm:$0xff]  ;;  %v2757_v59 = vld [vmem:[#allocation3 + $0x380] sm:$0xff]  ;;  %v3657_v26 = vpack.c.bf16 %v2660_v22, %v2659_v55 }
 0x21d   :  { %3680 = vmatprep.subr.bf16.mxu1 %v3679_v52  ;;  %v2758_v19 = vld [vmem:[#allocation3 + $0x388] sm:$0xff]  ;;  %v3689_v38 = vpack.c.bf16 %v2692_v0, %v2691_v24  ;;  %v3691_v30 = vpack.c.bf16 %v2726_v28, %v2725_v18  ;;  %v2709_v48 = vld [vmem:[#allocation3 + $0x200] sm:$0xff]  ;;  %v2727_v13 = vld [vmem:[#allocation3 + $0x290] sm:$0xff] }
 0x21e   :  { %v2710_v9 = vld [vmem:[#allocation3 + $0x208] sm:$0xff]  ;;  %v2741_v46 = vld [vmem:[#allocation3 + $0x300] sm:$0xff]  ;;  %v3723_v42 = vpack.c.bf16 %v2758_v19, %v2757_v59  ;;  %v2728_v36 = vld [vmem:[#allocation3 + $0x298] sm:$0xff] }
 0x21f   :  { %3650 = vmatpush3.bf16.msra.mxu0 %v3649_v21  ;;  %v2742_v17 = vld [vmem:[#allocation3 + $0x308] sm:$0xff]  ;;  %v2759_v49 = vld [vmem:[#allocation3 + $0x390] sm:$0xff]  ;;  %v2760_v11 = vld [vmem:[#allocation3 + $0x398] sm:$0xff]  ;;  %v3693_v6 = vpack.c.bf16 %v2710_v9, %v2709_v48  ;;  %v3695_v51 = vpack.c.bf16 %v2728_v36, %v2727_v13 }
 0x220   :  { %3682 = vmatpush3.bf16.msra.mxu1 %v3681_v62  ;;  %3652 = vmatprep.subr.bf16.mxu0 %v3651_v44  ;;  %v2621_v56 = vld [vmem:[%s7408_s3] sm:$0xff]  ;;  %v2623_v39 = vld [vmem:[%s7408_s3 + $0x10] sm:$0xff]  ;;  %v3725_v2 = vpack.c.bf16 %v2742_v17, %v2741_v46  ;;  %v2712_v57 = vld [vmem:[#allocation3 + $0x218] sm:$0xff]  ;;  %v3727_v29 = vpack.c.bf16 %v2760_v11, %v2759_v49 }
 0x221   :  { %3684 = vmatprep.subr.bf16.mxu1 %v3683_v16  ;;  %v2711_v63 = vld [vmem:[#allocation3 + $0x210] sm:$0xff]  ;;  %v2744_v27 = vld [vmem:[#allocation3 + $0x318] sm:$0xff]  ;;  %v2729_v37 = vld [vmem:[#allocation3 + $0x2a0] sm:$0xff] }
 0x222   :  { %v2743_v7 = vld [vmem:[#allocation3 + $0x310] sm:$0xff]  ;;  %v2730_v58 = vld [vmem:[#allocation3 + $0x2a8] sm:$0xff]  ;;  %v2761_v33 = vld [vmem:[#allocation3 + $0x3a0] sm:$0xff]  ;;  %v3697_v3 = vpack.c.bf16 %v2712_v57, %v2711_v63 }
 0x223   :  { %3654 = vmatpush3.bf16.msra.mxu0 %v3653_v20  ;;  %v2762_v12 = vld [vmem:[#allocation3 + $0x3a8] sm:$0xff]  ;;  %v3729_v50 = vpack.c.bf16 %v2744_v27, %v2743_v7  ;;  %v3699_v54 = vpack.c.bf16 %v2730_v58, %v2729_v37  ;;  %v2713_v32 = vld [vmem:[#allocation3 + $0x220] sm:$0xff]  ;;  %v2731_v45 = vld [vmem:[#allocation3 + $0x2b0] sm:$0xff] }
 0x224   :  { %3686 = vmatpush3.bf16.msra.mxu1 %v3685_v4  ;;  %3656 = vmatprep.subr.bf16.mxu0 %v3655_v5  ;;  %v2714_v15 = vld [vmem:[#allocation3 + $0x228] sm:$0xff]  ;;  %v2745_v60 = vld [vmem:[#allocation3 + $0x320] sm:$0xff]  ;;  %v3731_v52 = vpack.c.bf16 %v2762_v12, %v2761_v33  ;;  %v2732_v53 = vld [vmem:[#allocation3 + $0x2b8] sm:$0xff] }
 0x225   :  { %3688 = vmatprep.subr.bf16.mxu1 %v3687_v31  ;;  %v2746_v35 = vld [vmem:[#allocation3 + $0x328] sm:$0xff]  ;;  %v2763_v61 = vld [vmem:[#allocation3 + $0x3b0] sm:$0xff]  ;;  %v2764_v25 = vld [vmem:[#allocation3 + $0x3b8] sm:$0xff]  ;;  %v3701_v47 = vpack.c.bf16 %v2714_v15, %v2713_v32  ;;  %v3703_v8 = vpack.c.bf16 %v2732_v53, %v2731_v45 }
 0x226   :  { %v2715_v21 = vld [vmem:[#allocation3 + $0x230] sm:$0xff]  ;;  %v2716_v1 = vld [vmem:[#allocation3 + $0x238] sm:$0xff]  ;;  %v2634_v44 = vld [vmem:[%s7408_s3 + $0x68] sm:$0x3]  ;;  %v3733_v34 = vpack.c.bf16 %v2746_v35, %v2745_v60  ;;  %v3735_v41 = vpack.c.bf16 %v2764_v25, %v2763_v61 }
 0x227   :  { %3658 = vmatpush3.bf16.msra.mxu0 %v3657_v26  ;;  %v2747_v62 = vld [vmem:[#allocation3 + $0x330] sm:$0xff]  ;;  %v2748_v14 = vld [vmem:[#allocation3 + $0x338] sm:$0xff]  ;;  %v2733_v16 = vld [vmem:[#allocation3 + $0x2c0] sm:$0xff]  ;;  %v3705_v5 = vpack.c.bf16 %v2716_v1, %v2715_v21 }
 0x228   :  { %3690 = vmatpush3.bf16.msra.mxu1 %v3689_v38  ;;  %3692 = vmatprep.subr.bf16.mxu0 %v3691_v30  ;;  %v2633_v10 = vld [vmem:[%s7408_s3 + $0x60] sm:$0x3]  ;;  %v2734_v43 = vld [vmem:[#allocation3 + $0x2c8] sm:$0xff]  ;;  %v2636_v40 = vld [vmem:[%s7408_s3 + $0x78] sm:$0x3]  ;;  %v3737_v24 = vpack.c.bf16 %v2748_v14, %v2747_v62 }
 0x229   :  { %3724 = vmatprep.subr.bf16.mxu1 %v3723_v42  ;;  %v2635_v23 = vld [vmem:[%s7408_s3 + $0x70] sm:$0x3]  ;;  %v2765_v20 = vld [vmem:[#allocation3 + $0x3c0] sm:$0xff]  ;;  %v2766_v4 = vld [vmem:[#allocation3 + $0x3c8] sm:$0xff]  ;;  %v3707_v31 = vpack.c.bf16 %v2734_v43, %v2733_v16 }
 0x22a   :  { %2909 = vmatmul.mubr.f32.vlgmr.msra.gmra.mrb[0].mxu0 %v2621_v56  ;;  %v2717_v55 = vld [vmem:[#allocation3 + $0x240] sm:$0xff]  ;;  %v2718_v22 = vld [vmem:[#allocation3 + $0x248] sm:$0xff]  ;;  %v2628_v28 = vld [vmem:[%s7408_s3 + $0x38] sm:$0xff]  ;;  %v3739_v59 = vpack.c.bf16 %v2766_v4, %v2765_v20 }
 0x22b   :  { %2984 = vmatmul.mubr.f32.vlgmr.msra.gmra.mrb[0].mxu1 %v2623_v39  ;;  %3694 = vmatpush3.bf16.msra.mxu0 %v3693_v6  ;;  %v2749_v0 = vld [vmem:[#allocation3 + $0x340] sm:$0xff]  ;;  %v2626_v18 = vld [vmem:[%s7408_s3 + $0x28] sm:$0xff]  ;;  %v2735_v26 = vld [vmem:[#allocation3 + $0x2d0] sm:$0xff]  ;;  %v3709_v9 = vpack.c.bf16 %v2718_v22, %v2717_v55  ;;  %v3909_v55 = vmov 0.0|0.0  }
 0x22c   :  { %3726 = vmatpush3.bf16.msra.mxu1 %v3725_v2  ;;  %3696 = vmatprep.subr.bf16.mxu0 %v3695_v51  ;;  %v2750_v19 = vld [vmem:[#allocation3 + $0x348] sm:$0xff]  ;;  %v2736_v38 = vld [vmem:[#allocation3 + $0x2d8] sm:$0xff]  ;;  %v2767_v30 = vld [vmem:[#allocation3 + $0x3d0] sm:$0xff] }
 0x22d   :  { %3728 = vmatprep.subr.bf16.mxu1 %v3727_v29  ;;  %2913 = vmatprep.mubr.f32.mxu0 %v2634_v44  ;;  %v2768_v48 = vld [vmem:[#allocation3 + $0x3d8] sm:$0xff]  ;;  %v3741_v46 = vpack.c.bf16 %v2750_v19, %v2749_v0  ;;  %v3711_v42 = vpack.c.bf16 %v2736_v38, %v2735_v26  ;;  %v2719_v17 = vld [vmem:[#allocation3 + $0x250] sm:$0xff]  ;;  %v2737_v56 = vld [vmem:[#allocation3 + $0x2e0] sm:$0xff] }
 0x22e   :  { %2914 = vmatmul.mubr.f32.gmra.mrb[2].mxu0 %v2633_v10  ;;  %2988 = vmatprep.mubr.f32.mxu1 %v2636_v40  ;;  %v2720_v13 = vld [vmem:[#allocation3 + $0x258] sm:$0xff]  ;;  %v2751_v36 = vld [vmem:[#allocation3 + $0x350] sm:$0xff]  ;;  %v3743_v49 = vpack.c.bf16 %v2768_v48, %v2767_v30  ;;  %v2738_v39 = vld [vmem:[#allocation3 + $0x2e8] sm:$0xff] }
 0x22f   :  { %3698 = vmatpush3.bf16.msra.mxu0 %v3697_v3  ;;  %2989 = vmatmul.mubr.f32.gmra.mrb[2].mxu1 %v2635_v23  ;;  %v2752_v11 = vld [vmem:[#allocation3 + $0x358] sm:$0xff]  ;;  %v2769_v6 = vld [vmem:[#allocation3 + $0x3e0] sm:$0xff]  ;;  %v2770_v2 = vld [vmem:[#allocation3 + $0x3e8] sm:$0xff]  ;;  %v3713_v51 = vpack.c.bf16 %v2720_v13, %v2719_v17  ;;  %v3715_v57 = vpack.c.bf16 %v2738_v39, %v2737_v56 }
 0x230   :  { %3730 = vmatpush3.bf16.msra.mxu1 %v3729_v50  ;;  %3700 = vmatprep.subr.bf16.mxu0 %v3699_v54  ;;  %v3745_v63 = vpack.c.bf16 %v2752_v11, %v2751_v36  ;;  %v2721_v7 = vld [vmem:[#allocation3 + $0x260] sm:$0xff]  ;;  %v2722_v29 = vld [vmem:[#allocation3 + $0x268] sm:$0xff]  ;;  %v3747_v37 = vpack.c.bf16 %v2770_v2, %v2769_v6  ;;  %v2739_v33 = vld [vmem:[#allocation3 + $0x2f0] sm:$0xff] }
 0x231   :  { %3732 = vmatprep.subr.bf16.mxu1 %v3731_v52  ;;  %3058 = vmatprep.mubr.f32.mxu0 %v2626_v18  ;;  %v2753_v27 = vld [vmem:[#allocation3 + $0x360] sm:$0xff]  ;;  %v2754_v58 = vld [vmem:[#allocation3 + $0x368] sm:$0xff]  ;;  %v2740_v12 = vld [vmem:[#allocation3 + $0x2f8] sm:$0xff]  ;;  %v3717_v54 = vpack.c.bf16 %v2722_v29, %v2721_v7 }
 0x232   :  { %3133 = vmatprep.mubr.f32.mxu1 %v2628_v28  ;;  %v2771_v3 = vld [vmem:[#allocation3 + $0x3f0] sm:$0xff]  ;;  %v2772_v50 = vld [vmem:[#allocation3 + $0x3f8] sm:$0xff]  ;;  %v3749_v32 = vpack.c.bf16 %v2754_v58, %v2753_v27  ;;  %v3719_v15 = vpack.c.bf16 %v2740_v12, %v2739_v33  ;;  %v2789_v61 = vld [vmem:[#allocation3 + $0x480] sm:$0xff] }
 0x233   :  { %3702 = vmatpush3.bf16.msra.mxu0 %v3701_v47  ;;  %v2723_v60 = vld [vmem:[#allocation3 + $0x270] sm:$0xff]  ;;  %v2724_v52 = vld [vmem:[#allocation3 + $0x278] sm:$0xff]  ;;  %v3751_v45 = vpack.c.bf16 %v2772_v50, %v2771_v3  ;;  %v2790_v25 = vld [vmem:[#allocation3 + $0x488] sm:$0xff] }
 0x234   :  { %3734 = vmatpush3.bf16.msra.mxu1 %v3733_v34  ;;  %3704 = vmatprep.subr.bf16.mxu0 %v3703_v8  ;;  %v2755_v35 = vld [vmem:[#allocation3 + $0x370] sm:$0xff]  ;;  %v2756_v53 = vld [vmem:[#allocation3 + $0x378] sm:$0xff]  ;;  %v3721_v21 = vpack.c.bf16 %v2724_v52, %v2723_v60  ;;  %v3755_v1 = vpack.c.bf16 %v2790_v25, %v2789_v61  ;;  %v2773_v62 = vld [vmem:[#allocation3 + $0x400] sm:$0xff] }
 0x235   :  { %3736 = vmatprep.subr.bf16.mxu1 %v3735_v41  ;;  %v3753_v47 = vpack.c.bf16 %v2756_v53, %v2755_v35  ;;  %v2774_v44 = vld [vmem:[#allocation3 + $0x408] sm:$0xff]  ;;  %v2805_v34 = vld [vmem:[#allocation3 + $0x500] sm:$0xff]  ;;  %v2791_v14 = vld [vmem:[#allocation3 + $0x490] sm:$0xff] }
 0x236   :  { %v2806_v8 = vld [vmem:[#allocation3 + $0x508] sm:$0xff]  ;;  %v2792_v16 = vld [vmem:[#allocation3 + $0x498] sm:$0xff]  ;;  %v2625_v10 = vld [vmem:[%s7408_s3 + $0x20] sm:$0xff]  ;;  %v3757_v43 = vpack.c.bf16 %v2774_v44, %v2773_v62 }
 0x237   :  { %3706 = vmatpush3.bf16.msra.mxu0 %v3705_v5  ;;  %v2627_v41 = vld [vmem:[%s7408_s3 + $0x30] sm:$0xff]  ;;  %v2638_v40 = vld [vmem:[%s7408_s3 + $0x88] sm:$0x3]  ;;  %v3788_v23 = vpack.c.bf16 %v2806_v8, %v2805_v34  ;;  %v2776_v4 = vld [vmem:[#allocation3 + $0x418] sm:$0xff]  ;;  %v3759_v22 = vpack.c.bf16 %v2792_v16, %v2791_v14 }
 0x238   :  { %3738 = vmatpush3.bf16.msra.mxu1 %v3737_v24  ;;  %3708 = vmatprep.subr.bf16.mxu0 %v3707_v31  ;;  %v2775_v20 = vld [vmem:[#allocation3 + $0x410] sm:$0xff]  ;;  %v2808_v24 = vld [vmem:[#allocation3 + $0x518] sm:$0xff]  ;;  %v2793_v31 = vld [vmem:[#allocation3 + $0x4a0] sm:$0xff] }
 0x239   :  { %3740 = vmatprep.subr.bf16.mxu1 %v3739_v59  ;;  %v2807_v5 = vld [vmem:[#allocation3 + $0x510] sm:$0xff]  ;;  %v2794_v0 = vld [vmem:[#allocation3 + $0x4a8] sm:$0xff]  ;;  %v2637_v18 = vld [vmem:[%s7408_s3 + $0x80] sm:$0x3]  ;;  %v3761_v59 = vpack.c.bf16 %v2776_v4, %v2775_v20 }
 0x23a   :  { %v2640_v28 = vld [vmem:[%s7408_s3 + $0x98] sm:$0x3]  ;;  %v2639_v19 = vld [vmem:[%s7408_s3 + $0x90] sm:$0x3]  ;;  %v3791_v26 = vpack.c.bf16 %v2808_v24, %v2807_v5  ;;  %v3763_v38 = vpack.c.bf16 %v2794_v0, %v2793_v31  ;;  %v2777_v30 = vld [vmem:[#allocation3 + $0x420] sm:$0xff] }
 0x23b   :  { %3710 = vmatpush3.bf16.msra.mxu0 %v3709_v9  ;;  %v2778_v48 = vld [vmem:[#allocation3 + $0x428] sm:$0xff]  ;;  %v2809_v9 = vld [vmem:[#allocation3 + $0x520] sm:$0xff]  ;;  %v2796_v17 = vld [vmem:[#allocation3 + $0x4b8] sm:$0xff] }
 0x23c   :  { %3742 = vmatpush3.bf16.msra.mxu1 %v3741_v46  ;;  %3712 = vmatprep.subr.bf16.mxu0 %v3711_v42  ;;  %v2810_v46 = vld [vmem:[#allocation3 + $0x528] sm:$0xff]  ;;  %v2795_v42 = vld [vmem:[#allocation3 + $0x4b0] sm:$0xff]  ;;  %v3765_v36 = vpack.c.bf16 %v2778_v48, %v2777_v30  ;;  %v2825_v11 = vld [vmem:[%s7409_s4] sm:$0xff] }
 0x23d   :  { %3744 = vmatprep.subr.bf16.mxu1 %v3743_v49  ;;  %v2630_v13 = vld [vmem:[%s7408_s3 + $0x48] sm:$0xff]  ;;  %v2632_v49 = vld [vmem:[%s7408_s3 + $0x58] sm:$0xff]  ;;  %v3794_v56 = vpack.c.bf16 %v2810_v46, %v2809_v9  ;;  %v3767_v39 = vpack.c.bf16 %v2796_v17, %v2795_v42  ;;  %v2779_v6 = vld [vmem:[#allocation3 + $0x430] sm:$0xff]  ;;  %2829 = vperm.xlu0 %3869, %v2825_v11  }
 0x23e   :  { %v2780_v2 = vld [vmem:[#allocation3 + $0x438] sm:$0xff]  ;;  %v2798_v7 = vld [vmem:[#allocation3 + $0x4c8] sm:$0xff]  ;;  %v2781_v33 = vld [vmem:[#allocation3 + $0x440] sm:$0xff] }
 0x23f   :  { %3714 = vmatpush3.bf16.msra.mxu0 %v3713_v51  ;;  %v2811_v51 = vld [vmem:[#allocation3 + $0x530] sm:$0xff]  ;;  %v3769_v29 = vpack.c.bf16 %v2780_v2, %v2779_v6  ;;  %v2826_v27 = vld [vmem:[%s7409_s4 + $0x8] sm:$0x3]  ;;  %v2813_v3 = vld [vmem:[#allocation3 + $0x540] sm:$0xff] }
 0x240   :  { %3746 = vmatpush3.bf16.msra.mxu1 %v3745_v63  ;;  %3716 = vmatprep.subr.bf16.mxu0 %v3715_v57  ;;  %v2812_v63 = vld [vmem:[#allocation3 + $0x538] sm:$0xff]  ;;  %v2797_v57 = vld [vmem:[#allocation3 + $0x4c0] sm:$0xff]  ;;  %v2782_v12 = vld [vmem:[#allocation3 + $0x448] sm:$0xff] }
 0x241   :  { %3748 = vmatprep.subr.bf16.mxu1 %v3747_v37  ;;  %v3797_v37 = vpack.c.bf16 %v2812_v63, %v2811_v51  ;;  %v3771_v58 = vpack.c.bf16 %v2798_v7, %v2797_v57  ;;  %v2814_v50 = vld [vmem:[#allocation3 + $0x548] sm:$0xff]  ;;  %2834 = vperm.xlu0 %3869, %v2826_v27   ;;  %v2783_v35 = vld [vmem:[#allocation3 + $0x450] sm:$0xff]  ;;  %v2816_v61 = vld [vmem:[#allocation3 + $0x558] sm:$0xff] }
 0x242   :  { %v3800_v60 = vpack.c.bf16 %v2814_v50, %v2813_v3  ;;  %v2815_v53 = vld [vmem:[#allocation3 + $0x550] sm:$0xff]  ;;  %v2801_v25 = vld [vmem:[#allocation3 + $0x4e0] sm:$0xff]  ;;  %v2786_v34 = vld [vmem:[#allocation3 + $0x468] sm:$0xff] }
 0x243   :  { %3718 = vmatpush3.bf16.msra.mxu0 %v3717_v54  ;;  %v2799_v54 = vld [vmem:[#allocation3 + $0x4d0] sm:$0xff]  ;;  %v2785_v44 = vld [vmem:[#allocation3 + $0x460] sm:$0xff]  ;;  %v2818_v14 = vld [vmem:[#allocation3 + $0x568] sm:$0xff] }
 0x244   :  { %3750 = vmatpush3.bf16.msra.mxu1 %v3749_v32  ;;  %3720 = vmatprep.subr.bf16.mxu0 %v3719_v15  ;;  %v2800_v32 = vld [vmem:[#allocation3 + $0x4d8] sm:$0xff]  ;;  %v3773_v15 = vpack.c.bf16 %v2782_v12, %v2781_v33  ;;  %v2817_v8 = vld [vmem:[#allocation3 + $0x560] sm:$0xff]  ;;  %v2803_v16 = vld [vmem:[#allocation3 + $0x4f0] sm:$0xff] }
 0x245   :  { %3752 = vmatprep.subr.bf16.mxu1 %v3751_v45  ;;  %v3775_v52 = vpack.c.bf16 %v2800_v32, %v2799_v54  ;;  %v2784_v45 = vld [vmem:[#allocation3 + $0x458] sm:$0xff]  ;;  %v2819_v4 = vld [vmem:[#allocation3 + $0x570] sm:$0xff]  ;;  %v2821_v31 = vld [vmem:[#allocation3 + $0x580] sm:$0xff] }
 0x246   :  { %v2788_v20 = vld [vmem:[#allocation3 + $0x478] sm:$0xff]  ;;  %v2822_v0 = vld [vmem:[#allocation3 + $0x588] sm:$0xff]  ;;  %v2631_v48 = vld [vmem:[%s7408_s3 + $0x50] sm:$0xff] }
 0x247   :  { %3722 = vmatpush3.bf16.msra.mxu0 %v3721_v21  ;;  %v2802_v21 = vld [vmem:[#allocation3 + $0x4e8] sm:$0xff]  ;;  %v2820_v5 = vld [vmem:[#allocation3 + $0x578] sm:$0xff]  ;;  %v2643_v46 = vld [vmem:[%s7408_s3 + $0xb0] sm:$0x3] }
 0x248   :  { %3754 = vmatpush3.bf16.msra.mxu1 %v3753_v47  ;;  %3756 = vmatprep.subr.bf16.mxu0 %v3755_v1  ;;  %v3777_v47 = vpack.c.bf16 %v2784_v45, %v2783_v35  ;;  %v3803_v1 = vpack.c.bf16 %v2816_v61, %v2815_v53  ;;  %v3779_v62 = vpack.c.bf16 %v2802_v21, %v2801_v25  ;;  %v2644_v9 = vld [vmem:[%s7408_s3 + $0xb8] sm:$0x3] }
 0x249   :  { %3787 = vmatprep.subr.bf16.mxu1 %v3909_v55  ;;  %v3809_v24 = vpack.c.bf16 %v2820_v5, %v2819_v4 }
 0x24a   :  { %3059 = vmatmul.mubr.f32.vlgmr.msra.gmra.mrb[4].mxu0 %v2625_v10  ;;  %v2804_v10 = vld [vmem:[#allocation3 + $0x4f8] sm:$0xff] }
 0x24b   :  { %3134 = vmatmul.mubr.f32.vlgmr.msra.gmra.mrb[4].mxu1 %v2627_v41  ;;  %3758 = vmatpush3.bf16.msra.mxu0 %v3757_v43  ;;  %v3781_v41 = vpack.c.bf16 %v2786_v34, %v2785_v44  ;;  %v3806_v43 = vpack.c.bf16 %v2818_v14, %v2817_v8 }
 0x24c   :  { %3789 = vmatpush1.bf16.msra.mxu1 %v3788_v23  ;;  %3063 = vmatprep.mubr.f32.mxu0 %v2638_v40  ;;  %v3783_v40 = vpack.c.bf16 %v2804_v10, %v2803_v16  ;;  %v2787_v23 = vld [vmem:[#allocation3 + $0x470] sm:$0xff] }
 0x24d   :  { %3760 = vmatprep.subr.bf16.mxu0 %v3759_v22  ;;  %3790 = vmatprep.subr.bf16.mxu1 %v3909_v55  ;;  %v3785_v22 = vpack.c.bf16 %v2788_v20, %v2787_v23 }
 0x24e   :  { %3064 = vmatmul.mubr.f32.gmra.mrb[6].mxu0 %v2637_v18  ;;  %3138 = vmatprep.mubr.f32.mxu1 %v2640_v28  ;;  %v2629_v18 = vld [vmem:[%s7408_s3 + $0x40] sm:$0xff]  ;;  %v3812_v28 = vpack.c.bf16 %v2822_v0, %v2821_v31 }
 0x24f   :  { %3762 = vmatpush3.bf16.msra.mxu0 %v3761_v59  ;;  %3139 = vmatmul.mubr.f32.gmra.mrb[6].mxu1 %v2639_v19  ;;  %v2642_v59 = vld [vmem:[%s7408_s3 + $0xa8] sm:$0x3]  ;;  %v2823_v19 = vld [vmem:[#allocation3 + $0x590] sm:$0xff] }
 0x250   :  { %3792 = vmatpush1.bf16.msra.mxu1 %v3791_v26  ;;  %3764 = vmatprep.subr.bf16.mxu0 %v3763_v38  ;;  %v2824_v26 = vld [vmem:[#allocation3 + $0x598] sm:$0xff]  ;;  %v2641_v38 = vld [vmem:[%s7408_s3 + $0xa0] sm:$0x3] }
 0x251   :  { %3793 = vmatprep.subr.bf16.mxu1 %v3909_v55  ;;  %3208 = vmatprep.mubr.f32.mxu0 %v2630_v13  ;;  %v3815_v30 = vpack.c.bf16 %v2824_v26, %v2823_v19 }
 0x252   :  { %3435 = vmatprep.mubr.msk.f32.mxu1 %vm2837_vm2, %v2632_v49 }
 0x253   :  { %3766 = vmatpush3.bf16.msra.mxu0 %v3765_v36 }
 0x254   :  { %3795 = vmatpush1.bf16.msra.mxu1 %v3794_v56  ;;  %3768 = vmatprep.subr.bf16.mxu0 %v3767_v39 }
 0x255   :  { %3796 = vmatprep.subr.bf16.mxu1 %v3909_v55 }
 0x257   :  { %3770 = vmatpush3.bf16.msra.mxu0 %v3769_v29 }
 0x258   :  { %3798 = vmatpush1.bf16.msra.mxu1 %v3797_v37  ;;  %3772 = vmatprep.subr.bf16.mxu0 %v3771_v58 }
 0x259   :  { %3799 = vmatprep.subr.bf16.mxu1 %v3909_v55 }
 0x25b   :  { %3774 = vmatpush3.bf16.msra.mxu0 %v3773_v15 }
 0x25c   :  { %3801 = vmatpush1.bf16.msra.mxu1 %v3800_v60  ;;  %3776 = vmatprep.subr.bf16.mxu0 %v3775_v52 }
 0x25d   :  { %3802 = vmatprep.subr.bf16.mxu1 %v3909_v55 }
 0x25f   :  { %3778 = vmatpush3.bf16.msra.mxu0 %v3777_v47 }
 0x260   :  { %3804 = vmatpush1.bf16.msra.mxu1 %v3803_v1  ;;  %3780 = vmatprep.subr.bf16.mxu0 %v3779_v62 }
 0x261   :  { %3805 = vmatprep.subr.bf16.mxu1 %v3909_v55 }
 0x263   :  { %3782 = vmatpush3.bf16.msra.mxu0 %v3781_v41 }
 0x264   :  { %3807 = vmatpush1.bf16.msra.mxu1 %v3806_v43  ;;  %3784 = vmatprep.subr.bf16.mxu0 %v3783_v40 }
 0x265   :  { %3808 = vmatprep.subr.bf16.mxu1 %v3909_v55 }
 0x267   :  { %3786 = vmatpush3.bf16.msra.mxu0 %v3785_v22 }
 0x268   :  { %3810 = vmatpush1.bf16.msra.mxu1 %v3809_v24 }
 0x269   :  { %3811 = vmatprep.subr.bf16.mxu1 %v3909_v55 }
 0x26a   :  { %3209 = vmatmul.mubr.f32.vlgmr.msra.gmra.mrb[8].mxu0 %v2629_v18 }
 0x26b   :  { %3213 = vmatprep.mubr.f32.mxu0 %v2642_v59 }
 0x26c   :  { %3813 = vmatpush1.bf16.msra.mxu1 %v3812_v28 }
 0x26d   :  { %3814 = vmatprep.subr.bf16.mxu1 %v3909_v55 }
 0x26e   :  { %3214 = vmatmul.mubr.f32.gmra.mrb[10].mxu0 %v2641_v38 }
 0x270   :  { %3816 = vmatpush1.bf16.msra.mxu1 %v3815_v30 }
 0x273   :  { %3284 = vmatmul.mubr.f32.vlgmr.msra.gmra.mrb[8].mxu1 %v2631_v48 }
 0x274   :  { %3436 = vmatprep.mubr.msk.f32.mxu1 %vm2837_vm2, %v2644_v9 }
 0x277   :  { %3289 = vmatmul.mubr.f32.gmra.mrb[10].mxu1 %v2643_v46 }
 0x2bc   :  { %v2830_v55 = vpop.permute.xlu0 %2829 }
 0x2c0   :  { %v2835_v2 = vpop.permute.xlu0 %2834 }
 0x2fd   :  { %v3469_v42 = vpop.f32.mrb[0].mxu0 }
 0x2fe   :  { %v3507_v17 = vpop.f32.mrb[0].mxu1  ;;  %v3470_v13 = vpop.f32.mrb[1].mxu0 }
 0x2ff   :  { %v3471_v36 = vadd.f32 %v3470_v13, %v3469_v42  ;;  %v3508_v49 = vpop.f32.mrb[1].mxu1 }
 0x300   :  { %v3509_v11 = vadd.f32 %v3508_v49, %v3507_v17 }
 0x301   :  { %v2911_v56 = vadd.f32 %v3471_v36, %v2830_v55  ;;  %v3472_v6 = vpop.f32.mrb[2].mxu0 }
 0x302   :  { %v3473_v51 = vpop.f32.mrb[3].mxu0  ;;  %v3510_v63 = vpop.f32.mrb[2].mxu1 }
 0x303   :  { %v2986_v39 = vadd.f32 %v3509_v11, %v2911_v56  ;;  %v3474_v57 = vadd.f32 %v3473_v51, %v3472_v6  ;;  %v3511_v7 = vpop.f32.mrb[3].mxu1 }
 0x304   :  { %v3512_v29 = vadd.f32 %v3511_v7, %v3510_v63 }
 0x305   :  { %v2916_v27 = vadd.f32 %v3474_v57, %v2835_v2 }
 0x307   :  { %v2991_v37 = vadd.f32 %v3512_v29, %v2916_v27 }
 0x31d   :  { %v3545_v58 = vpop.f32.mrb[4].mxu0 }
 0x31e   :  { %v3583_v33 = vpop.f32.mrb[4].mxu1  ;;  %v3546_v12 = vpop.f32.mrb[5].mxu0 }
 0x31f   :  { %v3547_v3 = vadd.f32 %v3546_v12, %v3545_v58  ;;  %v3584_v50 = vpop.f32.mrb[5].mxu1 }
 0x320   :  { %v3585_v54 = vadd.f32 %v3584_v50, %v3583_v33 }
 0x321   :  { %v3061_v32 = vadd.f32 %v3547_v3, %v2986_v39  ;;  %v3548_v15 = vpop.f32.mrb[6].mxu0 }
 0x322   :  { %v3549_v60 = vpop.f32.mrb[7].mxu0  ;;  %v3586_v52 = vpop.f32.mrb[6].mxu1 }
 0x323   :  { %v3136_v35 = vadd.f32 %v3585_v54, %v3061_v32  ;;  %v3550_v45 = vadd.f32 %v3549_v60, %v3548_v15  ;;  %v3587_v53 = vpop.f32.mrb[7].mxu1 }
 0x324   :  { %v3588_v61 = vadd.f32 %v3587_v53, %v3586_v52 }
 0x325   :  { %v3066_v25 = vadd.f32 %v3550_v45, %v2991_v37 }
 0x327   :  { %v3141_v21 = vadd.f32 %v3588_v61, %v3066_v25 }
 0x33d   :  { %v3621_v47 = vpop.f32.mrb[8].mxu0 }
 0x33e   :  { %v3622_v1 = vpop.f32.mrb[9].mxu0 }
 0x33f   :  { %v3623_v62 = vadd.f32 %v3622_v1, %v3621_v47 }
 0x341   :  { %v3624_v44 = vpop.f32.mrb[10].mxu0  ;;  %v3211_v34 = vadd.f32 %v3623_v62, %v3136_v35 }
 0x342   :  { %v3625_v8 = vpop.f32.mrb[11].mxu0 }
 0x343   :  { %v3626_v14 = vadd.f32 %v3625_v8, %v3624_v44 }
 0x345   :  { %v3216_v16 = vadd.f32 %v3626_v14, %v3141_v21 }
 0x346   :  { %v3285_v10 = vpop.f32.mrb[8].mxu1 }
 0x347   :  { %v3286_v41 = vadd.f32 %v3285_v10, %v3211_v34  ;;  %v3287_v43 = vpop.f32.mrb[9].mxu1 }
 0x349   :  { %3294 = vst [vmem:[%s7410_s5] sm:$0xff] %v3286_v41 }
 0x34a   :  { %v3290_v40 = vpop.f32.mrb[10].mxu1 }
 0x34b   :  { %v3291_v23 = vadd.f32 %v3290_v40, %v3216_v16  ;;  %v3292_v20 = vpop.f32.mrb[11].mxu1 }
 0x34d   :  { %3295 = vst [vmem:[%s7410_s5 + $0x8] sm:$0x3] %v3291_v23 }
 0x34e   :  { %3300 = vsyncpa [#allocation5], 1 }
 0x34f   :  { %3301 = vsyncpa [#allocation7], 1 }

</bundles_post_ra>
